<compile_context>
chip_gen: v5e
topology: v5e:2x2
jax: 0.10.0
libtpu: 0.0.40
codegen_flags: <defaults>
</compile_context>

<pallas_src>
import functools

import numpy as np
import jax
import jax.numpy as jnp
from jax.experimental import pallas as pl
from jax.experimental.pallas import tpu as pltpu


def _window_attn_kernel(has_mask, *refs):
    if has_mask:
        (x_ref, wqkv_ref, bqkv_ref, wproj_ref, bproj_ref,
         rel_bias_ref, mask_ref, o_ref) = refs
    else:
        (x_ref, wqkv_ref, bqkv_ref, wproj_ref, bproj_ref,
         rel_bias_ref, o_ref) = refs
        mask_ref = None

    f32, bf16 = jnp.float32, jnp.bfloat16
    nh, N, _ = rel_bias_ref.shape          # (num_heads, N, N)
    _, M, C = x_ref.shape                  # (1, TB*N, C)
    TB = M // N
    hd = C // nh

    # Input tile arrives in its HBM dtype; cast to bf16 in VMEM (avoids an
    # extra full-array XLA cast pass in HBM outside the kernel).
    x = x_ref[0].astype(bf16)                                          # (M, C)

    # Fused QKV projection (scale folded into q columns), f32 accumulation,
    # then ONE bf16 cast pass over the whole (M, 3C) activation.
    qkv = jnp.dot(x, wqkv_ref[...], preferred_element_type=f32) + bqkv_ref[...]
    qkv = qkv.astype(bf16).reshape(TB, N, 3 * C)                       # leading-dim split only

    if mask_ref is not None:
        mask = mask_ref[...]                                           # (nWm, N, N) f32
        nWm = mask.shape[0]
        rep = TB // nWm                                                # images batched per tile

    acc = None
    for h in range(nh):                                                # static, unrolled
        q = qkv[:, :, h * hd:(h + 1) * hd]                             # (TB, N, hd) bf16
        k = qkv[:, :, C + h * hd:C + (h + 1) * hd]                     # (TB, N, hd) bf16
        v = qkv[:, :, 2 * C + h * hd:2 * C + (h + 1) * hd]             # (TB, N, hd) bf16

        # q @ k^T without materializing a transpose: contract hd, batch windows.
        s = jax.lax.dot_general(
            q, k, dimension_numbers=(((2,), (2,)), ((0,), (0,))),
            preferred_element_type=f32)                                # (TB, N, N) f32
        s = s + rel_bias_ref[h]                                        # (N, N) broadcast over TB
        if mask_ref is not None:
            if rep == 1:
                s = s + mask                                           # one window-chunk per tile
            else:
                # Broadcast the per-window mask over the images batched into
                # this tile (leading-dims-only reshape; last two dims unchanged).
                s = (s.reshape(rep, nWm, N, N) + mask[None]).reshape(TB, N, N)

        # Softmax in f32; divide via EUP reciprocal (separate issue slot).
        s = s - jnp.max(s, axis=-1, keepdims=True)
        p = jnp.exp(s)
        inv = pl.reciprocal(jnp.sum(p, axis=-1, keepdims=True), approx=True)
        p = (p * inv).astype(bf16)

        o_h = jax.lax.dot_general(
            p, v, dimension_numbers=(((2,), (1,)), ((0,), (0,))),
            preferred_element_type=f32)                                # (TB, N, hd) f32

        # Per-head projection accumulation (== concat(heads) @ Wproj) — no
        # lane-axis concat; per-head temps die each iteration.
        contrib = jnp.dot(o_h.reshape(M, hd).astype(bf16),
                          wproj_ref[h * hd:(h + 1) * hd, :],
                          preferred_element_type=f32)                  # (M, C) f32
        acc = contrib if acc is None else acc + contrib

    out = acc + bproj_ref[...]                                         # (M, C) f32
    # TODO(synk): with C < 128 this is a masked sub-128-lane store; a lane-dense
    # (M*C/128, 128) out_spec requires an in-kernel minor-dims reshape whose
    # Mosaic lowering is shape-dependent, so it is deferred (moot once C >= 128).
    o_ref[0] = out.astype(o_ref.dtype)


def _choose_tb(B_, nW, N, C, in_bytes, out_bytes, vmem_budget=16 * 1024 * 1024):
    """Pick windows-per-grid-step.

    Caps the per-step VMEM footprint, keeps >= 2 grid steps when possible (so
    both v7x TensorCores get work under dimension_semantics=('parallel',)),
    and only allows TB values for which the per-window mask remains
    expressible by the mask BlockSpec (TB a multiple of nW, or a divisor)."""
    def footprint(tb):
        M = tb * N
        b = 2 * M * C * in_bytes          # x tile, double-buffered
        b += 2 * M * C * out_bytes        # out tile, double-buffered
        b += M * 3 * C * (4 + 2)          # qkv f32 + one bf16 copy
        b += 4 * tb * N * N * 4           # per-head logits/exp/probs (f32, transient)
        b += 2 * M * C * 4                # projection accumulator + per-head temp
        return b

    if nW is not None:
        cands = {d for d in range(1, nW + 1) if nW % d == 0 and B_ % d == 0}
        k = 1
        while k * nW <= B_:
            if B_ % (k * nW) == 0:
                cands.add(k * nW)
            k += 1
    else:
        cands = {d for d in range(1, B_ + 1) if B_ % d == 0}

    fitting = [tb for tb in sorted(cands) if footprint(tb) <= vmem_budget]
    if not fitting:
        fitting = [min(cands)]
    multi = [tb for tb in fitting if B_ // tb >= 2]
    return max(multi) if multi else max(fitting)


def window_attention(x, params, mask=None):
    """Pallas W-MSA forward. x: (B_, N, C). mask: (nW, N, N) additive or None."""
    B_, N, C = x.shape
    nh = params["num_heads"]
    scale = params["scale"]
    out_dtype = x.dtype

    # --- one-time param prep (plain JAX glue; all tiny) ----------------------
    # Fold the qk scale into the q columns of the fused qkv weight/bias.
    col_scale = jnp.concatenate(
        [jnp.full((C,), scale, jnp.float32), jnp.ones((2 * C,), jnp.float32)])
    wqkv = (params["wqkv_t"].astype(jnp.float32) * col_scale[None, :]
            ).astype(jnp.bfloat16)                                     # (C, 3C)
    bqkv = (params["bqkv"].astype(jnp.float32) * col_scale).reshape(1, 3 * C)
    wproj = params["wproj_t"].astype(jnp.bfloat16)                     # (C, C)
    bproj = params["bproj"].astype(jnp.float32).reshape(1, C)          # (1, C)
    rel_bias = params["rel_bias"].astype(jnp.float32)                  # (nh, N, N)

    nW = None
    if mask is not None:
        nW = mask.shape[0]
        assert B_ % nW == 0, "x must be image-major / window-minor with B_ % nW == 0"
        mask = mask.astype(jnp.float32)                                # (nW, N, N)

    TB = _choose_tb(B_, nW, N, C, x.dtype.itemsize, jnp.dtype(out_dtype).itemsize)
    n_tiles = B_ // TB
    M = TB * N
    x_in = x.reshape(n_tiles, M, C)        # contiguous reshape: free, no dtype cast

    # Weights / biases / rel_bias / (full) mask use constant index_maps, so they
    # are DMA'd once and stay VMEM-resident for the whole grid.
    const2 = lambda t: (0, 0)
    const3 = lambda t: (0, 0, 0)
    in_specs = [
        pl.BlockSpec((1, M, C), lambda t: (t, 0, 0)),                  # x tile
        pl.BlockSpec(wqkv.shape, const2),                              # fused qkv weight (resident)
        pl.BlockSpec(bqkv.shape, const2),                              # fused qkv bias   (resident)
        pl.BlockSpec(wproj.shape, const2),                             # proj weight      (resident)
        pl.BlockSpec(bproj.shape, const2),                             # proj bias        (resident)
        pl.BlockSpec(rel_bias.shape, const3),                          # rel-pos bias     (resident)
    ]
    operands = [x_in, wqkv, bqkv, wproj, bproj, rel_bias]
    if mask is not None:
        if TB >= nW:
            mask_spec = pl.BlockSpec(mask.shape, const3)               # full mask, resident
        else:
            n_chunks = nW // TB
            mask_spec = pl.BlockSpec((TB, N, N),
                                     lambda t: (t % n_chunks, 0, 0))   # per-tile window chunk
        in_specs.append(mask_spec)
        operands.append(mask)

    out = pl.pallas_call(
        functools.partial(_window_attn_kernel, mask is not None),
        out_shape=jax.ShapeDtypeStruct((n_tiles, M, C), out_dtype),    # written in x.dtype directly
        grid_spec=pltpu.PrefetchScalarGridSpec(
            num_scalar_prefetch=0,
            grid=(n_tiles,),
            in_specs=in_specs,
            out_specs=pl.BlockSpec((1, M, C), lambda t: (t, 0, 0)),
        ),
        compiler_params=pltpu.CompilerParams(
            dimension_semantics=("parallel",),
            vmem_limit_bytes=48 * 1024 * 1024),                        # safe on v5e/v6e/v7x
    )(*operands)

    return out.reshape(B_, N, C)           # contiguous reshape: free, no dtype cast


def _build_relative_position_bias(table, window_size, num_heads):
    """Replicates the PyTorch relative_position_index construction (numpy glue)."""
    Wh, Ww = window_size
    N = Wh * Ww
    coords = np.stack(np.meshgrid(np.arange(Wh), np.arange(Ww), indexing="ij"))  # (2, Wh, Ww)
    coords_flatten = coords.reshape(2, -1)                                        # (2, N)
    relative_coords = coords_flatten[:, :, None] - coords_flatten[:, None, :]     # (2, N, N)
    relative_coords = relative_coords.transpose(1, 2, 0).astype(np.int64)         # (N, N, 2)
    relative_coords[:, :, 0] += Wh - 1
    relative_coords[:, :, 1] += Ww - 1
    relative_coords[:, :, 0] *= 2 * Ww - 1
    relative_position_index = relative_coords.sum(-1)                             # (N, N)
    bias = table[relative_position_index.reshape(-1)].reshape(N, N, num_heads)
    return jnp.transpose(bias, (2, 0, 1))                                         # (nh, N, N)


def _reference(x, params, mask):
    """Pure-JAX f32 reference matching the PyTorch forward."""
    B_, N, C = x.shape
    nh = params["num_heads"]
    hd = C // nh
    scale = params["scale"]
    qkv = x @ params["wqkv_t"] + params["bqkv"]                        # (B_, N, 3C)
    qkv = qkv.reshape(B_, N, 3, nh, hd).transpose(2, 0, 3, 1, 4)
    q, k, v = qkv[0] * scale, qkv[1], qkv[2]                           # (B_, nh, N, hd)
    attn = jnp.einsum("bhnd,bhmd->bhnm", q, k) + params["rel_bias"][None]
    nW = mask.shape[0]
    attn = attn.reshape(B_ // nW, nW, nh, N, N) + mask[None, :, None]
    attn = attn.reshape(B_, nh, N, N)
    attn = jax.nn.softmax(attn, axis=-1)
    out = jnp.einsum("bhnm,bhmd->bhnd", attn, v).transpose(0, 2, 1, 3).reshape(B_, N, C)
    return out @ params["wproj_t"] + params["bproj"]


if __name__ == "__main__":
    # Small, module-consistent shapes: dim=32, window 8x8 (N=64), 2 heads,
    # batch=2 images * 4 windows each => B_ = 8.
    dim = 32
    window_size = (8, 8)
    num_heads = 2
    B, nW = 2, 4
    B_ = B * nW
    N = window_size[0] * window_size[1]
    head_dim = dim // num_heads

    key = jax.random.PRNGKey(0)
    k_tab, k_wqkv, k_bqkv, k_wproj, k_bproj, k_x, k_mask = jax.random.split(key, 7)

    table = 0.02 * jax.random.truncated_normal(
        k_tab, -2.0, 2.0,
        ((2 * window_size[0] - 1) * (2 * window_size[1] - 1), num_heads),
        dtype=jnp.float32)
    rel_bias = _build_relative_position_bias(np.asarray(table), window_size, num_heads)

    params = {
        "num_heads": num_heads,
        "scale": head_dim ** -0.5,
        # store transposed weights so forward is  x @ W.T + b  ==  x @ wqkv_t + b
        "wqkv_t": 0.02 * jax.random.normal(k_wqkv, (dim, 3 * dim), dtype=jnp.float32),
        "bqkv": 0.01 * jax.random.normal(k_bqkv, (3 * dim,), dtype=jnp.float32),
        "wproj_t": 0.02 * jax.random.normal(k_wproj, (dim, dim), dtype=jnp.float32),
        "bproj": 0.01 * jax.random.normal(k_bproj, (dim,), dtype=jnp.float32),
        "rel_bias": rel_bias,
    }

    x = jax.random.normal(k_x, (B_, N, dim), dtype=jnp.float32)
    # Swin-style additive mask: 0 where allowed, -100 where masked.
    mask = jnp.where(jax.random.uniform(k_mask, (nW, N, N)) < 0.3, -100.0, 0.0).astype(jnp.float32)

    out = jax.block_until_ready(window_attention(x, params, mask))

    ref = _reference(x, params, mask)
    # Tolerance accounts for bf16 MXU operands (f32 accumulation) and the
    # approximate EUP reciprocal in the softmax; softmax math stays f32.
    np.testing.assert_allclose(np.asarray(out), np.asarray(ref), rtol=2e-2, atol=2e-3)

    print("KERNEL_OK")
</pallas_src>

<mosaic_0001>
module attributes {stable_mosaic.version = 11 : i64} {
  func.func @_window_attn_kernel(%arg0: i32, %arg1: memref<1x256x32xf32, #tpu.memory_space<vmem>>, %arg2: memref<32x96xbf16, #tpu.memory_space<vmem>>, %arg3: memref<1x96xf32, #tpu.memory_space<vmem>>, %arg4: memref<32x32xbf16, #tpu.memory_space<vmem>>, %arg5: memref<1x32xf32, #tpu.memory_space<vmem>>, %arg6: memref<2x64x64xf32, #tpu.memory_space<vmem>>, %arg7: memref<4x64x64xf32, #tpu.memory_space<vmem>>, %arg8: memref<1x256x32xf32, #tpu.memory_space<vmem>>) attributes {dimension_semantics = [#tpu.dimension_semantics<parallel>], iteration_bounds = array<i64: 2>, scalar_prefetch = 0 : i64, scratch_operands = 0 : i64, tpu.core_type = #tpu.core_type<tc>, window_params = [{transform_indices = @transform_0, window_bounds = array<i64: 1, 256, 32>}, {pipeline_mode = #tpu.pipeline_mode<synchronous>, transform_indices = @transform_1, window_bounds = array<i64: 32, 96>}, {pipeline_mode = #tpu.pipeline_mode<synchronous>, transform_indices = @transform_2, window_bounds = array<i64: 1, 96>}, {pipeline_mode = #tpu.pipeline_mode<synchronous>, transform_indices = @transform_3, window_bounds = array<i64: 32, 32>}, {pipeline_mode = #tpu.pipeline_mode<synchronous>, transform_indices = @transform_4, window_bounds = array<i64: 1, 32>}, {pipeline_mode = #tpu.pipeline_mode<synchronous>, transform_indices = @transform_5, window_bounds = array<i64: 2, 64, 64>}, {pipeline_mode = #tpu.pipeline_mode<synchronous>, transform_indices = @transform_6, window_bounds = array<i64: 4, 64, 64>}, {transform_indices = @transform_7, window_bounds = array<i64: 1, 256, 32>}]} {
    %c0 = arith.constant 0 : index
    %c0_0 = arith.constant 0 : index
    %c0_1 = arith.constant 0 : index
    %0 = vector.load %arg1[%c0, %c0_0, %c0_1] : memref<1x256x32xf32, #tpu.memory_space<vmem>>, vector<1x256x32xf32>
    %1 = vector.shape_cast %0 : vector<1x256x32xf32> to vector<256x32xf32>
    %2 = arith.truncf %1 : vector<256x32xf32> to vector<256x32xbf16>
    %c0_2 = arith.constant 0 : index
    %c0_3 = arith.constant 0 : index
    %3 = vector.load %arg2[%c0_2, %c0_3] : memref<32x96xbf16, #tpu.memory_space<vmem>>, vector<32x96xbf16>
    %cst = arith.constant dense<0.000000e+00> : vector<256x96xf32>
    %4 = tpu.matmul %2, %3, %cst {dimension_numbers = #tpu.dot_dimension_numbers<[1], [0], [0], [1], [0, 0, 1, 1], [], []>} : vector<256x32xbf16>, vector<32x96xbf16>, vector<256x96xf32> -> vector<256x96xf32>
    %c0_4 = arith.constant 0 : index
    %c0_5 = arith.constant 0 : index
    %5 = vector.load %arg3[%c0_4, %c0_5] : memref<1x96xf32, #tpu.memory_space<vmem>>, vector<1x96xf32>
    %6 = vector.broadcast %5 : vector<1x96xf32> to vector<256x96xf32>
    %7 = arith.addf %4, %6 : vector<256x96xf32>
    %8 = arith.truncf %7 : vector<256x96xf32> to vector<256x96xbf16>
    %9 = vector.shape_cast %8 : vector<256x96xbf16> to vector<4x64x96xbf16>
    %c0_6 = arith.constant 0 : index
    %c0_7 = arith.constant 0 : index
    %c0_8 = arith.constant 0 : index
    %10 = vector.load %arg7[%c0_6, %c0_7, %c0_8] : memref<4x64x64xf32, #tpu.memory_space<vmem>>, vector<4x64x64xf32>
    %11 = vector.extract_strided_slice %9 {offsets = [0, 0, 0], sizes = [4, 64, 16], strides = [1, 1, 1]} : vector<4x64x96xbf16> to vector<4x64x16xbf16>
    %12 = vector.extract_strided_slice %9 {offsets = [0, 0, 32], sizes = [4, 64, 16], strides = [1, 1, 1]} : vector<4x64x96xbf16> to vector<4x64x16xbf16>
    %13 = vector.extract_strided_slice %9 {offsets = [0, 0, 64], sizes = [4, 64, 16], strides = [1, 1, 1]} : vector<4x64x96xbf16> to vector<4x64x16xbf16>
    %cst_9 = arith.constant dense<0.000000e+00> : vector<4x64x64xf32>
    %14 = tpu.matmul %11, %12, %cst_9 {dimension_numbers = #tpu.dot_dimension_numbers<[2], [2], [1], [1], [0, 0, 0, 1, 1, 1], [0], [0]>} : vector<4x64x16xbf16>, vector<4x64x16xbf16>, vector<4x64x64xf32> -> vector<4x64x64xf32>
    %c0_10 = arith.constant 0 : index
    %c0_11 = arith.constant 0 : index
    %c0_12 = arith.constant 0 : index
    %15 = vector.load %arg6[%c0_10, %c0_11, %c0_12] : memref<2x64x64xf32, #tpu.memory_space<vmem>>, vector<1x64x64xf32>
    %16 = vector.shape_cast %15 : vector<1x64x64xf32> to vector<64x64xf32>
    %17 = vector.shape_cast %16 : vector<64x64xf32> to vector<1x64x64xf32>
    %18 = vector.broadcast %17 : vector<1x64x64xf32> to vector<4x64x64xf32>
    %19 = arith.addf %14, %18 : vector<4x64x64xf32>
    %20 = arith.addf %19, %10 : vector<4x64x64xf32>
    %cst_13 = arith.constant dense<0xFF800000> : vector<4x64xf32>
    %21 = vector.multi_reduction <maximumf>, %20, %cst_13 [2] : vector<4x64x64xf32> to vector<4x64xf32>
    %22 = vector.shape_cast %21 : vector<4x64xf32> to vector<4x64x1xf32>
    %23 = vector.broadcast %22 : vector<4x64x1xf32> to vector<4x64x64xf32>
    %24 = arith.subf %20, %23 : vector<4x64x64xf32>
    %25 = math.exp %24 : vector<4x64x64xf32>
    %cst_14 = arith.constant dense<0.000000e+00> : vector<4x64xf32>
    %26 = vector.multi_reduction <add>, %25, %cst_14 [2] : vector<4x64x64xf32> to vector<4x64xf32>
    %27 = vector.shape_cast %26 : vector<4x64xf32> to vector<4x64x1xf32>
    %28 = tpu.reciprocal %27 {approx = true} : vector<4x64x1xf32> -> vector<4x64x1xf32>
    %29 = vector.broadcast %28 : vector<4x64x1xf32> to vector<4x64x64xf32>
    %30 = arith.mulf %25, %29 : vector<4x64x64xf32>
    %31 = arith.truncf %30 : vector<4x64x64xf32> to vector<4x64x64xbf16>
    %cst_15 = arith.constant dense<0.000000e+00> : vector<4x64x16xf32>
    %32 = tpu.matmul %31, %13, %cst_15 {dimension_numbers = #tpu.dot_dimension_numbers<[2], [1], [1], [2], [0, 0, 0, 1, 1, 2], [0], [0]>} : vector<4x64x64xbf16>, vector<4x64x16xbf16>, vector<4x64x16xf32> -> vector<4x64x16xf32>
    %33 = vector.shape_cast %32 : vector<4x64x16xf32> to vector<256x16xf32>
    %34 = arith.truncf %33 : vector<256x16xf32> to vector<256x16xbf16>
    %c0_16 = arith.constant 0 : index
    %c0_17 = arith.constant 0 : index
    %35 = vector.load %arg4[%c0_16, %c0_17] : memref<32x32xbf16, #tpu.memory_space<vmem>>, vector<16x32xbf16>
    %cst_18 = arith.constant dense<0.000000e+00> : vector<256x32xf32>
    %36 = tpu.matmul %34, %35, %cst_18 {dimension_numbers = #tpu.dot_dimension_numbers<[1], [0], [0], [1], [0, 0, 1, 1], [], []>} : vector<256x16xbf16>, vector<16x32xbf16>, vector<256x32xf32> -> vector<256x32xf32>
    %37 = vector.extract_strided_slice %9 {offsets = [0, 0, 16], sizes = [4, 64, 16], strides = [1, 1, 1]} : vector<4x64x96xbf16> to vector<4x64x16xbf16>
    %38 = vector.extract_strided_slice %9 {offsets = [0, 0, 48], sizes = [4, 64, 16], strides = [1, 1, 1]} : vector<4x64x96xbf16> to vector<4x64x16xbf16>
    %39 = vector.extract_strided_slice %9 {offsets = [0, 0, 80], sizes = [4, 64, 16], strides = [1, 1, 1]} : vector<4x64x96xbf16> to vector<4x64x16xbf16>
    %cst_19 = arith.constant dense<0.000000e+00> : vector<4x64x64xf32>
    %40 = tpu.matmul %37, %38, %cst_19 {dimension_numbers = #tpu.dot_dimension_numbers<[2], [2], [1], [1], [0, 0, 0, 1, 1, 1], [0], [0]>} : vector<4x64x16xbf16>, vector<4x64x16xbf16>, vector<4x64x64xf32> -> vector<4x64x64xf32>
    %c1 = arith.constant 1 : index
    %c0_20 = arith.constant 0 : index
    %c0_21 = arith.constant 0 : index
    %41 = vector.load %arg6[%c1, %c0_20, %c0_21] : memref<2x64x64xf32, #tpu.memory_space<vmem>>, vector<1x64x64xf32>
    %42 = vector.shape_cast %41 : vector<1x64x64xf32> to vector<64x64xf32>
    %43 = vector.shape_cast %42 : vector<64x64xf32> to vector<1x64x64xf32>
    %44 = vector.broadcast %43 : vector<1x64x64xf32> to vector<4x64x64xf32>
    %45 = arith.addf %40, %44 : vector<4x64x64xf32>
    %46 = arith.addf %45, %10 : vector<4x64x64xf32>
    %cst_22 = arith.constant dense<0xFF800000> : vector<4x64xf32>
    %47 = vector.multi_reduction <maximumf>, %46, %cst_22 [2] : vector<4x64x64xf32> to vector<4x64xf32>
    %48 = vector.shape_cast %47 : vector<4x64xf32> to vector<4x64x1xf32>
    %49 = vector.broadcast %48 : vector<4x64x1xf32> to vector<4x64x64xf32>
    %50 = arith.subf %46, %49 : vector<4x64x64xf32>
    %51 = math.exp %50 : vector<4x64x64xf32>
    %cst_23 = arith.constant dense<0.000000e+00> : vector<4x64xf32>
    %52 = vector.multi_reduction <add>, %51, %cst_23 [2] : vector<4x64x64xf32> to vector<4x64xf32>
    %53 = vector.shape_cast %52 : vector<4x64xf32> to vector<4x64x1xf32>
    %54 = tpu.reciprocal %53 {approx = true} : vector<4x64x1xf32> -> vector<4x64x1xf32>
    %55 = vector.broadcast %54 : vector<4x64x1xf32> to vector<4x64x64xf32>
    %56 = arith.mulf %51, %55 : vector<4x64x64xf32>
    %57 = arith.truncf %56 : vector<4x64x64xf32> to vector<4x64x64xbf16>
    %cst_24 = arith.constant dense<0.000000e+00> : vector<4x64x16xf32>
    %58 = tpu.matmul %57, %39, %cst_24 {dimension_numbers = #tpu.dot_dimension_numbers<[2], [1], [1], [2], [0, 0, 0, 1, 1, 2], [0], [0]>} : vector<4x64x64xbf16>, vector<4x64x16xbf16>, vector<4x64x16xf32> -> vector<4x64x16xf32>
    %59 = vector.shape_cast %58 : vector<4x64x16xf32> to vector<256x16xf32>
    %60 = arith.truncf %59 : vector<256x16xf32> to vector<256x16xbf16>
    %c16 = arith.constant 16 : index
    %c0_25 = arith.constant 0 : index
    %61 = vector.load %arg4[%c16, %c0_25] : memref<32x32xbf16, #tpu.memory_space<vmem>>, vector<16x32xbf16>
    %cst_26 = arith.constant dense<0.000000e+00> : vector<256x32xf32>
    %62 = tpu.matmul %60, %61, %cst_26 {dimension_numbers = #tpu.dot_dimension_numbers<[1], [0], [0], [1], [0, 0, 1, 1], [], []>} : vector<256x16xbf16>, vector<16x32xbf16>, vector<256x32xf32> -> vector<256x32xf32>
    %63 = arith.addf %36, %62 : vector<256x32xf32>
    %c0_27 = arith.constant 0 : index
    %c0_28 = arith.constant 0 : index
    %64 = vector.load %arg5[%c0_27, %c0_28] : memref<1x32xf32, #tpu.memory_space<vmem>>, vector<1x32xf32>
    %65 = vector.broadcast %64 : vector<1x32xf32> to vector<256x32xf32>
    %66 = arith.addf %63, %65 : vector<256x32xf32>
    %c0_29 = arith.constant 0 : index
    %c0_30 = arith.constant 0 : index
    %c0_31 = arith.constant 0 : index
    %67 = vector.load %arg8[%c0_29, %c0_30, %c0_31] : memref<1x256x32xf32, #tpu.memory_space<vmem>>, vector<1x256x32xf32>
    %68 = vector.shape_cast %67 : vector<1x256x32xf32> to vector<256x32xf32>
    %69 = vector.shape_cast %66 : vector<256x32xf32> to vector<1x256x32xf32>
    tpu.vector_store %arg8[%c0_29, %c0_30, %c0_31], %69 {strides = array<i32>} : memref<1x256x32xf32, #tpu.memory_space<vmem>>, vector<1x256x32xf32>,
    return
  }
  func.func @transform_0(%arg0: i32) -> (i32, i32, i32) {
    %c0_i32 = arith.constant 0 : i32
    %c0_i32_0 = arith.constant 0 : i32
    %c0_i32_1 = arith.constant 0 : i32
    return %arg0, %c0_i32, %c0_i32_0 : i32, i32, i32
  }
  func.func @transform_1(%arg0: i32) -> (i32, i32) {
    %c0_i32 = arith.constant 0 : i32
    %c0_i32_0 = arith.constant 0 : i32
    %c0_i32_1 = arith.constant 0 : i32
    return %c0_i32, %c0_i32_0 : i32, i32
  }
  func.func @transform_2(%arg0: i32) -> (i32, i32) {
    %c0_i32 = arith.constant 0 : i32
    %c0_i32_0 = arith.constant 0 : i32
    %c0_i32_1 = arith.constant 0 : i32
    return %c0_i32, %c0_i32_0 : i32, i32
  }
  func.func @transform_3(%arg0: i32) -> (i32, i32) {
    %c0_i32 = arith.constant 0 : i32
    %c0_i32_0 = arith.constant 0 : i32
    %c0_i32_1 = arith.constant 0 : i32
    return %c0_i32, %c0_i32_0 : i32, i32
  }
  func.func @transform_4(%arg0: i32) -> (i32, i32) {
    %c0_i32 = arith.constant 0 : i32
    %c0_i32_0 = arith.constant 0 : i32
    %c0_i32_1 = arith.constant 0 : i32
    return %c0_i32, %c0_i32_0 : i32, i32
  }
  func.func @transform_5(%arg0: i32) -> (i32, i32, i32) {
    %c0_i32 = arith.constant 0 : i32
    %c0_i32_0 = arith.constant 0 : i32
    %c0_i32_1 = arith.constant 0 : i32
    %c0_i32_2 = arith.constant 0 : i32
    return %c0_i32, %c0_i32_0, %c0_i32_1 : i32, i32, i32
  }
  func.func @transform_6(%arg0: i32) -> (i32, i32, i32) {
    %c0_i32 = arith.constant 0 : i32
    %c0_i32_0 = arith.constant 0 : i32
    %c0_i32_1 = arith.constant 0 : i32
    %c0_i32_2 = arith.constant 0 : i32
    return %c0_i32, %c0_i32_0, %c0_i32_1 : i32, i32, i32
  }
  func.func @transform_7(%arg0: i32) -> (i32, i32, i32) {
    %c0_i32 = arith.constant 0 : i32
    %c0_i32_0 = arith.constant 0 : i32
    %c0_i32_1 = arith.constant 0 : i32
    return %arg0, %c0_i32, %c0_i32_0 : i32, i32, i32
  }
}

</mosaic_0001>

<bundles_post_ra>
// kernel: tpu_custom_call.1
= control target key start
LH: loop header
LB: loop body
LE: loop exit
PB: predicated region body
PF: predicated region fallthrough
CT: control target
= control target key end

     0   :  { %s3546_s24 = smov 0   ;;  %s5327_s0 = inlined_call_operand.vmem [shape: f32[2,256,32], index: 0, kind: input, shape index: {}]   ;;  %s5328_s1 = inlined_call_operand.vmem [shape: bf16[32,96], index: 1, kind: input, shape index: {}]   ;;  %s5329_s2 = inlined_call_operand.vmem [shape: f32[1,96], index: 2, kind: input, shape index: {}]   ;;  %s5330_s3 = inlined_call_operand.vmem [shape: bf16[32,32], index: 3, kind: input, shape index: {}]   ;;  %s5331_s4 = inlined_call_operand.vmem [shape: f32[1,32], index: 4, kind: input, shape index: {}]   ;;  %s5332_s5 = inlined_call_operand.vmem [shape: f32[2,64,64], index: 5, kind: input, shape index: {}]   ;;  %s5333_s6 = inlined_call_operand.vmem [shape: f32[4,64,64], index: 6, kind: input, shape index: {}]   ;;  %s5334_s7 = inlined_call_operand.vmem [shape: f32[2,256,32], index: 7, kind: output, shape index: {}]  }
   0x1 LB: > { %s3030_s25 = sadd.s32 4294967295, %s3499_s24   ;;  %p3034_p0 = scmp.ge.s32.totalorder %s3499_s24, 1  ;;  %s3499_s24 = sphi %s3546_s24, %s17_s24  }
   0x2   : > { %p237_p1 = scmp.lt.s32.totalorder %s3499_s24, 3 }
   0x4   : > { %p238_p2 = pnand %p3034_p0, %p237_p1 }
   0x6   : > { %241 = sbr.rel (%p238_p2) target bundleno = 2118 (0x846), region = 48 }
   0xb   : > { %v3180_v0 = vld [vmem:[%s5328_s1 + $0x8] sm:$0xff]  ;;  %p269_p3 = scmp.lt.s32.totalorder %s3030_s25, 1  ;;  %v3179_v1 = vld [vmem:[%s5328_s1] sm:$0xff]  ;;  %vm348_vm0 = vcmask 261120   ;;  %s3501_s13 = smov 64   ;;  %vm586_vm1 = vcmask 130048  }
   0xc   : > { %403 = vmatpush.bf16.msra.mxu0 %v3180_v0  ;;  %3183 = vmatpush.bf16.msra.mxu3 %v3180_v0  ;;  %v3620_v51 = vld [vmem:[%s5329_s2] ss:$0 sm:$0xff]  ;;  %s3502_s14 = smov 96   ;;  %s3503_s15 = smov 80   ;;  %vm915_vm2 = vcmask 523264  }
   0xd   : > { %s5431_s25 = smov (!%p269_p3, %s3030_s25), 1  ;;  %s3504_s16 = smov 112  }
   0xe   : > { %s3177_s30 = sshll.u32 %s5431_s25, 8 }
   0xf   : > { %s3568_s10 = scalar_lea.vmem %s5327_s0, %s3177_s30  ;;  %s5183_s21 = scalar_lea.vmem %s5334_s7, %s3177_s30 }
  0x10   : > { %404 = vmatpush.bf16.msra.mxu0 %v3179_v1  ;;  %3184 = vmatpush.bf16.msra.mxu3 %v3179_v1  ;;  %v280_v2 = vld [vmem:[%s3568_s10] sm:$0xff]  ;;  %v281_v3 = vld [vmem:[%s3568_s10 + $0x8] sm:$0xff]  ;;  %v298_v4 = vld [vmem:[%s3568_s10 + $0x90] sm:$0xff] }
  0x11   : > { %v312_v5 = vpack.c.bf16 %v281_v3, %v280_v2  ;;  %v299_v6 = vld [vmem:[%s3568_s10 + $0x98] sm:$0xff]  ;;  %v282_v8 = vld [vmem:[%s3568_s10 + $0x10] sm:$0xff]  ;;  %v300_v10 = vld [vmem:[%s3568_s10 + $0xa0] sm:$0xff] }
  0x12   : > { %v321_v7 = vpack.c.bf16 %v299_v6, %v298_v4  ;;  %v283_v9 = vld [vmem:[%s3568_s10 + $0x18] sm:$0xff]  ;;  %v301_v11 = vld [vmem:[%s3568_s10 + $0xa8] sm:$0xff]  ;;  %v284_v14 = vld [vmem:[%s3568_s10 + $0x20] sm:$0xff] }
  0x13   : > { %3047 = vmatmul.msk.bf16.vlgmr.msra.gmra.mxu0 %vm348_vm0, %v312_v5  ;;  %v313_v12 = vpack.c.bf16 %v283_v9, %v282_v8  ;;  %v322_v13 = vpack.c.bf16 %v301_v11, %v300_v10  ;;  %v285_v15 = vld [vmem:[%s3568_s10 + $0x28] sm:$0xff]  ;;  %v302_v16 = vld [vmem:[%s3568_s10 + $0xb0] sm:$0xff]  ;;  %v303_v17 = vld [vmem:[%s3568_s10 + $0xb8] sm:$0xff] }
  0x14   : > { %3056 = vmatmul.msk.bf16.vlgmr.msra.gmra.mxu3 %vm348_vm0, %v321_v7  ;;  %v314_v18 = vpack.c.bf16 %v285_v15, %v284_v14  ;;  %v323_v19 = vpack.c.bf16 %v303_v17, %v302_v16  ;;  %v286_v20 = vld [vmem:[%s3568_s10 + $0x30] sm:$0xff]  ;;  %v287_v21 = vld [vmem:[%s3568_s10 + $0x38] sm:$0xff]  ;;  %v304_v22 = vld [vmem:[%s3568_s10 + $0xc0] sm:$0xff] }
  0x15   : > { %v305_v23 = vld [vmem:[%s3568_s10 + $0xc8] sm:$0xff]  ;;  %v315_v24 = vpack.c.bf16 %v287_v21, %v286_v20  ;;  %v288_v26 = vld [vmem:[%s3568_s10 + $0x40] sm:$0xff]  ;;  %v306_v28 = vld [vmem:[%s3568_s10 + $0xd0] sm:$0xff] }
  0x16   : > { %v324_v25 = vpack.c.bf16 %v305_v23, %v304_v22  ;;  %v289_v27 = vld [vmem:[%s3568_s10 + $0x48] sm:$0xff]  ;;  %v307_v29 = vld [vmem:[%s3568_s10 + $0xd8] sm:$0xff]  ;;  %v290_v32 = vld [vmem:[%s3568_s10 + $0x50] sm:$0xff] }
  0x17   : > { %v316_v30 = vpack.c.bf16 %v289_v27, %v288_v26  ;;  %v325_v31 = vpack.c.bf16 %v307_v29, %v306_v28  ;;  %v291_v33 = vld [vmem:[%s3568_s10 + $0x58] sm:$0xff]  ;;  %v308_v34 = vld [vmem:[%s3568_s10 + $0xe0] sm:$0xff]  ;;  %v309_v35 = vld [vmem:[%s3568_s10 + $0xe8] sm:$0xff] }
  0x18   : > { %v317_v36 = vpack.c.bf16 %v291_v33, %v290_v32  ;;  %v326_v37 = vpack.c.bf16 %v309_v35, %v308_v34  ;;  %v292_v38 = vld [vmem:[%s3568_s10 + $0x60] sm:$0xff]  ;;  %v293_v39 = vld [vmem:[%s3568_s10 + $0x68] sm:$0xff]  ;;  %v310_v40 = vld [vmem:[%s3568_s10 + $0xf0] sm:$0xff] }
  0x19   : > { %v311_v41 = vld [vmem:[%s3568_s10 + $0xf8] sm:$0xff]  ;;  %v318_v42 = vpack.c.bf16 %v293_v39, %v292_v38  ;;  %v294_v44 = vld [vmem:[%s3568_s10 + $0x70] sm:$0xff]  ;;  %v296_v47 = vld [vmem:[%s3568_s10 + $0x80] sm:$0xff] }
  0x1a   : > { %v327_v43 = vpack.c.bf16 %v311_v41, %v310_v40  ;;  %v295_v45 = vld [vmem:[%s3568_s10 + $0x78] sm:$0xff]  ;;  %v297_v48 = vld [vmem:[%s3568_s10 + $0x88] sm:$0xff] }
  0x1b   : > { %v319_v46 = vpack.c.bf16 %v295_v45, %v294_v44  ;;  %v320_v49 = vpack.c.bf16 %v297_v48, %v296_v47 }
  0x23   : > { %3048 = vmatmul.msk.bf16.gmra.mxu0 %vm348_vm0, %v313_v12 }
  0x24   : > { %3057 = vmatmul.msk.bf16.gmra.mxu3 %vm348_vm0, %v322_v13 }
  0x33   : > { %3049 = vmatmul.msk.bf16.gmra.mxu0 %vm348_vm0, %v314_v18 }
  0x34   : > { %3058 = vmatmul.msk.bf16.gmra.mxu3 %vm348_vm0, %v323_v19 }
  0x43   : > { %3050 = vmatmul.msk.bf16.gmra.mxu0 %vm348_vm0, %v315_v24 }
  0x44   : > { %3059 = vmatmul.msk.bf16.gmra.mxu3 %vm348_vm0, %v324_v25 }
  0x53   : > { %3051 = vmatmul.msk.bf16.gmra.mxu0 %vm348_vm0, %v316_v30 }
  0x54   : > { %3060 = vmatmul.msk.bf16.gmra.mxu3 %vm348_vm0, %v325_v31 }
  0x63   : > { %3052 = vmatmul.msk.bf16.gmra.mxu0 %vm348_vm0, %v317_v36 }
  0x64   : > { %3061 = vmatmul.msk.bf16.gmra.mxu3 %vm348_vm0, %v326_v37 }
  0x73   : > { %3053 = vmatmul.msk.bf16.gmra.mxu0 %vm348_vm0, %v318_v42 }
  0x74   : > { %3062 = vmatmul.msk.bf16.gmra.mxu3 %vm348_vm0, %v327_v43 }
  0x83   : > { %3054 = vmatmul.msk.bf16.gmra.mxu0 %vm348_vm0, %v319_v46 }
  0x90   : > { %v406_v50 = vpop.f32.mrf.mxu0 }
  0x91   : > { %v407_v52 = vadd.f32 %v3620_v51, %v406_v50 }
  0x93   : > { %3055 = vmatmul.msk.bf16.gmra.mxu0 %vm348_vm0, %v320_v49  ;;  %v486_v55 = vpack.c.bf16 %v407_v52, %v407_v52 }
  0x95   : > { %v566_v59 = vunpack.c.l.b16 %v486_v55 }
  0x97   : > { %v451_v53 = vpop.f32.mrf.mxu3 }
  0x98   : > { %v408_v54 = vpop.f32.mrf.mxu0  ;;  %v452_v57 = vadd.f32 %v3620_v51, %v451_v53 }
  0x99   : > { %v409_v56 = vadd.f32 %v3620_v51, %v408_v54 }
  0x9a   : > { %v504_v61 = vpack.c.bf16 %v452_v57, %v452_v57 }
  0x9b   : > { %v487_v58 = vpack.c.bf16 %v409_v56, %v409_v56 }
  0x9c   : > { %v731_v2 = vunpack.c.l.b16 %v504_v61 }
  0x9d   : > { %v567_v60 = vunpack.c.l.b16 %v487_v58 }
  0x9f   : > { %v3626_v62 = vpack.c.b16 %v567_v60, %v566_v59  ;;  %v453_v63 = vpop.f32.mrf.mxu3 }
  0xa0   : > { %v454_v0 = vadd.f32 %v3620_v51, %v453_v63  ;;  %v411_v1 = vpop.f32.mrf.mxu0 }
  0xa1   : > { %5348 = vst [vmem:[#allocation2_spill] sm:$0xff] %v3626_v62  ;;  %1320 = vrot.lane.b32.xlu0 %v3626_v62, %s3501_s13  ;;  %578 = vrot.lane.b32.xlu1 %v3626_v62, %s3502_s14  ;;  %v412_v5 = vadd.f32 %v3620_v51, %v411_v1 }
  0xa2   : > { %v505_v3 = vpack.c.bf16 %v454_v0, %v454_v0 }
  0xa3   : > { %v488_v9 = vpack.c.bf16 %v412_v5, %v412_v5 }
  0xa4   : > { %v732_v4 = vunpack.c.l.b16 %v505_v3 }
  0xa5   : > { %v568_v12 = vunpack.c.l.b16 %v488_v9 }
  0xa6   : > { %v3634_v6 = vpack.c.b16 %v732_v4, %v731_v2 }
  0xa7   : > { %v456_v7 = vpop.f32.mrf.mxu3 }
  0xa8   : > { %1468 = vrot.lane.b32.xlu2 %v3634_v6, %s3501_s13  ;;  %v413_v8 = vpop.f32.mrf.mxu0  ;;  %v457_v33 = vadd.f32 %v3620_v51, %v456_v7 }
  0xa9   : > { %v414_v10 = vadd.f32 %v3620_v51, %v413_v8  ;;  %1627 = vrot.lane.b32.xlu0 %v3626_v62, %s3503_s15  ;;  %743 = vrot.lane.b32.xlu1 %v3634_v6, %s3502_s14 }
  0xaa   : > { %v506_v38 = vpack.c.bf16 %v457_v33, %v457_v33 }
  0xab   : > { %v489_v11 = vpack.c.bf16 %v414_v10, %v414_v10 }
  0xac   : > { %v733_v44 = vunpack.c.l.b16 %v506_v38 }
  0xad   : > { %v569_v13 = vunpack.c.l.b16 %v489_v11 }
  0xaf   : > { %v3643_v14 = vpack.c.b16 %v569_v13, %v568_v12  ;;  %v458_v15 = vpop.f32.mrf.mxu3 }
  0xb0   : > { %v416_v16 = vpop.f32.mrf.mxu0  ;;  %v459_v34 = vadd.f32 %v3620_v51, %v458_v15 }
  0xb1   : > { %5349 = vst [vmem:[#allocation3_spill] sm:$0xff] %v3643_v14  ;;  %1322 = vrot.lane.b32.xlu2 %v3643_v14, %s3501_s13  ;;  %1619 = vrot.lane.b32.xlu0 %v3626_v62, %s3504_s16  ;;  %v417_v17 = vadd.f32 %v3620_v51, %v416_v16 }
  0xb2   : > { %v507_v39 = vpack.c.bf16 %v459_v34, %v459_v34 }
  0xb3   : > { %v490_v20 = vpack.c.bf16 %v417_v17, %v417_v17 }
  0xb4   : > { %v734_v45 = vunpack.c.l.b16 %v507_v39 }
  0xb5   : > { %v570_v24 = vunpack.c.l.b16 %v490_v20 }
  0xb6   : > { %v3675_v49 = vpack.c.b16 %v734_v45, %v733_v44 }
  0xb7   : > { %v461_v18 = vpop.f32.mrf.mxu3 }
  0xb8   : > { %v418_v19 = vpop.f32.mrf.mxu0  ;;  %v462_v22 = vadd.f32 %v3620_v51, %v461_v18 }
  0xb9   : > { %v419_v21 = vadd.f32 %v3620_v51, %v418_v19  ;;  %580 = vrot.lane.b32.xlu0 %v3643_v14, %s3502_s14 }
  0xba   : > { %v508_v26 = vpack.c.bf16 %v462_v22, %v462_v22 }
  0xbb   : > { %v491_v23 = vpack.c.bf16 %v419_v21, %v419_v21 }
  0xbc   : > { %v735_v31 = vunpack.c.l.b16 %v508_v26 }
  0xbd   : > { %v571_v25 = vunpack.c.l.b16 %v491_v23 }
  0xbf   : > { %v3654_v27 = vpack.c.b16 %v571_v25, %v570_v24  ;;  %v463_v28 = vpop.f32.mrf.mxu3 }
  0xc0   : > { %v464_v29 = vadd.f32 %v3620_v51, %v463_v28  ;;  %v421_v30 = vpop.f32.mrf.mxu0 }
  0xc1   : > { %5350 = vst [vmem:[#allocation4_spill] sm:$0xff] %v3654_v27  ;;  %582 = vrot.lane.b32.xlu2 %v3654_v27, %s3502_s14  ;;  %1629 = vrot.lane.b32.xlu0 %v3643_v14, %s3503_s15  ;;  %v422_v36 = vadd.f32 %v3620_v51, %v421_v30 }
  0xc2   : > { %v509_v32 = vpack.c.bf16 %v464_v29, %v464_v29  ;;  %1631 = vrot.lane.b32.xlu1 %v3654_v27, %s3503_s15 }
  0xc3   : > { %v492_v42 = vpack.c.bf16 %v422_v36, %v422_v36 }
  0xc4   : > { %v736_v35 = vunpack.c.l.b16 %v509_v32 }
  0xc5   : > { %v572_v47 = vunpack.c.l.b16 %v492_v42 }
  0xc6   : > { %v3666_v37 = vpack.c.b16 %v736_v35, %v735_v31 }
  0xc7   : > { %v466_v40 = vpop.f32.mrf.mxu3 }
  0xc8   : > { %v423_v41 = vpop.f32.mrf.mxu0  ;;  %v467_v60 = vadd.f32 %v3620_v51, %v466_v40 }
  0xc9   : > { %v424_v43 = vadd.f32 %v3620_v51, %v423_v41  ;;  %747 = vrot.lane.b32.xlu2 %v3666_v37, %s3502_s14  ;;  %1621 = vrot.lane.b32.xlu0 %v3643_v14, %s3504_s16 }
  0xca   : > { %1324 = vrot.lane.b32.xlu1 %v3654_v27, %s3501_s13  ;;  %v510_v3 = vpack.c.bf16 %v467_v60, %v467_v60 }
  0xcb   : > { %v493_v46 = vpack.c.bf16 %v424_v43, %v424_v43 }
  0xcc   : > { %v810_v12 = vunpack.c.l.b16 %v510_v3 }
  0xcd   : > { %v573_v48 = vunpack.c.l.b16 %v493_v46 }
  0xcf   : > { %v3677_v50 = vpack.c.b16 %v573_v48, %v572_v47  ;;  %v468_v52 = vpop.f32.mrf.mxu3 }
  0xd0   : > { %v426_v53 = vpop.f32.mrf.mxu0  ;;  %v469_v63 = vadd.f32 %v3620_v51, %v468_v52 }
  0xd1   : > { %5351 = vst [vmem:[#allocation5_spill] sm:$0xff] %v3677_v50  ;;  %584 = vrot.lane.b32.xlu2 %v3677_v50, %s3502_s14  ;;  %745 = vrot.lane.b32.xlu0 %v3675_v49, %s3502_s14  ;;  %v427_v54 = vadd.f32 %v3620_v51, %v426_v53 }
  0xd2   : > { %1623 = vrot.lane.b32.xlu1 %v3654_v27, %s3504_s16  ;;  %v511_v5 = vpack.c.bf16 %v469_v63, %v469_v63 }
  0xd3   : > { %v494_v57 = vpack.c.bf16 %v427_v54, %v427_v54 }
  0xd4   : > { %v811_v13 = vunpack.c.l.b16 %v511_v5 }
  0xd5   : > { %v648_v0 = vunpack.c.l.b16 %v494_v57 }
  0xd6   : > { %v3708_v18 = vpack.c.b16 %v811_v13, %v810_v12 }
  0xd7   : > { %v471_v55 = vpop.f32.mrf.mxu3 }
  0xd8   : > { %v428_v56 = vpop.f32.mrf.mxu0  ;;  %v472_v59 = vadd.f32 %v3620_v51, %v471_v55 }
  0xd9   : > { %v429_v58 = vadd.f32 %v3620_v51, %v428_v56  ;;  %1633 = vrot.lane.b32.xlu2 %v3677_v50, %s3503_s15  ;;  %1470 = vrot.lane.b32.xlu0 %v3675_v49, %s3501_s13 }
  0xda   : > { %1472 = vrot.lane.b32.xlu1 %v3666_v37, %s3501_s13  ;;  %v512_v2 = vpack.c.bf16 %v472_v59, %v472_v59 }
  0xdb   : > { %v495_v61 = vpack.c.bf16 %v429_v58, %v429_v58 }
  0xdc   : > { %v812_v10 = vunpack.c.l.b16 %v512_v2 }
  0xdd   : > { %v649_v1 = vunpack.c.l.b16 %v495_v61 }
  0xdf   : > { %v3696_v4 = vpack.c.b16 %v649_v1, %v648_v0  ;;  %v473_v7 = vpop.f32.mrf.mxu3 }
  0xe0   : > { %v431_v8 = vpop.f32.mrf.mxu0  ;;  %v474_v9 = vadd.f32 %v3620_v51, %v473_v7 }
  0xe1   : > { %5352 = vst [vmem:[#allocation6_spill] sm:$0xff] %v3696_v4  ;;  %1625 = vrot.lane.b32.xlu2 %v3677_v50, %s3504_s16  ;;  %1326 = vrot.lane.b32.xlu0 %v3677_v50, %s3501_s13  ;;  %v432_v16 = vadd.f32 %v3620_v51, %v431_v8 }
  0xe2   : > { %v513_v11 = vpack.c.bf16 %v474_v9, %v474_v9  ;;  %660 = vrot.lane.b32.xlu1 %v3696_v4, %s3502_s14 }
  0xe3   : > { %v496_v21 = vpack.c.bf16 %v432_v16, %v432_v16 }
  0xe4   : > { %v813_v15 = vunpack.c.l.b16 %v513_v11 }
  0xe5   : > { %v650_v25 = vunpack.c.l.b16 %v496_v21 }
  0xe6   : > { %v3706_v17 = vpack.c.b16 %v813_v15, %v812_v10 }
  0xe7   : > { %v476_v19 = vpop.f32.mrf.mxu3 }
  0xe8   : > { %5353 = vst [vmem:[#allocation7_spill] sm:$0xff] %v3706_v17  ;;  %v433_v20 = vpop.f32.mrf.mxu0  ;;  %v477_v23 = vadd.f32 %v3620_v51, %v476_v19 }
  0xe9   : > { %v434_v22 = vadd.f32 %v3620_v51, %v433_v20  ;;  %822 = vrot.lane.b32.xlu0 %v3708_v18, %s3502_s14  ;;  %824 = vrot.lane.b32.xlu2 %v3706_v17, %s3502_s14 }
  0xea   : > { %1393 = vrot.lane.b32.xlu1 %v3696_v4, %s3501_s13  ;;  %v514_v28 = vpack.c.bf16 %v477_v23, %v477_v23 }
  0xeb   : > { %v497_v24 = vpack.c.bf16 %v434_v22, %v434_v22 }
  0xec   : > { %v814_v33 = vunpack.c.l.b16 %v514_v28 }
  0xed   : > { %v651_v26 = vunpack.c.l.b16 %v497_v24 }
  0xef   : > { %v3718_v29 = vpack.c.b16 %v651_v26, %v650_v25  ;;  %v478_v30 = vpop.f32.mrf.mxu3 }
  0xf0   : > { %v436_v31 = vpop.f32.mrf.mxu0  ;;  %v479_v32 = vadd.f32 %v3620_v51, %v478_v30 }
  0xf1   : > { %1395 = vrot.lane.b32.xlu0 %v3718_v29, %s3501_s13  ;;  %v437_v36 = vadd.f32 %v3620_v51, %v436_v31 }
  0xf2   : > { %v515_v34 = vpack.c.bf16 %v479_v32, %v479_v32  ;;  %1541 = vrot.lane.b32.xlu1 %v3706_v17, %s3501_s13 }
  0xf3   : > { %v498_v41 = vpack.c.bf16 %v437_v36, %v437_v36 }
  0xf4   : > { %v815_v35 = vunpack.c.l.b16 %v515_v34 }
  0xf5   : > { %v652_v45 = vunpack.c.l.b16 %v498_v41 }
  0xf6   : > { %v3726_v38 = vpack.c.b16 %v815_v35, %v814_v33 }
  0xf7   : > { %v481_v39 = vpop.f32.mrf.mxu3 }
  0xf8   : > { %v438_v40 = vpop.f32.mrf.mxu0  ;;  %1543 = vrot.lane.b32.xlu2 %v3726_v38, %s3501_s13  ;;  %v482_v43 = vadd.f32 %v3620_v51, %v481_v39 }
  0xf9   : > { %v439_v42 = vadd.f32 %v3620_v51, %v438_v40 }
  0xfa   : > { %662 = vrot.lane.b32.xlu1 %v3718_v29, %s3502_s14  ;;  %v516_v47 = vpack.c.bf16 %v482_v43, %v482_v43 }
  0xfb   : > { %v499_v44 = vpack.c.bf16 %v439_v42, %v439_v42 }
  0xfc   : > { %v816_v55 = vunpack.c.l.b16 %v516_v47 }
  0xfd   : > { %v653_v46 = vunpack.c.l.b16 %v499_v44 }
  0xff   : > { %v3734_v48 = vpack.c.b16 %v653_v46, %v652_v45  ;;  %v483_v52 = vpop.f32.mrf.mxu3 }
 0x100   : > { %v441_v53 = vpop.f32.mrf.mxu0  ;;  %v484_v54 = vadd.f32 %v3620_v51, %v483_v52 }
 0x101   : > { %664 = vrot.lane.b32.xlu0 %v3734_v48, %s3502_s14  ;;  %1397 = vrot.lane.b32.xlu2 %v3734_v48, %s3501_s13  ;;  %v442_v57 = vadd.f32 %v3620_v51, %v441_v53 }
 0x102   : > { %v517_v56 = vpack.c.bf16 %v484_v54, %v484_v54  ;;  %826 = vrot.lane.b32.xlu1 %v3726_v38, %s3502_s14  ;;  %v3746_v63 = vpop.permute.xlu2 %1468 }
 0x103   : > { %v500_v60 = vpack.c.bf16 %v442_v57, %v442_v57 }
 0x104   : > { %v817_v58 = vunpack.c.l.b16 %v517_v56 }
 0x105   : > { %v654_v1 = vunpack.c.l.b16 %v500_v60 }
 0x106   : > { %v3744_v59 = vpack.c.b16 %v817_v58, %v816_v55 }
 0x108   : > { %5354 = vst [vmem:[#allocation8_spill] sm:$0xff] %v3744_v59  ;;  %v443_v61 = vpop.f32.mrf.mxu0 }
 0x109   : > { %v444_v0 = vadd.f32 %v3620_v51, %v443_v61  ;;  %1700 = vrot.lane.b32.xlu0 %v3734_v48, %s3503_s15  ;;  %1545 = vrot.lane.b32.xlu2 %v3744_v59, %s3501_s13 }
 0x10b   : > { %v501_v2 = vpack.c.bf16 %v444_v0, %v444_v0  ;;  %v3761_v8 = vpop.permute.xlu2 %1322 }
 0x10d   : > { %v655_v3 = vunpack.c.l.b16 %v501_v2 }
 0x10f   : > { %v3753_v5 = vpack.c.b16 %v655_v3, %v654_v1 }
 0x110   : > { %v446_v7 = vpop.f32.mrf.mxu0 }
 0x111   : > { %5355 = vst [vmem:[#allocation9_spill] sm:$0xff] %v3753_v5  ;;  %828 = vrot.lane.b32.xlu0 %v3744_v59, %s3502_s14  ;;  %1399 = vrot.lane.b32.xlu1 %v3753_v5, %s3501_s13  ;;  %v447_v9 = vadd.f32 %v3620_v51, %v446_v7 }
 0x112   : > { %1702 = vrot.lane.b32.xlu2 %v3753_v5, %s3503_s15 }
 0x113   : > { %v3764_v10 = vpop.permute.xlu0 %1320  ;;  %v502_v11 = vpack.c.bf16 %v447_v9, %v447_v9  ;;  %v579_v23 = vpop.permute.xlu1 %578 }
 0x114   : > { %v600_v43 = vsel %vm586_vm1, %v579_v23, 0 }
 0x115   : > { %v729_v15 = vunpack.c.l.b16 %v502_v11 }
 0x118   : > { %v448_v12 = vpop.f32.mrf.mxu0 }
 0x119   : > { %v449_v13 = vadd.f32 %v3620_v51, %v448_v12  ;;  %666 = vrot.lane.b32.xlu0 %v3753_v5, %s3502_s14 }
 0x11b   : > { %v503_v16 = vpack.c.bf16 %v449_v13, %v449_v13  ;;  %v583_v19 = vpop.permute.xlu2 %582  ;;  %v3769_v20 = vpop.permute.xlu0 %1627 }
 0x11c   : > { %v744_v28 = vpop.permute.xlu1 %743  ;;  %v606_v33 = vsel %vm586_vm1, %v583_v19, 0 }
 0x11d   : > { %v730_v21 = vunpack.c.l.b16 %v503_v16  ;;  %v765_v54 = vsel %vm586_vm1, %v744_v28, 0 }
 0x11f   : > { %v3771_v22 = vpack.c.b16 %v730_v21, %v729_v15 }
 0x121   : > { %741 = vrot.lane.b32.xlu2 %v3771_v22, %s3502_s14  ;;  %1466 = vrot.lane.b32.xlu0 %v3771_v22, %s3501_s13 }
 0x123   : > { %v748_v24 = vpop.permute.xlu2 %747  ;;  %v3777_v51 = vpop.permute.xlu0 %1619 }
 0x124   : > { %5356 = vst [vmem:[#allocation10_spill] sm:$0xff] %v3777_v51  ;;  %v771_v44 = vsel %vm586_vm1, %v748_v24, 0 }
 0x12b   : > { %v585_v25 = vpop.permute.xlu2 %584  ;;  %v581_v26 = vpop.permute.xlu0 %580 }
 0x12c   : > { %v609_v30 = vsel %vm586_vm1, %v585_v25, 0  ;;  %v603_v39 = vsel %vm586_vm1, %v581_v26, 0 }
 0x12d   : > { %615 = vmatpush.bf16.xpose.msra.mxu1 %v609_v30  ;;  %3185 = vmatpush.bf16.xpose.msrb.mxu3 %v609_v30 }
 0x133   : > { %v3780_v31 = vpop.permute.xlu0 %1629  ;;  %v1634_v34 = vpop.permute.xlu2 %1633 }
 0x134   : > { %v3782_v32 = vpop.permute.xlu1 %1631  ;;  %v1657_v25 = vsel %vm586_vm1, %v1634_v34, 0 }
 0x135   : > { %616 = vmatpush.bf16.xpose.msra.mxu1 %v606_v33  ;;  %3186 = vmatpush.bf16.xpose.msrb.mxu3 %v606_v33  ;;  %v1654_v30 = vsel %vm586_vm1, %v3782_v32, 0 }
 0x13b   : > { %v3785_v35 = vpop.permute.xlu0 %1621  ;;  %v3790_v40 = vpop.permute.xlu2 %1625 }
 0x13c   : > { %5357 = vst [vmem:[#allocation11_spill] sm:$0xff] %v3785_v35  ;;  %v3787_v36 = vpop.permute.xlu1 %1324 }
 0x13d   : > { %617 = vmatpush.bf16.xpose.msra.mxu1 %v603_v39  ;;  %3187 = vmatpush.bf16.xpose.msrb.mxu3 %v603_v39  ;;  %5358 = vst [vmem:[#allocation12_spill] sm:$0xff] %v3790_v40  ;;  %v1651_v39 = vsel %vm586_vm1, %v3780_v31, 0 }
 0x143   : > { %v746_v41 = vpop.permute.xlu0 %745  ;;  %v825_v52 = vpop.permute.xlu2 %824 }
 0x144   : > { %v3792_v42 = vpop.permute.xlu1 %1623  ;;  %v768_v47 = vsel %vm586_vm1, %v746_v41, 0  ;;  %v846_v28 = vsel %vm586_vm1, %v825_v52, 0  ;;  %v522_v52 = vld [vmem:[%s5333_s6 + $0x20] sm:$0xff] }
 0x145   : > { %5359 = vst [vmem:[#allocation13_spill] sm:$0xff] %v3792_v42  ;;  %618 = vmatpush.bf16.xpose.msra.mxu1 %v600_v43  ;;  %3188 = vmatpush.bf16.xpose.msrb.mxu3 %v600_v43  ;;  %v1648_v43 = vsel %vm586_vm1, %v3769_v20, 0  ;;  %v518_v20 = vld [vmem:[%s5333_s6] sm:$0xff] }
 0x14b   : > { %v1471_v46 = vpop.permute.xlu0 %1470 }
 0x14c   : > { %v1473_v45 = vpop.permute.xlu1 %1472  ;;  %3063 = vmatmul.msk.bf16.vlgmr.msra.gmra.mxu1 %vm586_vm1, %v3626_v62  ;;  %3065 = vmatmul.msk.bf16.vlgmr.msrb.gmra.mxu3 %vm586_vm1, %v3654_v27 }
 0x14d   : > { %777 = vmatpush.bf16.xpose.msra.mxu3 %v771_v44 }
 0x152   : > { %v3802_v55 = vpop.permute.xlu2 %1543 }
 0x153   : > { %v1327_v56 = vpop.permute.xlu0 %1326 }
 0x154   : > { %v661_v53 = vpop.permute.xlu1 %660 }
 0x155   : > { %778 = vmatpush.bf16.xpose.msra.mxu3 %v768_v47  ;;  %v681_v41 = vsel %vm586_vm1, %v661_v53, 0 }
 0x15b   : > { %v1398_v58 = vpop.permute.xlu2 %1397  ;;  %v823_v60 = vpop.permute.xlu0 %822 }
 0x15c   : > { %3064 = vmatmul.msk.bf16.gmra.mxu1 %vm586_vm1, %v3643_v14  ;;  %3066 = vmatmul.msk.bf16.gmra.mxu3 %vm586_vm1, %v3677_v50  ;;  %v1394_v57 = vpop.permute.xlu1 %1393  ;;  %v843_v34 = vsel %vm586_vm1, %v823_v60, 0 }
 0x15d   : > { %779 = vmatpush.bf16.xpose.msra.mxu3 %v765_v54 }
 0x163   : > { %v1546_v0 = vpop.permute.xlu2 %1545  ;;  %v1396_v1 = vpop.permute.xlu0 %1395 }
 0x164   : > { %v3808_v61 = vpop.permute.xlu1 %1541 }
 0x16c   : > { %v663_v2 = vpop.permute.xlu1 %662  ;;  %v1703_v3 = vpop.permute.xlu2 %1702 }
 0x16d   : > { %v684_v33 = vsel %vm586_vm1, %v663_v2, 0  ;;  %v1726_v31 = vsel %vm586_vm1, %v1703_v3, 0  ;;  %v519_v2 = vld [vmem:[%s5333_s6 + $0x8] sm:$0xff] }
 0x173   : > { %v665_v7 = vpop.permute.xlu0 %664 }
 0x174   : > { %v827_v9 = vpop.permute.xlu1 %826  ;;  %v687_v26 = vsel %vm586_vm1, %v665_v7, 0 }
 0x175   : > { %v849_v24 = vsel %vm586_vm1, %v827_v9, 0  ;;  %v520_v9 = vld [vmem:[%s5333_s6 + $0x10] sm:$0xff] }
 0x17b   : > { %v742_v11 = vpop.permute.xlu2 %741  ;;  %v1701_v12 = vpop.permute.xlu0 %1700 }
 0x17c   : > { %v762_v13 = vsel %vm586_vm1, %v742_v11, 0 }
 0x17d   : > { %780 = vmatpush.bf16.xpose.msra.mxu3 %v762_v13 }
 0x183   : > { %v829_v15 = vpop.permute.xlu0 %828  ;;  %v1400_v16 = vpop.permute.xlu1 %1399 }
 0x184   : > { %3071 = vmatmul.msk.bf16.vlgmr.msra.gmra.mxu3 %vm586_vm1, %v3771_v22  ;;  %v852_v19 = vsel %vm586_vm1, %v829_v15, 0 }
 0x185   : > { %1421 = vmatpush.bf16.msrb.mxu3 %v1400_v16  ;;  %858 = vmatpush.bf16.xpose.msrb.mxu1 %v852_v19  ;;  %v3922_v19 = vld [vmem:[%s5332_s5 + $0x30] sm:$0xff] }
 0x189   : > { %1422 = vmatpush.bf16.msrb.mxu3 %v1398_v58 }
 0x18b   : > { %v667_v21 = vpop.permute.xlu0 %666 }
 0x18c   : > { %v690_v23 = vsel %vm586_vm1, %v667_v21, 0 }
 0x18d   : > { %1423 = vmatpush.bf16.msrb.mxu3 %v1396_v1  ;;  %696 = vmatpush.bf16.xpose.msra.mxu2 %v690_v23  ;;  %v523_v1 = vld [vmem:[%s5333_s6 + $0x28] sm:$0xff] }
 0x18e   : > { %859 = vmatpush.bf16.xpose.msrb.mxu1 %v849_v24 }
 0x191   : > { %1424 = vmatpush.bf16.msrb.mxu3 %v1394_v57  ;;  %v3888_v57 = vld [vmem:[%s5332_s5 + $0x28] sm:$0xff] }
 0x193   : > { %v1467_v32 = vpop.permute.xlu0 %1466 }
 0x194   : > { %3072 = vmatmul.msk.bf16.gmra.mxu3 %vm586_vm1, %v3634_v6 }
 0x195   : > { %1663 = vmatpush.bf16.xpose.msra.mxu3 %v1657_v25  ;;  %697 = vmatpush.bf16.xpose.msra.mxu2 %v687_v26  ;;  %v3931_v25 = vld [vmem:[%s5332_s5 + $0x18] sm:$0xff]  ;;  %v524_v26 = vld [vmem:[%s5333_s6 + $0x30] sm:$0xff] }
 0x196   : > { %860 = vmatpush.bf16.xpose.msrb.mxu1 %v846_v28 }
 0x19d   : > { %1664 = vmatpush.bf16.xpose.msra.mxu3 %v1654_v30  ;;  %698 = vmatpush.bf16.xpose.msra.mxu2 %v684_v33  ;;  %v521_v33 = vld [vmem:[%s5333_s6 + $0x18] sm:$0xff] }
 0x19e   : > { %861 = vmatpush.bf16.xpose.msrb.mxu1 %v843_v34 }
 0x1a4   : > { %3073 = vmatmul.msk.bf16.gmra.mxu3 %vm586_vm1, %v3675_v49 }
 0x1a5   : > { %1665 = vmatpush.bf16.xpose.msra.mxu3 %v1651_v39  ;;  %3075 = vmatmul.msk.bf16.vlgmr.msrb.gmra.mxu1 %vm586_vm1, %v3708_v18 }
 0x1a6   : > { %1494 = vmatpush.bf16.msra.mxu1 %v1473_v45  ;;  %699 = vmatpush.bf16.xpose.msra.mxu2 %v681_v41  ;;  %v3868_v45 = vld [vmem:[%s5332_s5 + $0x20] sm:$0xff] }
 0x1aa   : > { %1495 = vmatpush.bf16.msra.mxu1 %v1471_v46 }
 0x1ad   : > { %1666 = vmatpush.bf16.xpose.msra.mxu3 %v1648_v43  ;;  %3067 = vmatmul.msk.bf16.vlgmr.msra.gmra.mxu2 %vm586_vm1, %v3696_v4 }
 0x1ae   : > { %1348 = vmatpush.bf16.msrb.mxu2 %v1327_v56  ;;  %1496 = vmatpush.bf16.msra.mxu1 %v3746_v63  ;;  %v1723_v63 = vsel %vm586_vm1, %v1701_v12, 0  ;;  %v3881_v56 = vld [vmem:[%s5332_s5 + $0x8] sm:$0xff] }
 0x1b2   : > { %1349 = vmatpush.bf16.msrb.mxu2 %v3787_v36  ;;  %1497 = vmatpush.bf16.msra.mxu1 %v1467_v32  ;;  %v3948_v32 = vld [vmem:[%s5332_s5 + $0x38] sm:$0xff] }
 0x1b4   : > { %3074 = vmatmul.msk.bf16.gmra.mxu3 %vm586_vm1, %v3666_v37 }
 0x1b5   : > { %3076 = vmatmul.msk.bf16.gmra.mxu1 %vm586_vm1, %v3706_v17 }
 0x1b6   : > { %1732 = vmatpush.bf16.xpose.msrb.mxu1 %v1726_v31  ;;  %1350 = vmatpush.bf16.msrb.mxu2 %v3761_v8  ;;  %v3855_v8 = vld [vmem:[%s5332_s5] sm:$0xff] }
 0x1ba   : > { %1351 = vmatpush.bf16.msrb.mxu2 %v3764_v10 }
 0x1bd   : > { %3068 = vmatmul.msk.bf16.gmra.mxu2 %vm586_vm1, %v3718_v29 }
 0x1be   : > { %1567 = vmatpush.bf16.msra.mxu2 %v1546_v0  ;;  %1733 = vmatpush.bf16.xpose.msrb.mxu1 %v1723_v63  ;;  %v3896_v0 = vld [vmem:[%s5332_s5 + $0x10] sm:$0xff] }
 0x1c2   : > { %1568 = vmatpush.bf16.msra.mxu2 %v3802_v55 }
 0x1c5   : > { %3077 = vmatmul.msk.bf16.gmra.mxu1 %vm586_vm1, %v3726_v38 }
 0x1c6   : > { %1569 = vmatpush.bf16.msra.mxu2 %v3808_v61 }
 0x1c9   : > { %v620_v10 = vpop.f32.mrf.mxu1 }
 0x1ca   : > { %v621_v36 = vadd.f32 %v620_v10, %v3855_v8  ;;  %v525_v10 = vld [vmem:[%s5333_s6 + $0x38] sm:$0xff] }
 0x1cc   : > { %v3863_v44 = vadd.f32 %v621_v36, %v518_v20 }
 0x1cd   : > { %3069 = vmatmul.msk.bf16.gmra.mxu2 %vm586_vm1, %v3734_v48 }
 0x1ce   : > { %v916_v46 = vsel %vm915_vm2, %v3863_v44, -inf }
 0x1cf   : > { %v630_v47 = vpop.f32.mrf.mxu3  ;;  %917 = vmax.xlane.f32.xlu0 %v916_v46 }
 0x1d0   : > { %v631_v53 = vadd.f32 %v630_v47, %v3868_v45 }
 0x1d1   : > { %v622_v54 = vpop.f32.mrf.mxu1 }
 0x1d2   : > { %v3876_v55 = vadd.f32 %v631_v53, %v522_v52  ;;  %v623_v58 = vadd.f32 %v622_v54, %v3881_v56  ;;  %v534_v52 = vld [vmem:[%s5333_s6 + $0x80] sm:$0xff] }
 0x1d4   : > { %v928_v60 = vsel %vm915_vm2, %v3876_v55, -inf  ;;  %v3911_v13 = vadd.f32 %v623_v58, %v519_v2 }
 0x1d5   : > { %3078 = vmatmul.msk.bf16.gmra.mxu1 %vm586_vm1, %v3744_v59 }
 0x1d6   : > { %v919_v23 = vsel %vm915_vm2, %v3911_v13, -inf }
 0x1d7   : > { %v632_v61 = vpop.f32.mrf.mxu3  ;;  %929 = vmax.xlane.f32.xlu0 %v928_v60 }
 0x1d8   : > { %v633_v3 = vadd.f32 %v632_v61, %v3888_v57 }
 0x1d9   : > { %v625_v7 = vpop.f32.mrf.mxu1 }
 0x1da   : > { %v626_v11 = vadd.f32 %v625_v7, %v3896_v0  ;;  %v3909_v12 = vadd.f32 %v633_v3, %v523_v1  ;;  %v542_v1 = vld [vmem:[%s5333_s6 + $0xc0] sm:$0xff] }
 0x1dc   : > { %v931_v15 = vsel %vm915_vm2, %v3909_v12, -inf  ;;  %v3917_v16 = vadd.f32 %v626_v11, %v520_v9 }
 0x1dd   : > { %3070 = vmatmul.msk.bf16.gmra.mxu2 %vm586_vm1, %v3753_v5  ;;  %932 = vmax.xlane.f32.xlu2 %v931_v15  ;;  %v535_v15 = vld [vmem:[%s5333_s6 + $0x88] sm:$0xff] }
 0x1de   : > { %v922_v21 = vsel %vm915_vm2, %v3917_v16, -inf }
 0x1df   : > { %v635_v24 = vpop.f32.mrf.mxu3  ;;  %923 = vmax.xlane.f32.xlu1 %v922_v21  ;;  %920 = vmax.xlane.f32.xlu0 %v919_v23  ;;  %v543_v23 = vld [vmem:[%s5333_s6 + $0xc8] sm:$0xff] }
 0x1e0   : > { %v636_v28 = vadd.f32 %v635_v24, %v3922_v19 }
 0x1e1   : > { %v627_v30 = vpop.f32.mrf.mxu1 }
 0x1e2   : > { %v628_v34 = vadd.f32 %v627_v30, %v3931_v25  ;;  %v3941_v39 = vadd.f32 %v636_v28, %v524_v26 }
 0x1e4   : > { %v3943_v41 = vadd.f32 %v628_v34, %v521_v33  ;;  %v934_v31 = vsel %vm915_vm2, %v3941_v39, -inf }
 0x1e6   : > { %v925_v43 = vsel %vm915_vm2, %v3943_v41, -inf }
 0x1e7   : > { %v637_v63 = vpop.f32.mrf.mxu3  ;;  %926 = vmax.xlane.f32.xlu2 %v925_v43  ;;  %935 = vmax.xlane.f32.xlu1 %v934_v31 }
 0x1e8   : > { %v638_v20 = vadd.f32 %v637_v63, %v3948_v32  ;;  %v526_v63 = vld [vmem:[%s5333_s6 + $0x40] sm:$0xff] }
 0x1ea   : > { %v3958_v36 = vadd.f32 %v638_v20, %v525_v10  ;;  %v544_v20 = vld [vmem:[%s5333_s6 + $0xd0] sm:$0xff] }
 0x1ec   : > { %v937_v46 = vsel %vm915_vm2, %v3958_v36, -inf }
 0x1ed   : > { %938 = vmax.xlane.f32.xlu0 %v937_v46 }
 0x207   : > { %v782_v47 = vpop.f32.mrf.mxu3 }
 0x208   : > { %v783_v53 = vadd.f32 %v782_v47, %v3855_v8 }
 0x20a   : > { %v3966_v54 = vadd.f32 %v783_v53, %v534_v52 }
 0x20c   : > { %v964_v58 = vsel %vm915_vm2, %v3966_v54, -inf }
 0x20d   : > { %965 = vmax.xlane.f32.xlu0 %v964_v58 }
 0x20f   : > { %v784_v60 = vpop.f32.mrf.mxu3 }
 0x210   : > { %v785_v9 = vadd.f32 %v784_v60, %v3881_v56 }
 0x212   : > { %v3986_v26 = vadd.f32 %v785_v9, %v535_v15  ;;  %v537_v9 = vld [vmem:[%s5333_s6 + $0x98] sm:$0xff] }
 0x214   : > { %v967_v43 = vsel %vm915_vm2, %v3986_v26, -inf }
 0x217   : > { %v787_v2 = vpop.f32.mrf.mxu3 }
 0x21f   : > { %v789_v28 = vpop.f32.mrf.mxu3 }
 0x220   : > { %v790_v53 = vadd.f32 %v789_v28, %v3931_v25 }
 0x222   : > { %v863_v61 = vpop.f32.mrf.mxu1 }
 0x223   : > { %v864_v3 = vadd.f32 %v863_v61, %v3855_v8 }
 0x225   : > { %v3974_v7 = vadd.f32 %v864_v3, %v542_v1  ;;  %v527_v1 = vld [vmem:[%s5333_s6 + $0x48] sm:$0xff] }
 0x227   : > { %v988_v11 = vsel %vm915_vm2, %v3974_v7, -inf }
 0x228   : > { %989 = vmax.xlane.f32.xlu2 %v988_v11 }
 0x22a   : > { %v865_v21 = vpop.f32.mrf.mxu1 }
 0x22b   : > { %v866_v24 = vadd.f32 %v865_v21, %v3881_v56  ;;  %v4020_v21 = vadd.f32 %v790_v53, %v537_v9 }
 0x22d   : > { %v3988_v30 = vadd.f32 %v866_v24, %v543_v23  ;;  %v788_v23 = vadd.f32 %v787_v2, %v3896_v0 }
 0x22f   : > { %v991_v34 = vsel %vm915_vm2, %v3988_v30, -inf }
 0x230   : > { %v701_v33 = vpop.f32.mrf.mxu2  ;;  %992 = vmax.xlane.f32.xlu1 %v991_v34  ;;  %968 = vmax.xlane.f32.xlu2 %v967_v43  ;;  %v973_v34 = vsel %vm915_vm2, %v4020_v21, -inf  ;;  %v528_v43 = vld [vmem:[%s5333_s6 + $0x50] sm:$0xff] }
 0x231   : > { %v702_v31 = vadd.f32 %v701_v33, %v3855_v8  ;;  %v792_v8 = vpop.f32.mrf.mxu3 }
 0x232   : > { %v868_v10 = vpop.f32.mrf.mxu1  ;;  %v793_v28 = vadd.f32 %v792_v8, %v3868_v45 }
 0x233   : > { %v869_v46 = vadd.f32 %v868_v10, %v3896_v0  ;;  %v4002_v47 = vadd.f32 %v702_v31, %v526_v63  ;;  %v538_v63 = vld [vmem:[%s5333_s6 + $0xa0] sm:$0xff] }
 0x234   : > { %v4042_v53 = vadd.f32 %v793_v28, %v538_v63 }
 0x235   : > { %v4004_v52 = vadd.f32 %v869_v46, %v544_v20  ;;  %v940_v61 = vsel %vm915_vm2, %v4002_v47, -inf }
 0x236   : > { %v976_v9 = vsel %vm915_vm2, %v4042_v53, -inf }
 0x237   : > { %v994_v60 = vsel %vm915_vm2, %v4004_v52, -inf }
 0x238   : > { %v703_v58 = vpop.f32.mrf.mxu2  ;;  %995 = vmax.xlane.f32.xlu0 %v994_v60  ;;  %941 = vmax.xlane.f32.xlu1 %v940_v61  ;;  %v539_v61 = vld [vmem:[%s5333_s6 + $0xa8] sm:$0xff] }
 0x239   : > { %v704_v3 = vadd.f32 %v703_v58, %v3881_v56  ;;  %v536_v56 = vld [vmem:[%s5333_s6 + $0x90] sm:$0xff]  ;;  %v794_v10 = vpop.f32.mrf.mxu3 }
 0x23a   : > { %v870_v11 = vpop.f32.mrf.mxu1  ;;  %v4035_v31 = vadd.f32 %v788_v23, %v536_v56  ;;  %v795_v8 = vadd.f32 %v794_v10, %v3888_v57  ;;  %v547_v56 = vld [vmem:[%s5333_s6 + $0xe8] sm:$0xff]  ;;  %v546_v10 = vld [vmem:[%s5333_s6 + $0xe0] sm:$0xff] }
 0x23b   : > { %v4018_v15 = vadd.f32 %v704_v3, %v527_v1  ;;  %v871_v58 = vadd.f32 %v870_v11, %v3931_v25  ;;  %v545_v1 = vld [vmem:[%s5333_s6 + $0xd8] sm:$0xff] }
 0x23c   : > { %v970_v60 = vsel %vm915_vm2, %v4035_v31, -inf  ;;  %v4058_v11 = vadd.f32 %v795_v8, %v539_v61 }
 0x23d   : > { %v943_v24 = vsel %vm915_vm2, %v4018_v15, -inf  ;;  %v4060_v23 = vadd.f32 %v871_v58, %v545_v1 }
 0x23e   : > { %944 = vmax.xlane.f32.xlu2 %v943_v24 }
 0x240   : > { %v706_v33 = vpop.f32.mrf.mxu2  ;;  %974 = vmax.xlane.f32.xlu1 %v973_v34 }
 0x241   : > { %v707_v2 = vadd.f32 %v706_v33, %v3896_v0  ;;  %v797_v1 = vpop.f32.mrf.mxu3 }
 0x242   : > { %v873_v20 = vpop.f32.mrf.mxu1  ;;  %v918_v34 = vpop.xlane.xlu0 %917 }
 0x243   : > { %v4040_v46 = vadd.f32 %v707_v2, %v528_v43  ;;  %v874_v33 = vadd.f32 %v873_v20, %v3868_v45  ;;  %v979_v43 = vsel %vm915_vm2, %v4058_v11, -inf  ;;  %v997_v2 = vsel %vm915_vm2, %v4060_v23, -inf }
 0x245   : > { %v946_v0 = vsel %vm915_vm2, %v4040_v46, -inf }
 0x246   : > { %947 = vmax.xlane.f32.xlu0 %v946_v0  ;;  %971 = vmax.xlane.f32.xlu2 %v970_v60  ;;  %v4079_v0 = vadd.f32 %v874_v33, %v546_v10  ;;  %v530_v60 = vld [vmem:[%s5333_s6 + $0x60] sm:$0xff] }
 0x248   : > { %v708_v3 = vpop.f32.mrf.mxu2  ;;  %977 = vmax.xlane.f32.xlu1 %v976_v9 }
 0x249   : > { %v709_v9 = vadd.f32 %v708_v3, %v3931_v25  ;;  %v540_v25 = vld [vmem:[%s5333_s6 + $0xb0] sm:$0xff] }
 0x24a   : > { %v875_v24 = vpop.f32.mrf.mxu1 }
 0x24b   : > { %v876_v28 = vadd.f32 %v875_v24, %v3888_v57  ;;  %v1000_v24 = vsel %vm915_vm2, %v4079_v0, -inf }
 0x24d   : > { %v4071_v63 = vadd.f32 %v876_v28, %v547_v56  ;;  %v930_v56 = vpop.xlane.xlu0 %929  ;;  %v798_v28 = vadd.f32 %v797_v1, %v3922_v19 }
 0x24e   : > { %980 = vmax.xlane.f32.xlu0 %v979_v43  ;;  %998 = vmax.xlane.f32.xlu2 %v997_v2 }
 0x24f   : > { %v1003_v58 = vsel %vm915_vm2, %v4071_v63, -inf  ;;  %v4100_v10 = vadd.f32 %v798_v28, %v540_v25  ;;  %v1012_v25 = vsub.f32 %v3863_v44, %v918_v34  ;;  %v541_v44 = vld [vmem:[%s5333_s6 + $0xb8] sm:$0xff] }
 0x250   : > { %v711_v8 = vpop.f32.mrf.mxu2  ;;  %1004 = vmax.xlane.f32.xlu1 %v1003_v58 }
 0x251   : > { %v712_v20 = vadd.f32 %v711_v8, %v3868_v45  ;;  %v529_v45 = vld [vmem:[%s5333_s6 + $0x58] sm:$0xff]  ;;  %v982_v1 = vsel %vm915_vm2, %v4100_v10, -inf  ;;  %v1044_v34 = vmul.f32 1.442695, %v1012_v25 }
 0x252   : > { %v4095_v2 = vadd.f32 %v709_v9, %v529_v45  ;;  %v878_v3 = vpop.f32.mrf.mxu1  ;;  %v532_v9 = vld [vmem:[%s5333_s6 + $0x70] sm:$0xff] }
 0x253   : > { %v4084_v61 = vadd.f32 %v712_v20, %v530_v60  ;;  %v879_v8 = vadd.f32 %v878_v3, %v3922_v19  ;;  %v548_v20 = vld [vmem:[%s5333_s6 + $0xf0] sm:$0xff]  ;;  %3205 = vpow2.f32 %v1044_v34 }
 0x254   : > { %v949_v58 = vsel %vm915_vm2, %v4095_v2, -inf }
 0x255   : > { %v952_v43 = vsel %vm915_vm2, %v4084_v61, -inf  ;;  %v4114_v28 = vadd.f32 %v879_v8, %v548_v20  ;;  %v933_v8 = vpop.xlane.xlu2 %932 }
 0x256   : > { %1001 = vmax.xlane.f32.xlu2 %v1000_v24  ;;  %v921_v24 = vpop.xlane.xlu0 %920 }
 0x257   : > { %v1006_v35 = vsel %vm915_vm2, %v4114_v28, -inf  ;;  %v1013_v25 = vsub.f32 %v3911_v13, %v921_v24  ;;  %v924_v13 = vpop.xlane.xlu1 %923 }
 0x258   : > { %v713_v33 = vpop.f32.mrf.mxu2  ;;  %953 = vmax.xlane.f32.xlu1 %v952_v43  ;;  %v799_v43 = vpop.f32.mrf.mxu3 }
 0x259   : > { %v800_v40 = vadd.f32 %v799_v43, %v3948_v32  ;;  %v4155_v34 = vpop.eup %3205 }
 0x25e   : > { %950 = vmax.xlane.f32.xlu2 %v949_v58  ;;  %v1016_v58 = vsub.f32 %v3876_v55, %v930_v56  ;;  %v531_v55 = vld [vmem:[%s5333_s6 + $0x68] sm:$0xff] }
 0x260   : > { %v716_v60 = vpop.f32.mrf.mxu2  ;;  %983 = vmax.xlane.f32.xlu1 %v982_v1  ;;  %v1052_v56 = vmul.f32 1.442695, %v1016_v58  ;;  %v939_v1 = vpop.xlane.xlu0 %938 }
 0x261   : > { %v717_v45 = vadd.f32 %v716_v60, %v3922_v19  ;;  %v714_v19 = vadd.f32 %v713_v33, %v3888_v57  ;;  %v533_v60 = vld [vmem:[%s5333_s6 + $0x78] sm:$0xff]  ;;  %v1017_v33 = vsub.f32 %v3909_v12, %v933_v8  ;;  %v1019_v43 = vsub.f32 %v3958_v36, %v939_v1 }
 0x262   : > { %3207 = vpow2.f32 %v1052_v56  ;;  %v549_v36 = vld [vmem:[%s5333_s6 + $0xf8] sm:$0xff]  ;;  %v927_v56 = vpop.xlane.xlu2 %926  ;;  %v1108_v1 = vsel %vm915_vm2, %v4155_v34, 0.0 }
 0x263   : > { %v4117_v3 = vadd.f32 %v717_v45, %v532_v9  ;;  %v4138_v57 = vadd.f32 %v714_v19, %v531_v55  ;;  %v880_v9 = vpop.f32.mrf.mxu1  ;;  %v1058_v24 = vmul.f32 1.442695, %v1019_v43  ;;  %v1046_v55 = vmul.f32 1.442695, %v1013_v25 }
 0x264   : > { %v881_v19 = vadd.f32 %v880_v9, %v3948_v32 }
 0x265   : > { %v958_v42 = vsel %vm915_vm2, %v4117_v3, -inf  ;;  %v955_v12 = vsel %vm915_vm2, %v4138_v57, -inf }
 0x266   : > { %959 = vmax.xlane.f32.xlu0 %v958_v42  ;;  %1007 = vmax.xlane.f32.xlu2 %v1006_v35  ;;  %v4136_v35 = vadd.f32 %v800_v40, %v541_v44  ;;  %v1054_v44 = vmul.f32 1.442695, %v1017_v33 }
 0x268   : > { %v718_v20 = vpop.f32.mrf.mxu2  ;;  %v985_v58 = vsel %vm915_vm2, %v4136_v35, -inf  ;;  %v4157_v8 = vpop.eup %3207  ;;  %3209 = vpow2.f32 %v1054_v44 }
 0x269   : > { %v719_v42 = vadd.f32 %v718_v20, %v3948_v32  ;;  %v4159_v32 = vadd.f32 %v881_v19, %v549_v36  ;;  %v1015_v20 = vsub.f32 %v3943_v41, %v927_v56  ;;  %3211 = vpow2.f32 %v1058_v24 }
 0x26a   : > { %3213 = vpow2.f32 %v1046_v55 }
 0x26b   : > { %v4141_v45 = vadd.f32 %v719_v42, %v533_v60  ;;  %v1014_v60 = vsub.f32 %v3917_v16, %v924_v13  ;;  %v1120_v42 = vsel %vm915_vm2, %v4157_v8, 0.0  ;;  %v1009_v33 = vsel %vm915_vm2, %v4159_v32, -inf }
 0x26c   : > { %v1050_v9 = vmul.f32 1.442695, %v1015_v20 }
 0x26d   : > { %5360 = vst [vmem:[#allocation14_spill] sm:$0xff] %v4141_v45  ;;  %v961_v40 = vsel %vm915_vm2, %v4141_v45, -inf  ;;  %v1048_v41 = vmul.f32 1.442695, %v1014_v60 }
 0x26e   : > { %986 = vmax.xlane.f32.xlu0 %v985_v58  ;;  %962 = vmax.xlane.f32.xlu1 %v961_v40  ;;  %v4169_v43 = vpop.eup %3209  ;;  %v936_v58 = vpop.xlane.xlu1 %935  ;;  %3215 = vpow2.f32 %v1050_v9 }
 0x26f   : > { %956 = vmax.xlane.f32.xlu2 %v955_v12  ;;  %v4171_v25 = vpop.eup %3211  ;;  %3217 = vpow2.f32 %v1048_v41  ;;  %v1018_v40 = vsub.f32 %v3941_v39, %v936_v58  ;;  %v1123_v12 = vsel %vm915_vm2, %v4169_v43, 0.0 }
 0x270   : > { %v4173_v16 = vpop.eup %3213  ;;  %v1129_v19 = vsel %vm915_vm2, %v4171_v25, 0.0 }
 0x271   : > { %v1111_v44 = vsel %vm915_vm2, %v4173_v16, 0.0  ;;  %v1056_v36 = vmul.f32 1.442695, %v1018_v40 }
 0x273   : > { %3219 = vpow2.f32 %v1056_v36 }
 0x274   : > { %v4182_v13 = vpop.eup %3215 }
 0x275   : > { %v4184_v24 = vpop.eup %3217  ;;  %v1117_v39 = vsel %vm915_vm2, %v4182_v13, 0.0 }
 0x276   : > { %1109 = vadd.xlane.f32.xlu0 %v1108_v1  ;;  %1121 = vadd.xlane.f32.xlu1 %v1120_v42  ;;  %v1114_v55 = vsel %vm915_vm2, %v4184_v24, 0.0 }
 0x277   : > { %1010 = vmax.xlane.f32.xlu2 %v1009_v33 }
 0x279   : > { %v4190_v56 = vpop.eup %3219 }
 0x27a   : > { %v1126_v20 = vsel %vm915_vm2, %v4190_v56, 0.0 }
 0x27e   : > { %1130 = vadd.xlane.f32.xlu0 %v1129_v19  ;;  %1124 = vadd.xlane.f32.xlu1 %v1123_v12 }
 0x27f   : > { %1112 = vadd.xlane.f32.xlu2 %v1111_v44 }
 0x280   : > { %v966_v60 = vpop.xlane.xlu0 %965 }
 0x281   : > { %v1028_v33 = vsub.f32 %v3966_v54, %v966_v60 }
 0x283   : > { %v1076_v41 = vmul.f32 1.442695, %v1028_v33 }
 0x286   : > { %1118 = vadd.xlane.f32.xlu1 %v1117_v39 }
 0x287   : > { %1115 = vadd.xlane.f32.xlu2 %v1114_v55 }
 0x28f   : > { %1127 = vadd.xlane.f32.xlu2 %v1126_v20 }
 0x29b   : > { %v990_v1 = vpop.xlane.xlu2 %989 }
 0x29c   : > { %v1036_v42 = vsub.f32 %v3974_v7, %v990_v1 }
 0x29e   : > { %v1092_v9 = vmul.f32 1.442695, %v1036_v42 }
 0x2a0   : > { %3221 = vpow2.f32 %v1092_v9 }
 0x2a1   : > { %3223 = vpow2.f32 %v1076_v41 }
 0x2a3   : > { %v969_v58 = vpop.xlane.xlu2 %968  ;;  %v993_v40 = vpop.xlane.xlu1 %992 }
 0x2a4   : > { %v1029_v19 = vsub.f32 %v3986_v26, %v969_v58  ;;  %v1037_v36 = vsub.f32 %v3988_v30, %v993_v40 }
 0x2a6   : > { %v4197_v12 = vpop.eup %3221  ;;  %v1078_v44 = vmul.f32 1.442695, %v1029_v19  ;;  %v1094_v7 = vmul.f32 1.442695, %v1037_v36 }
 0x2a7   : > { %v1180_v39 = vsel %vm915_vm2, %v4197_v12, 0.0  ;;  %v4202_v55 = vpop.eup %3223 }
 0x2a8   : > { %3225 = vpow2.f32 %v1078_v44  ;;  %1181 = vadd.xlane.f32.xlu0 %v1180_v39  ;;  %v1156_v1 = vsel %vm915_vm2, %v4202_v55, 0.0 }
 0x2a9   : > { %3227 = vpow2.f32 %v1094_v7 }
 0x2ab   : > { %v942_v54 = vpop.xlane.xlu1 %941  ;;  %v996_v39 = vpop.xlane.xlu0 %995 }
 0x2ac   : > { %v1020_v20 = vsub.f32 %v4002_v47, %v942_v54 }
 0x2ae   : > { %v4205_v60 = vpop.eup %3225  ;;  %v1060_v26 = vmul.f32 1.442695, %v1020_v20 }
 0x2af   : > { %v1159_v30 = vsel %vm915_vm2, %v4205_v60, 0.0  ;;  %v4213_v9 = vpop.eup %3227 }
 0x2b0   : > { %1157 = vadd.xlane.f32.xlu0 %v1156_v1  ;;  %1160 = vadd.xlane.f32.xlu1 %v1159_v30  ;;  %3229 = vpow2.f32 %v1060_v26  ;;  %v1183_v47 = vsel %vm915_vm2, %v4213_v9, 0.0 }
 0x2b1   : > { %v945_v42 = vpop.xlane.xlu2 %944 }
 0x2b2   : > { %v1021_v62 = vsub.f32 %v4018_v15, %v945_v42  ;;  %v1038_v15 = vsub.f32 %v4004_v52, %v996_v39 }
 0x2b3   : > { %v4211_v33 = vpop.xlane.xlu1 %974 }
 0x2b4   : > { %v1062_v14 = vmul.f32 1.442695, %v1021_v62 }
 0x2b6   : > { %v4215_v41 = vpop.eup %3229 }
 0x2b7   : > { %v1132_v58 = vsel %vm915_vm2, %v4215_v41, 0.0 }
 0x2b8   : > { %1184 = vadd.xlane.f32.xlu0 %v1183_v47  ;;  %1133 = vadd.xlane.f32.xlu2 %v1132_v58 }
 0x2b9   : > { %v972_v40 = vpop.xlane.xlu2 %971  ;;  %v948_v1 = vpop.xlane.xlu0 %947 }
 0x2ba   : > { %v1030_v19 = vsub.f32 %v4035_v31, %v972_v40  ;;  %v1022_v5 = vsub.f32 %v4040_v46, %v948_v1 }
 0x2bb   : > { %v4222_v36 = vpop.xlane.xlu1 %977 }
 0x2bc   : > { %v1080_v44 = vmul.f32 1.442695, %v1030_v19  ;;  %v1064_v59 = vmul.f32 1.442695, %v1022_v5 }
 0x2be   : > { %3231 = vpow2.f32 %v1080_v44 }
 0x2bf   : > { %3233 = vpow2.f32 %v1062_v14 }
 0x2c1   : > { %v999_v7 = vpop.xlane.xlu2 %998  ;;  %v4236_v47 = vpop.xlane.xlu0 %980 }
 0x2c2   : > { %v1039_v45 = vsub.f32 %v4060_v23, %v999_v7 }
 0x2c3   : > { %v4224_v54 = vpop.xlane.xlu1 %1004 }
 0x2c4   : > { %v4226_v20 = vpop.eup %3231  ;;  %v1098_v62 = vmul.f32 1.442695, %v1039_v45 }
 0x2c5   : > { %5361 = vst [vmem:[#allocation15_spill] sm:$0xff] %v4226_v20  ;;  %v1162_v26 = vsel %vm915_vm2, %v4226_v20, 0.0 }
 0x2c6   : > { %1163 = vadd.xlane.f32.xlu1 %v1162_v26 }
 0x2c9   : > { %v4230_v30 = vpop.xlane.xlu2 %1001 }
 0x2cb   : > { %v4234_v31 = vpop.xlane.xlu1 %953 }
 0x2cc   : > { %1539 = vrot.lane.b32.xlu0 %v3708_v18, %s3501_s13  ;;  %s3505_s13 = smov 48  }
 0x2d0   : > { %1698 = vrot.lane.b32.xlu2 %v3718_v29, %s3503_s15 }
 0x2d1   : > { %v4238_v58 = vpop.xlane.xlu2 %950 }
 0x2d3   : > { %v4242_v40 = vpop.xlane.xlu1 %983 }
 0x2d9   : > { %v4244_v19 = vpop.xlane.xlu0 %959  ;;  %v4246_v44 = vpop.xlane.xlu2 %1007 }
 0x2df   : > { %1696 = vrot.lane.b32.xlu1 %v3696_v4, %s3503_s15 }
 0x2e1   : > { %v4250_v26 = vpop.xlane.xlu0 %986  ;;  %v4252_v51 = vpop.xlane.xlu1 %962 }
 0x2e2   : > { %5362 = vst [vmem:[#allocation16_spill] sm:$0xff] %v4252_v51  ;;  %v4254_v27 = vpop.xlane.xlu2 %956  ;;  %v1096_v51 = vmul.f32 1.442695, %v1038_v15 }
 0x2e7   : > { %1688 = vrot.lane.b32.xlu1 %v3696_v4, %s3504_s16  ;;  %v4266_v4 = vpop.eup %3233 }
 0x2e8   : > { %v1135_v5 = vsel %vm915_vm2, %v4266_v4, 0.0 }
 0x2e9   : > { %v1122_v50 = vpop.xlane.xlu1 %1121  ;;  %v1110_v20 = vpop.xlane.xlu0 %1109 }
 0x2ea   : > { %v4260_v17 = vpop.xlane.xlu2 %1010  ;;  %3235 = vrcp.f32 %v1110_v20 }
 0x2eb   : > { %3237 = vpow2.f32 %v1064_v59 }
 0x2ef   : > { %1692 = vrot.lane.b32.xlu1 %v3734_v48, %s3504_s16 }
 0x2f0   : > { %v3236_v1 = vpop.eup %3235 }
 0x2f1   : > { %v1125_v42 = vpop.xlane.xlu1 %1124  ;;  %v1236_v14 = vmul.f32 %v3236_v1, %v4155_v34  ;;  %v4271_v23 = vpop.eup %3237 }
 0x2f2   : > { %v1113_v46 = vpop.xlane.xlu2 %1112  ;;  %v1138_v20 = vsel %vm915_vm2, %v4271_v23, 0.0 }
 0x2f3   : > { %3239 = vrcp.f32 %v1113_v46  ;;  %v1268_v52 = vpack.c.bf16 %v1236_v14, %v1236_v14 }
 0x2f4   : > { %3241 = vpow2.f32 %v1098_v62 }
 0x2f5   : > { %3243 = vpow2.f32 %v1096_v51  ;;  %v1308_v62 = vunpack.c.l.b16 %v1268_v52 }
 0x2f6   : > { %1136 = vadd.xlane.f32.xlu0 %v1135_v5 }
 0x2f9   : > { %v3240_v7 = vpop.eup %3239  ;;  %v1119_v59 = vpop.xlane.xlu1 %1118  ;;  %1139 = vadd.xlane.f32.xlu2 %v1138_v20 }
 0x2fa   : > { %v1237_v45 = vmul.f32 %v3240_v7, %v4173_v16  ;;  %v1116_v39 = vpop.xlane.xlu2 %1115  ;;  %3245 = vrcp.f32 %v1119_v59  ;;  %v4276_v15 = vpop.eup %3241 }
 0x2fb   : > { %3247 = vrcp.f32 %v1116_v39  ;;  %v1189_v1 = vsel %vm915_vm2, %v4276_v15, 0.0  ;;  %v4280_v51 = vpop.eup %3243 }
 0x2fc   : > { %v1269_v34 = vpack.c.bf16 %v1237_v45, %v1237_v45  ;;  %v1186_v7 = vsel %vm915_vm2, %v4280_v51, 0.0  ;;  %v1031_v45 = vsub.f32 %v4020_v21, %v4211_v33  ;;  %3249 = vrcp.f32 %v1125_v42 }
 0x2fd   : > { %3251 = vrcp.f32 %v1122_v50 }
 0x2fe   : > { %v1309_v46 = vunpack.c.l.b16 %v1269_v34  ;;  %1190 = vadd.xlane.f32.xlu0 %v1189_v1  ;;  %v1082_v34 = vmul.f32 1.442695, %v1031_v45 }
 0x300   : > { %v3246_v14 = vpop.eup %3245  ;;  %v1316_v16 = vpack.c.b16 %v1309_v46, %v1308_v62  ;;  %3253 = vpow2.f32 %v1082_v34  ;;  %v1040_v46 = vsub.f32 %v4079_v0, %v4230_v30  ;;  %v1023_v0 = vsub.f32 %v4095_v2, %v4238_v58 }
 0x301   : > { %v3248_v5 = vpop.eup %3247  ;;  %1187 = vadd.xlane.f32.xlu2 %v1186_v7  ;;  %v1239_v52 = vmul.f32 %v3246_v14, %v4182_v13  ;;  %v1131_v13 = vpop.xlane.xlu0 %1130  ;;  %v1024_v58 = vsub.f32 %v4084_v61, %v4234_v31 }
 0x302   : > { %3079 = vmatmul.msk.bf16.vlgmr.msrb.gmra.mxu2 %vm915_vm2, %v1316_v16  ;;  %v1238_v59 = vmul.f32 %v3248_v5, %v4184_v24  ;;  %v3250_v7 = vpop.eup %3249  ;;  %v1100_v21 = vmul.f32 1.442695, %v1040_v46  ;;  %v1128_v30 = vpop.xlane.xlu2 %1127 }
 0x303   : > { %v1271_v20 = vpack.c.bf16 %v1239_v52, %v1239_v52  ;;  %v3252_v24 = vpop.eup %3251  ;;  %v1241_v33 = vmul.f32 %v3250_v7, %v4169_v43  ;;  %v1066_v43 = vmul.f32 1.442695, %v1023_v0 }
 0x304   : > { %v1270_v39 = vpack.c.bf16 %v1238_v59, %v1238_v59  ;;  %v1240_v50 = vmul.f32 %v3252_v24, %v4157_v8  ;;  %3255 = vpow2.f32 %v1100_v21  ;;  %v1033_v24 = vsub.f32 %v4058_v11, %v4236_v47 }
 0x305   : > { %v1311_v62 = vunpack.c.l.b16 %v1271_v20  ;;  %v1273_v14 = vpack.c.bf16 %v1241_v33, %v1241_v33  ;;  %3257 = vrcp.f32 %v1128_v30 }
 0x306   : > { %v1310_v1 = vunpack.c.l.b16 %v1270_v39  ;;  %v4295_v42 = vpop.eup %3253  ;;  %v1272_v59 = vpack.c.bf16 %v1240_v50, %v1240_v50  ;;  %3259 = vrcp.f32 %v1131_v13  ;;  %v1086_v30 = vmul.f32 1.442695, %v1033_v24 }
 0x307   : > { %v1165_v5 = vsel %vm915_vm2, %v4295_v42, 0.0  ;;  %v1313_v52 = vunpack.c.l.b16 %v1273_v14  ;;  %3261 = vpow2.f32 %v1066_v43 }
 0x308   : > { %v1317_v16 = vpack.c.b16 %v1311_v62, %v1310_v1  ;;  %v1312_v2 = vunpack.c.l.b16 %v1272_v59  ;;  %v1068_v62 = vmul.f32 1.442695, %v1024_v58 }
 0x30a   : > { %v4306_v45 = vpop.eup %3255  ;;  %v1318_v39 = vpack.c.b16 %v1313_v52, %v1312_v2  ;;  %v1026_v2 = vsub.f32 %v4117_v3, %v4244_v19 }
 0x30b   : > { %v3258_v20 = vpop.eup %3257  ;;  %v1192_v34 = vsel %vm915_vm2, %v4306_v45, 0.0 }
 0x30c   : > { %v3260_v1 = vpop.eup %3259  ;;  %v1242_v7 = vmul.f32 %v3258_v20, %v4190_v56 }
 0x30d   : > { %v4316_v61 = vpop.eup %3261  ;;  %v1243_v31 = vmul.f32 %v3260_v1, %v4171_v25 }
 0x30e   : > { %v1274_v21 = vpack.c.bf16 %v1242_v7, %v1242_v7  ;;  %v1141_v13 = vsel %vm915_vm2, %v4316_v61, 0.0 }
 0x30f   : > { %v1275_v33 = vpack.c.bf16 %v1243_v31, %v1243_v31 }
 0x311   : > { %v1315_v43 = vunpack.c.l.b16 %v1275_v33 }
 0x312   : > { %3080 = vmatmul.msk.bf16.gmra.mxu2 %vm915_vm2, %v1317_v16  ;;  %1690 = vrot.lane.b32.xlu0 %v3718_v29, %s3504_s16 }
 0x319   : > { %1166 = vadd.xlane.f32.xlu1 %v1165_v5  ;;  %1769 = vrot.lane.b32.xlu2 %v3675_v49, %s3503_s15  ;;  %v1314_v5 = vunpack.c.l.b16 %v1274_v21  ;;  %v1025_v21 = vsub.f32 %v4138_v57, %v4254_v27  ;;  %v1042_v27 = vsub.f32 %v4114_v28, %v4246_v44  ;;  %v1034_v28 = vsub.f32 %v4100_v10, %v4242_v40 }
 0x31a   : > { %1771 = vrot.lane.b32.xlu0 %v3666_v37, %s3503_s15 }
 0x31b   : > { %v1182_v8 = vpop.xlane.xlu0 %1181 }
 0x321   : > { %1193 = vadd.xlane.f32.xlu1 %v1192_v34 }
 0x322   : > { %3081 = vmatmul.msk.bf16.gmra.mxu2 %vm915_vm2, %v1318_v39  ;;  %1767 = vrot.lane.b32.xlu0 %v3634_v6, %s3503_s15  ;;  %v1319_v39 = vpack.c.b16 %v1315_v43, %v1314_v5  ;;  %v1104_v5 = vmul.f32 1.442695, %v1042_v27 }
 0x323   : > { %v1158_v46 = vpop.xlane.xlu0 %1157  ;;  %v1161_v16 = vpop.xlane.xlu1 %1160 }
 0x324   : > { %3263 = vrcp.f32 %v1158_v46 }
 0x325   : > { %3265 = vrcp.f32 %v1161_v16 }
 0x326   : > { %3267 = vpow2.f32 %v1068_v62  ;;  %v1072_v62 = vmul.f32 1.442695, %v1026_v2 }
 0x329   : > { %1142 = vadd.xlane.f32.xlu1 %v1141_v13 }
 0x32a   : > { %v3264_v50 = vpop.eup %3263 }
 0x32b   : > { %v3266_v0 = vpop.eup %3265  ;;  %v1252_v56 = vmul.f32 %v3264_v50, %v4202_v55  ;;  %v1185_v14 = vpop.xlane.xlu0 %1184 }
 0x32c   : > { %v1253_v59 = vmul.f32 %v3266_v0, %v4205_v60  ;;  %3269 = vrcp.f32 %v1185_v14  ;;  %v4325_v25 = vpop.xlane.xlu2 %1133  ;;  %v4327_v11 = vpop.eup %3267  ;;  %v1032_v60 = vsub.f32 %v4042_v53, %v4222_v36  ;;  %v1035_v53 = vsub.f32 %v4136_v35, %v4250_v26 }
 0x32d   : > { %3271 = vrcp.f32 %v1182_v8  ;;  %v1284_v47 = vpack.c.bf16 %v1252_v56, %v1252_v56  ;;  %v1144_v20 = vsel %vm915_vm2, %v4327_v11, 0.0 }
 0x32e   : > { %v1285_v52 = vpack.c.bf16 %v1253_v59, %v1253_v59  ;;  %3273 = vpow2.f32 %v1086_v30  ;;  %v1084_v19 = vmul.f32 1.442695, %v1032_v60  ;;  %v1090_v33 = vmul.f32 1.442695, %v1035_v53 }
 0x32f   : > { %v1454_v58 = vunpack.c.l.b16 %v1284_v47  ;;  %3275 = vpow2.f32 %v1072_v62  ;;  %v1070_v30 = vmul.f32 1.442695, %v1025_v21 }
 0x330   : > { %v1455_v55 = vunpack.c.l.b16 %v1285_v52  ;;  %3277 = vpow2.f32 %v1084_v19 }
 0x331   : > { %1145 = vadd.xlane.f32.xlu1 %v1144_v20  ;;  %3279 = vpow2.f32 %v1090_v33  ;;  %v5363_v33 = vld [vmem:[#allocation16_spill] sm:$0xff] }
 0x332   : > { %3082 = vmatmul.msk.bf16.gmra.mxu2 %vm915_vm2, %v1319_v39  ;;  %v3270_v8 = vpop.eup %3269  ;;  %v1462_v34 = vpack.c.b16 %v1455_v55, %v1454_v58  ;;  %v1088_v58 = vmul.f32 1.442695, %v1034_v28  ;;  %v1043_v55 = vsub.f32 %v4159_v32, %v4260_v17 }
 0x333   : > { %v3272_v1 = vpop.eup %3271  ;;  %v1261_v46 = vmul.f32 %v3270_v8, %v4213_v9  ;;  %v1041_v9 = vsub.f32 %v4071_v63, %v4224_v54 }
 0x334   : > { %v1699_v16 = vpop.permute.xlu2 %1698  ;;  %3087 = vmatmul.msk.bf16.vlgmr.msra.gmra.mxu1 %vm915_vm2, %v1462_v34  ;;  %v4338_v3 = vpop.eup %3273  ;;  %v1260_v31 = vmul.f32 %v3272_v1, %v4197_v12  ;;  %v1106_v60 = vmul.f32 1.442695, %v1043_v55 }
 0x335   : > { %v1720_v7 = vsel %vm586_vm1, %v1699_v16, 0  ;;  %v1293_v36 = vpack.c.bf16 %v1261_v46, %v1261_v46  ;;  %v1171_v24 = vsel %vm915_vm2, %v4338_v3, 0.0  ;;  %v4350_v50 = vpop.eup %3275  ;;  %v1102_v0 = vmul.f32 1.442695, %v1041_v9 }
 0x336   : > { %1734 = vmatpush.bf16.xpose.msrb.mxu1 %v1720_v7  ;;  %v1292_v13 = vpack.c.bf16 %v1260_v31, %v1260_v31  ;;  %v4352_v56 = vpop.eup %3277  ;;  %v1150_v63 = vsel %vm915_vm2, %v4350_v50, 0.0 }
 0x337   : > { %v1528_v12 = vunpack.c.l.b16 %v1293_v36  ;;  %3281 = vpow2.f32 %v1102_v0  ;;  %v1168_v57 = vsel %vm915_vm2, %v4352_v56, 0.0  ;;  %v4361_v54 = vpop.eup %3279 }
 0x338   : > { %v1527_v35 = vunpack.c.l.b16 %v1292_v13  ;;  %3283 = vpow2.f32 %v1070_v30  ;;  %v1177_v43 = vsel %vm915_vm2, %v4361_v54, 0.0 }
 0x339   : > { %1172 = vadd.xlane.f32.xlu1 %v1171_v24  ;;  %3285 = vpow2.f32 %v1104_v5  ;;  %v4371_v44 = vpop.xlane.xlu1 %1163  ;;  %v5365_v5 = vld [vmem:[#allocation8_spill] sm:$0xff] }
 0x33a   : > { %v1535_v14 = vpack.c.b16 %v1528_v12, %v1527_v35  ;;  %3287 = vpow2.f32 %v1088_v58  ;;  %v5364_v12 = vld [vmem:[#allocation14_spill] sm:$0xff] }
 0x33b   : > { %3289 = vpow2.f32 %v1106_v60 }
 0x33c   : > { %3291 = vrcp.f32 %v4325_v25 }
 0x33d   : > { %v4363_v59 = vpop.eup %3281 }
 0x33e   : > { %v1540_v26 = vpop.permute.xlu0 %1539  ;;  %v4365_v47 = vpop.eup %3283  ;;  %v1195_v52 = vsel %vm915_vm2, %v4363_v59, 0.0 }
 0x33f   : > { %1570 = vmatpush.bf16.msra.mxu2 %v1540_v26  ;;  %v1147_v2 = vsel %vm915_vm2, %v4365_v47, 0.0  ;;  %v4377_v39 = vpop.eup %3285 }
 0x340   : > { %v1198_v20 = vsel %vm915_vm2, %v4377_v39, 0.0  ;;  %v4384_v8 = vpop.eup %3287 }
 0x341   : > { %1151 = vadd.xlane.f32.xlu1 %v1150_v63  ;;  %v1174_v34 = vsel %vm915_vm2, %v4384_v8, 0.0  ;;  %v4388_v1 = vpop.eup %3289 }
 0x342   : > { %3091 = vmatmul.msk.bf16.vlgmr.msra.gmra.mxu2 %vm915_vm2, %v1535_v14  ;;  %1169 = vadd.xlane.f32.xlu2 %v1168_v57  ;;  %v1201_v17 = vsel %vm915_vm2, %v4388_v1, 0.0  ;;  %v3292_v62 = vpop.eup %3291 }
 0x343   : > { %v1244_v46 = vmul.f32 %v3292_v62, %v4215_v41  ;;  %v1027_v41 = vsub.f32 %v5364_v12, %v5363_v33 }
 0x345   : > { %v1276_v7 = vpack.c.bf16 %v1244_v46, %v1244_v46  ;;  %v1074_v35 = vmul.f32 1.442695, %v1027_v41 }
 0x347   : > { %v1381_v25 = vunpack.c.l.b16 %v1276_v7 }
 0x349   : > { %1178 = vadd.xlane.f32.xlu1 %v1177_v43 }
 0x34a   : > { %1196 = vadd.xlane.f32.xlu2 %v1195_v52 }
 0x34c   : > { %1148 = vadd.xlane.f32.xlu0 %v1147_v2  ;;  %v5366_v2 = vld [vmem:[#allocation7_spill] sm:$0xff] }
 0x351   : > { %v1697_v10 = vpop.permute.xlu1 %1696 }
 0x352   : > { %v1717_v40 = vsel %vm586_vm1, %v1697_v10, 0  ;;  %1199 = vadd.xlane.f32.xlu2 %v1198_v20  ;;  %v5367_v20 = vld [vmem:[#allocation15_spill] sm:$0xff] }
 0x353   : > { %1735 = vmatpush.bf16.xpose.msrb.mxu1 %v1717_v40 }
 0x35a   : > { %1175 = vadd.xlane.f32.xlu2 %v1174_v34 }
 0x360   : > { %1765 = vrot.lane.b32.xlu0 %v3771_v22, %s3503_s15 }
 0x362   : > { %1759 = vrot.lane.b32.xlu1 %v3634_v6, %s3504_s16  ;;  %1202 = vadd.xlane.f32.xlu2 %v1201_v17 }
 0x369   : > { %v1137_v32 = vpop.xlane.xlu0 %1136 }
 0x36a   : > { %3293 = vrcp.f32 %v1137_v32  ;;  %1838 = vrot.lane.b32.xlu1 %v3726_v38, %s3503_s15 }
 0x36c   : > { %v1140_v16 = vpop.xlane.xlu2 %1139 }
 0x370   : > { %v3294_v19 = vpop.eup %3293 }
 0x371   : > { %v1245_v31 = vmul.f32 %v3294_v19, %v4266_v4  ;;  %v1191_v53 = vpop.xlane.xlu0 %1190  ;;  %v4409_v4 = vpop.permute.xlu1 %1688 }
 0x372   : > { %3295 = vrcp.f32 %v1191_v53  ;;  %1834 = vrot.lane.b32.xlu1 %v3708_v18, %s3503_s15 }
 0x373   : > { %v1277_v36 = vpack.c.bf16 %v1245_v31, %v1245_v31 }
 0x374   : > { %v1188_v9 = vpop.xlane.xlu2 %1187 }
 0x375   : > { %v1382_v24 = vunpack.c.l.b16 %v1277_v36  ;;  %3297 = vrcp.f32 %v1188_v9  ;;  %v5368_v36 = vld [vmem:[#allocation5_spill] sm:$0xff] }
 0x376   : > { %3299 = vpow2.f32 %v1074_v35 }
 0x377   : > { %v1389_v21 = vpack.c.b16 %v1382_v24, %v1381_v25  ;;  %3301 = vrcp.f32 %v4371_v44 }
 0x378   : > { %v3296_v13 = vpop.eup %3295 }
 0x379   : > { %3083 = vmatmul.msk.bf16.vlgmr.msrb.gmra.mxu3 %vm915_vm2, %v1389_v21  ;;  %v1263_v0 = vmul.f32 %v3296_v13, %v4276_v15  ;;  %v4420_v28 = vpop.permute.xlu1 %1692  ;;  %v5370_v13 = vld [vmem:[#allocation3_spill] sm:$0xff] }
 0x37a   : > { %1826 = vrot.lane.b32.xlu1 %v3708_v18, %s3504_s16  ;;  %1757 = vrot.lane.b32.xlu2 %v3771_v22, %s3504_s16 }
 0x37b   : > { %v3298_v30 = vpop.eup %3297  ;;  %v1295_v14 = vpack.c.bf16 %v1263_v0, %v1263_v0 }
 0x37c   : > { %v1262_v26 = vmul.f32 %v3298_v30, %v4280_v51  ;;  %v4423_v52 = vpop.eup %3299  ;;  %v1770_v34 = vpop.permute.xlu2 %1769 }
 0x37d   : > { %v1530_v57 = vunpack.c.l.b16 %v1295_v14  ;;  %v1153_v51 = vsel %vm915_vm2, %v4423_v52, 0.0  ;;  %v3302_v40 = vpop.eup %3301  ;;  %v1792_v17 = vsel %vm586_vm1, %v1770_v34, 0  ;;  %v5371_v14 = vld [vmem:[#allocation2_spill] sm:$0xff] }
 0x37e   : > { %v1294_v63 = vpack.c.bf16 %v1262_v26, %v1262_v26  ;;  %v1254_v60 = vmul.f32 %v3302_v40, %v5367_v20 }
 0x380   : > { %v1529_v27 = vunpack.c.l.b16 %v1294_v63  ;;  %v1286_v46 = vpack.c.bf16 %v1254_v60, %v1254_v60 }
 0x382   : > { %1832 = vrot.lane.b32.xlu1 %v5365_v5, %s3504_s16  ;;  %1840 = vrot.lane.b32.xlu2 %v5365_v5, %s3503_s15  ;;  %v1536_v15 = vpack.c.b16 %v1530_v57, %v1529_v27  ;;  %v1456_v7 = vunpack.c.l.b16 %v1286_v46 }
 0x384   : > { %v4418_v43 = vpop.permute.xlu0 %1690  ;;  %3092 = vmatmul.msk.bf16.gmra.mxu2 %vm915_vm2, %v1536_v15 }
 0x38a   : > { %1154 = vadd.xlane.f32.xlu0 %v1153_v51  ;;  %1836 = vrot.lane.b32.xlu2 %v5366_v2, %s3503_s15 }
 0x38c   : > { %v1772_v58 = vpop.permute.xlu0 %1771  ;;  %v1167_v10 = vpop.xlane.xlu1 %1166 }
 0x38d   : > { %v1795_v55 = vsel %vm586_vm1, %v1772_v58, 0  ;;  %3303 = vrcp.f32 %v1167_v10 }
 0x38e   : > { %1801 = vmatpush.bf16.xpose.msrb.mxu2 %v1795_v55  ;;  %3305 = vrcp.f32 %v1140_v16  ;;  %v5372_v55 = vld [vmem:[#allocation4_spill] sm:$0xff] }
 0x392   : > { %1828 = vrot.lane.b32.xlu2 %v5366_v2, %s3504_s16 }
 0x393   : > { %v3304_v44 = vpop.eup %3303 }
 0x394   : > { %v1194_v32 = vpop.xlane.xlu1 %1193  ;;  %v1255_v62 = vmul.f32 %v3304_v44, %v4295_v42  ;;  %v1768_v53 = vpop.permute.xlu0 %1767  ;;  %v5369_v42 = vld [vmem:[#allocation9_spill] sm:$0xff] }
 0x395   : > { %v1789_v24 = vsel %vm586_vm1, %v1768_v53, 0  ;;  %v3306_v21 = vpop.eup %3305 }
 0x396   : > { %1802 = vmatpush.bf16.xpose.msrb.mxu2 %v1792_v17  ;;  %v1287_v19 = vpack.c.bf16 %v1255_v62, %v1255_v62  ;;  %v1246_v16 = vmul.f32 %v3306_v21, %v4271_v23 }
 0x398   : > { %v1457_v31 = vunpack.c.l.b16 %v1287_v19  ;;  %v1278_v12 = vpack.c.bf16 %v1246_v16, %v1246_v16 }
 0x39a   : > { %2337 = vrot.lane.b32.xlu2 %v5368_v36, %s3505_s13  ;;  %v1463_v25 = vpack.c.b16 %v1457_v31, %v1456_v7  ;;  %v1383_v35 = vunpack.c.l.b16 %v1278_v12 }
 0x39c   : > { %3088 = vmatmul.msk.bf16.gmra.mxu1 %vm915_vm2, %v1463_v25  ;;  %v1143_v9 = vpop.xlane.xlu1 %1142 }
 0x39d   : > { %3307 = vrcp.f32 %v1143_v9 }
 0x39e   : > { %1803 = vmatpush.bf16.xpose.msrb.mxu2 %v1789_v24  ;;  %1694 = vrot.lane.b32.xlu0 %v5369_v42, %s3504_s16 }
 0x3a2   : > { %2333 = vrot.lane.b32.xlu2 %v5370_v13, %s3505_s13 }
 0x3a3   : > { %v3308_v33 = vpop.eup %3307 }
 0x3a4   : > { %v1247_v41 = vmul.f32 %v3308_v33, %v4316_v61  ;;  %v1146_v0 = vpop.xlane.xlu1 %1145 }
 0x3a6   : > { %1761 = vrot.lane.b32.xlu0 %v3675_v49, %s3504_s16  ;;  %v1279_v30 = vpack.c.bf16 %v1247_v41, %v1247_v41 }
 0x3a8   : > { %v1384_v26 = vunpack.c.l.b16 %v1279_v30 }
 0x3aa   : > { %2331 = vrot.lane.b32.xlu2 %v5371_v14, %s3505_s13  ;;  %v1390_v63 = vpack.c.b16 %v1384_v26, %v1383_v35 }
 0x3ac   : > { %3084 = vmatmul.msk.bf16.gmra.mxu3 %vm915_vm2, %v1390_v63  ;;  %v1173_v23 = vpop.xlane.xlu1 %1172 }
 0x3ad   : > { %3309 = vrcp.f32 %v1173_v23 }
 0x3ae   : > { %1763 = vrot.lane.b32.xlu0 %v3666_v37, %s3504_s16 }
 0x3b3   : > { %v3310_v61 = vpop.eup %3309 }
 0x3b4   : > { %v1257_v57 = vmul.f32 %v3310_v61, %v4338_v3  ;;  %v4456_v15 = vpop.xlane.xlu1 %1151 }
 0x3b5   : > { %v1170_v27 = vpop.xlane.xlu2 %1169 }
 0x3b6   : > { %1830 = vrot.lane.b32.xlu0 %v3726_v38, %s3504_s16  ;;  %3311 = vrcp.f32 %v1170_v27  ;;  %v1289_v40 = vpack.c.bf16 %v1257_v57, %v1257_v57 }
 0x3b7   : > { %3313 = vrcp.f32 %v1194_v32 }
 0x3b8   : > { %3315 = vrcp.f32 %v1146_v0  ;;  %v1459_v32 = vunpack.c.l.b16 %v1289_v40 }
 0x3bc   : > { %v3312_v51 = vpop.eup %3311  ;;  %v1179_v31 = vpop.xlane.xlu1 %1178 }
 0x3bd   : > { %v1197_v58 = vpop.xlane.xlu2 %1196  ;;  %v1256_v10 = vmul.f32 %v3312_v51, %v4352_v56  ;;  %v3314_v20 = vpop.eup %3313 }
 0x3be   : > { %2335 = vrot.lane.b32.xlu0 %v5372_v55, %s3505_s13  ;;  %3317 = vrcp.f32 %v1197_v58  ;;  %v3316_v34 = vpop.eup %3315  ;;  %v1264_v3 = vmul.f32 %v3314_v20, %v4306_v45 }
 0x3bf   : > { %v1149_v60 = vpop.xlane.xlu0 %1148  ;;  %v1288_v44 = vpack.c.bf16 %v1256_v10, %v1256_v10  ;;  %v1248_v62 = vmul.f32 %v3316_v34, %v4327_v11 }
 0x3c0   : > { %3319 = vrcp.f32 %v1149_v60  ;;  %v1296_v36 = vpack.c.bf16 %v1264_v3, %v1264_v3 }
 0x3c1   : > { %v1458_v17 = vunpack.c.l.b16 %v1288_v44  ;;  %v1280_v25 = vpack.c.bf16 %v1248_v62, %v1248_v62  ;;  %3321 = vrcp.f32 %v1179_v31  ;;  %v4474_v44 = vpop.f32.mrf.mxu2 }
 0x3c2   : > { %v1531_v16 = vunpack.c.l.b16 %v1296_v36 }
 0x3c3   : > { %v1464_v46 = vpack.c.b16 %v1459_v32, %v1458_v17  ;;  %v1385_v13 = vunpack.c.l.b16 %v1280_v25 }
 0x3c4   : > { %v3318_v19 = vpop.eup %3317 }
 0x3c5   : > { %v1200_v53 = vpop.xlane.xlu2 %1199  ;;  %3089 = vmatmul.msk.bf16.gmra.mxu1 %vm915_vm2, %v1464_v46  ;;  %v1265_v56 = vmul.f32 %v3318_v19, %v4363_v59 }
 0x3c6   : > { %v3320_v7 = vpop.eup %3319 }
 0x3c7   : > { %v1249_v24 = vmul.f32 %v3320_v7, %v4365_v47  ;;  %v1297_v9 = vpack.c.bf16 %v1265_v56, %v1265_v56  ;;  %v3322_v0 = vpop.eup %3321 }
 0x3c8   : > { %v1259_v47 = vmul.f32 %v3322_v0, %v4361_v54 }
 0x3c9   : > { %v1281_v21 = vpack.c.bf16 %v1249_v24, %v1249_v24  ;;  %v1532_v45 = vunpack.c.l.b16 %v1297_v9  ;;  %v4478_v62 = vpop.f32.mrf.mxu2 }
 0x3ca   : > { %v1291_v63 = vpack.c.bf16 %v1259_v47, %v1259_v47  ;;  %v4511_v47 = vpop.f32.mrf.mxu1 }
 0x3cb   : > { %v1386_v11 = vunpack.c.l.b16 %v1281_v21  ;;  %v1537_v33 = vpack.c.b16 %v1532_v45, %v1531_v16  ;;  %5375 = vst [vmem:[#allocation14_spill] sm:$0xff] %v4511_v47 }
 0x3cc   : > { %v1461_v57 = vunpack.c.l.b16 %v1291_v63 }
 0x3cd   : > { %v1391_v12 = vpack.c.b16 %v1386_v11, %v1385_v13  ;;  %v1176_v41 = vpop.xlane.xlu2 %1175  ;;  %3093 = vmatmul.msk.bf16.gmra.mxu2 %vm915_vm2, %v1537_v33 }
 0x3ce   : > { %3323 = vrcp.f32 %v1176_v41 }
 0x3cf   : > { %3085 = vmatmul.msk.bf16.gmra.mxu3 %vm915_vm2, %v1391_v12  ;;  %3325 = vrcp.f32 %v1200_v53 }
 0x3d1   : > { %v4486_v7 = vpop.f32.mrf.mxu2 }
 0x3d2   : > { %v1766_v59 = vpop.permute.xlu0 %1765 }
 0x3d3   : > { %v1786_v30 = vsel %vm586_vm1, %v1766_v59, 0 }
 0x3d4   : > { %1804 = vmatpush.bf16.xpose.msrb.mxu2 %v1786_v30  ;;  %v3324_v35 = vpop.eup %3323  ;;  %v1760_v60 = vpop.permute.xlu1 %1759 }
 0x3d5   : > { %v1203_v26 = vpop.xlane.xlu2 %1202  ;;  %v1258_v14 = vmul.f32 %v3324_v35, %v4384_v8  ;;  %v3326_v23 = vpop.eup %3325 }
 0x3d6   : > { %3327 = vrcp.f32 %v1203_v26  ;;  %v1266_v51 = vmul.f32 %v3326_v23, %v4377_v39 }
 0x3d7   : > { %v1290_v27 = vpack.c.bf16 %v1258_v14, %v1258_v14  ;;  %3329 = vrcp.f32 %v4456_v15  ;;  %v4518_v14 = vpop.f32.mrf.mxu1 }
 0x3d8   : > { %v1298_v40 = vpack.c.bf16 %v1266_v51, %v1266_v51  ;;  %5378 = vst [vmem:[#allocation7_spill] sm:$0xff] %v4518_v14  ;;  %v5382_v51 = vld [vmem:[#allocation13_spill] sm:$0xff] }
 0x3d9   : > { %v1460_v61 = vunpack.c.l.b16 %v1290_v27  ;;  %v4493_v24 = vpop.f32.mrf.mxu2 }
 0x3da   : > { %v1533_v34 = vunpack.c.l.b16 %v1298_v40 }
 0x3db   : > { %v1465_v58 = vpack.c.b16 %v1461_v57, %v1460_v61 }
 0x3dc   : > { %v3328_v55 = vpop.eup %3327  ;;  %v1839_v3 = vpop.permute.xlu1 %1838 }
 0x3dd   : > { %v1758_v10 = vpop.permute.xlu2 %1757  ;;  %3090 = vmatmul.msk.bf16.gmra.mxu1 %vm915_vm2, %v1465_v58  ;;  %v1267_v54 = vmul.f32 %v3328_v55, %v4388_v1  ;;  %v1861_v1 = vsel %vm586_vm1, %v1839_v3, 0  ;;  %v3330_v36 = vpop.eup %3329 }
 0x3de   : > { %v1250_v9 = vmul.f32 %v3330_v36, %v4350_v50  ;;  %v3461_v36 = vld [vmem:[%s5333_s6 + $0x40] sm:$0xff] }
 0x3df   : > { %v1299_v20 = vpack.c.bf16 %v1267_v54, %v1267_v54  ;;  %v5386_v54 = vld [vmem:[#allocation12_spill] sm:$0xff] }
 0x3e0   : > { %v1282_v16 = vpack.c.bf16 %v1250_v9, %v1250_v9 }
 0x3e1   : > { %v1534_v8 = vunpack.c.l.b16 %v1299_v20  ;;  %v4498_v33 = vpop.f32.mrf.mxu2 }
 0x3e2   : > { %v1387_v13 = vunpack.c.l.b16 %v1282_v16 }
 0x3e3   : > { %v1538_v17 = vpack.c.b16 %v1534_v8, %v1533_v34 }
 0x3e4   : > { %v1835_v53 = vpop.permute.xlu1 %1834 }
 0x3e5   : > { %v1841_v32 = vpop.permute.xlu2 %1840  ;;  %3094 = vmatmul.msk.bf16.gmra.mxu2 %vm915_vm2, %v1538_v17 }
 0x3e6   : > { %v1864_v39 = vsel %vm586_vm1, %v1841_v32, 0 }
 0x3e7   : > { %1870 = vmatpush.bf16.xpose.msrb.mxu3 %v1864_v39 }
 0x3e9   : > { %v4503_v41 = vpop.f32.mrf.mxu2 }
 0x3ec   : > { %v1827_v17 = vpop.permute.xlu1 %1826 }
 0x3ed   : > { %v1837_v46 = vpop.permute.xlu2 %1836  ;;  %3107 = vmatmul.msk.bf16.vlgmr.msrb.gmra.mxu1 %vm586_vm1, %v4409_v4  ;;  %v1855_v4 = vsel %vm586_vm1, %v1835_v53, 0 }
 0x3ee   : > { %v1858_v31 = vsel %vm586_vm1, %v1837_v46, 0 }
 0x3ef   : > { %1871 = vmatpush.bf16.xpose.msrb.mxu3 %v1861_v1  ;;  %v4558_v1 = vld [vmem:[%s5332_s5 + $0x40] sm:$0xff] }
 0x3f1   : > { %v4509_v0 = vpop.f32.mrf.mxu2 }
 0x3f2   : > { %5374 = vst [vmem:[#allocation16_spill] sm:$0xff] %v4509_v0 }
 0x3f5   : > { %v4483_v19 = vpop.permute.xlu2 %1828  ;;  %3111 = vmatmul.msk.bf16.vlgmr.msrb.gmra.mxu2 %vm586_vm1, %v1758_v10 }
 0x3f7   : > { %1872 = vmatpush.bf16.xpose.msrb.mxu3 %v1858_v31 }
 0x3f9   : > { %v4513_v35 = vpop.f32.mrf.mxu2 }
 0x3fa   : > { %5376 = vst [vmem:[#allocation8_spill] sm:$0xff] %v4513_v35 }
 0x3fc   : > { %v4542_v34 = vpop.f32.mrf.mxu3 }
 0x3fd   : > { %v1155_v56 = vpop.xlane.xlu0 %1154  ;;  %v2338_v25 = vpop.permute.xlu2 %2337  ;;  %3108 = vmatmul.msk.bf16.gmra.mxu1 %vm586_vm1, %v4418_v43  ;;  %5390 = vst [vmem:[#allocation12_spill] sm:$0xff] %v4542_v34 }
 0x3fe   : > { %3331 = vrcp.f32 %v1155_v56  ;;  %2359 = vmatpush.bf16.msrb.mxu0 %v2338_v25 }
 0x3ff   : > { %1873 = vmatpush.bf16.xpose.msrb.mxu3 %v1855_v4 }
 0x401   : > { %v4520_v23 = vpop.f32.mrf.mxu2 }
 0x402   : > { %5379 = vst [vmem:[#allocation15_spill] sm:$0xff] %v4520_v23 }
 0x404   : > { %v3332_v21 = vpop.eup %3331  ;;  %v4551_v3 = vpop.f32.mrf.mxu3 }
 0x405   : > { %v1251_v15 = vmul.f32 %v3332_v21, %v4423_v52  ;;  %3112 = vmatmul.msk.bf16.gmra.mxu2 %vm586_vm1, %v1760_v60  ;;  %v5373_v52 = vld [vmem:[#allocation10_spill] sm:$0xff]  ;;  %v2334_v26 = vpop.permute.xlu2 %2333  ;;  %5394 = vst [vmem:[#allocation20_spill] sm:$0xff] %v4551_v3  ;;  %v4577_v21 = vld [vmem:[%s5332_s5 + $0x48] sm:$0xff] }
 0x407   : > { %v1283_v45 = vpack.c.bf16 %v1251_v15, %v1251_v15 }
 0x409   : > { %v1388_v11 = vunpack.c.l.b16 %v1283_v45  ;;  %v4524_v57 = vpop.f32.mrf.mxu2  ;;  %v3462_v45 = vld [vmem:[%s5333_s6 + $0x48] sm:$0xff] }
 0x40a   : > { %5381 = vst [vmem:[#allocation9_spill] sm:$0xff] %v4524_v57 }
 0x40b   : > { %v1392_v43 = vpack.c.b16 %v1388_v11, %v1387_v13 }
 0x40d   : > { %3086 = vmatmul.msk.bf16.gmra.mxu3 %vm915_vm2, %v1392_v43  ;;  %3109 = vmatmul.msk.bf16.gmra.mxu1 %vm586_vm1, %v4420_v28  ;;  %v5377_v28 = vld [vmem:[#allocation11_spill] sm:$0xff]  ;;  %v2332_v61 = vpop.permute.xlu2 %2331  ;;  %v4592_v43 = vld [vmem:[%s5332_s5 + $0x50] sm:$0xff] }
 0x410   : > { %v1695_v12 = vpop.permute.xlu0 %1694 }
 0x411   : > { %v4530_v55 = vpop.f32.mrf.mxu2 }
 0x412   : > { %5384 = vst [vmem:[#allocation2_spill] sm:$0xff] %v4530_v55  ;;  %v3472_v55 = vld [vmem:[%s5333_s6 + $0x68] sm:$0xff] }
 0x418   : > { %v1762_v50 = vpop.permute.xlu0 %1761 }
 0x419   : > { %3113 = vmatmul.msk.bf16.gmra.mxu2 %vm586_vm1, %v1762_v50  ;;  %v4522_v27 = vpop.f32.mrf.mxu1  ;;  %v4536_v40 = vpop.f32.mrf.mxu2 }
 0x41a   : > { %5380 = vst [vmem:[#allocation5_spill] sm:$0xff] %v4522_v27 }
 0x41b   : > { %5387 = vst [vmem:[#allocation10_spill] sm:$0xff] %v4536_v40 }
 0x41d   : > { %3103 = vmatmul.msk.bf16.vlgmr.msra.gmra.mxu3 %vm586_vm1, %v5373_v52  ;;  %3110 = vmatmul.msk.bf16.gmra.mxu1 %vm586_vm1, %v1695_v12 }
 0x420   : > { %v1764_v59 = vpop.permute.xlu0 %1763 }
 0x421   : > { %v4528_v58 = vpop.f32.mrf.mxu1 }
 0x422   : > { %5383 = vst [vmem:[#allocation3_spill] sm:$0xff] %v4528_v58 }
 0x428   : > { %v1831_v30 = vpop.permute.xlu0 %1830 }
 0x429   : > { %3114 = vmatmul.msk.bf16.gmra.mxu2 %vm586_vm1, %v1764_v59 }
 0x42d   : > { %3104 = vmatmul.msk.bf16.gmra.mxu3 %vm586_vm1, %v5377_v28  ;;  %v3463_v28 = vld [vmem:[%s5333_s6 + $0x50] sm:$0xff] }
 0x42f   : > { %v4560_v53 = vpop.f32.mrf.mxu3 }
 0x430   : > { %v2336_v63 = vpop.permute.xlu0 %2335  ;;  %5396 = vst [vmem:[#allocation22_spill] sm:$0xff] %v4560_v53 }
 0x431   : > { %2360 = vmatpush.bf16.msrb.mxu0 %v2336_v63 }
 0x435   : > { %2361 = vmatpush.bf16.msrb.mxu0 %v2334_v26 }
 0x437   : > { %v4580_v15 = vpop.f32.mrf.mxu3 }
 0x438   : > { %5398 = vst [vmem:[#allocation24_spill] sm:$0xff] %v4580_v15 }
 0x439   : > { %2362 = vmatpush.bf16.msrb.mxu0 %v2332_v61 }
 0x43d   : > { %3105 = vmatmul.msk.bf16.gmra.mxu3 %vm586_vm1, %v5382_v51  ;;  %v3464_v51 = vld [vmem:[%s5333_s6 + $0x80] sm:$0xff] }
 0x442   : > { %v4532_v10 = vpop.f32.mrf.mxu1 }
 0x443   : > { %5385 = vst [vmem:[#allocation4_spill] sm:$0xff] %v4532_v10 }
 0x44a   : > { %v4538_v20 = vpop.f32.mrf.mxu1 }
 0x44b   : > { %5388 = vst [vmem:[#allocation11_spill] sm:$0xff] %v4538_v20 }
 0x44d   : > { %3106 = vmatmul.msk.bf16.gmra.mxu3 %vm586_vm1, %v5386_v54 }
 0x450   : > { %v4540_v60 = vpop.f32.mrf.mxu2 }
 0x451   : > { %5389 = vst [vmem:[#allocation13_spill] sm:$0xff] %v4540_v60  ;;  %v3471_v60 = vld [vmem:[%s5333_s6 + $0x60] sm:$0xff] }
 0x452   : > { %v4596_v59 = vpop.f32.mrf.mxu3 }
 0x453   : > { %5399 = vst [vmem:[#allocation25_spill] sm:$0xff] %v4596_v59 }
 0x458   : > { %v4547_v32 = vpop.f32.mrf.mxu2 }
 0x459   : > { %5392 = vst [vmem:[#allocation18_spill] sm:$0xff] %v4547_v32 }
 0x45a   : > { %v4544_v8 = vpop.f32.mrf.mxu1 }
 0x45b   : > { %5391 = vst [vmem:[#allocation17_spill] sm:$0xff] %v4544_v8 }
 0x45d   : > { %3115 = vmatmul.msk.bf16.vlgmr.msrb.gmra.mxu3 %vm586_vm1, %v1827_v17  ;;  %v4611_v17 = vpop.f32.mrf.mxu3 }
 0x45e   : > { %5400 = vst [vmem:[#allocation26_spill] sm:$0xff] %v4611_v17 }
 0x462   : > { %v4549_v39 = vpop.f32.mrf.mxu1 }
 0x463   : > { %5393 = vst [vmem:[#allocation19_spill] sm:$0xff] %v4549_v39 }
 0x468   : > { %v4553_v46 = vpop.f32.mrf.mxu2 }
 0x469   : > { %5395 = vst [vmem:[#allocation21_spill] sm:$0xff] %v4553_v46  ;;  %v4684_v46 = vld [vmem:[%s5332_s5 + $0x60] sm:$0xff] }
 0x46a   : > { %v1737_v31 = vpop.f32.mrf.mxu1 }
 0x46b   : > { %v1738_v56 = vadd.f32 %v4558_v1, %v1737_v31 }
 0x46d   : > { %3116 = vmatmul.msk.bf16.gmra.mxu3 %vm586_vm1, %v4483_v19  ;;  %v4568_v25 = vadd.f32 %v3461_v36, %v1738_v56  ;;  %v1833_v36 = vpop.permute.xlu1 %1832 }
 0x46f   : > { %v1951_v4 = vsel %vm915_vm2, %v4568_v25, -inf }
 0x470   : > { %v4572_v9 = vpop.f32.mrf.mxu2  ;;  %1952 = vmax.xlane.f32.xlu1 %v1951_v4  ;;  %v3465_v4 = vld [vmem:[%s5333_s6 + $0x88] sm:$0xff] }
 0x471   : > { %5397 = vst [vmem:[#allocation23_spill] sm:$0xff] %v4572_v9 }
 0x472   : > { %v1739_v16 = vpop.f32.mrf.mxu1 }
 0x473   : > { %v1740_v19 = vadd.f32 %v4577_v21, %v1739_v16 }
 0x475   : > { %v4585_v13 = vadd.f32 %v3462_v45, %v1740_v19 }
 0x477   : > { %v1954_v11 = vsel %vm915_vm2, %v4585_v13, -inf }
 0x478   : > { %1955 = vmax.xlane.f32.xlu0 %v1954_v11  ;;  %v1806_v12 = vpop.f32.mrf.mxu2 }
 0x479   : > { %v1807_v63 = vadd.f32 %v4558_v1, %v1806_v12 }
 0x47a   : > { %v1742_v50 = vpop.f32.mrf.mxu1 }
 0x47b   : > { %v1743_v52 = vadd.f32 %v4592_v43, %v1742_v50  ;;  %v4609_v54 = vadd.f32 %v3464_v51, %v1807_v63 }
 0x47d   : > { %3117 = vmatmul.msk.bf16.gmra.mxu3 %vm586_vm1, %v1831_v30  ;;  %v4601_v26 = vadd.f32 %v3463_v28, %v1743_v52  ;;  %v1975_v56 = vsel %vm915_vm2, %v4609_v54, -inf  ;;  %v3466_v52 = vld [vmem:[%s5333_s6] sm:$0xff] }
 0x47f   : > { %v1957_v61 = vsel %vm915_vm2, %v4601_v26, -inf }
 0x480   : > { %1958 = vmax.xlane.f32.xlu1 %v1957_v61  ;;  %v1808_v30 = vpop.f32.mrf.mxu2 }
 0x481   : > { %v1809_v31 = vadd.f32 %v4577_v21, %v1808_v30  ;;  %v5403_v30 = vld [vmem:[#allocation6_spill] sm:$0xff] }
 0x483   : > { %v4619_v16 = vadd.f32 %v3465_v4, %v1809_v31  ;;  %v3467_v31 = vld [vmem:[%s5333_s6 + $0x8] sm:$0xff] }
 0x485   : > { %v1978_v45 = vsel %vm915_vm2, %v4619_v16, -inf }
 0x488   : > { %1976 = vmax.xlane.f32.xlu1 %v1975_v56 }
 0x48d   : > { %3118 = vmatmul.msk.bf16.gmra.mxu3 %vm586_vm1, %v1833_v36 }
 0x490   : > { %v4622_v19 = vpop.f32.mrf.mxu3  ;;  %1979 = vmax.xlane.f32.xlu1 %v1978_v45  ;;  %v1744_v45 = vpop.f32.mrf.mxu1 }
 0x491   : > { %5401 = vst [vmem:[#allocation27_spill] sm:$0xff] %v4622_v19 }
 0x498   : > { %v4626_v11 = vpop.f32.mrf.mxu3 }
 0x499   : > { %5402 = vst [vmem:[#allocation28_spill] sm:$0xff] %v4626_v11 }
 0x4a0   : > { %v1668_v12 = vpop.f32.mrf.mxu3 }
 0x4a1   : > { %v1669_v50 = vadd.f32 %v4558_v1, %v1668_v12  ;;  %v4655_v12 = vld [vmem:[%s5332_s5 + $0x58] sm:$0xff] }
 0x4a3   : > { %v4632_v28 = vadd.f32 %v3466_v52, %v1669_v50  ;;  %v1745_v50 = vadd.f32 %v4655_v12, %v1744_v45 }
 0x4a5   : > { %v1927_v63 = vsel %vm915_vm2, %v4632_v28, -inf }
 0x4a6   : > { %1928 = vmax.xlane.f32.xlu0 %v1927_v63  ;;  %v1747_v63 = vpop.f32.mrf.mxu1 }
 0x4a8   : > { %v1670_v61 = vpop.f32.mrf.mxu3 }
 0x4a9   : > { %v1671_v51 = vadd.f32 %v4577_v21, %v1670_v61  ;;  %2404 = vrot.lane.b32.xlu1 %v5403_v30, %s3505_s13 }
 0x4ab   : > { %v4642_v56 = vadd.f32 %v3467_v31, %v1671_v51 }
 0x4ad   : > { %v1930_v36 = vsel %vm915_vm2, %v4642_v56, -inf }
 0x4ae   : > { %1931 = vmax.xlane.f32.xlu2 %v1930_v36  ;;  %v1749_v31 = vpop.f32.mrf.mxu1  ;;  %v3469_v36 = vld [vmem:[%s5333_s6 + $0x90] sm:$0xff] }
 0x4b0   : > { %v1673_v4 = vpop.f32.mrf.mxu3 }
 0x4b1   : > { %v1674_v9 = vadd.f32 %v4592_v43, %v1673_v4  ;;  %v4689_v4 = vld [vmem:[%s5332_s5 + $0x68] sm:$0xff] }
 0x4b2   : > { %v1750_v32 = vadd.f32 %v4689_v4, %v1749_v31  ;;  %v4709_v31 = vld [vmem:[%s5332_s5 + $0x70] sm:$0xff] }
 0x4b8   : > { %v1675_v52 = vpop.f32.mrf.mxu3 }
 0x4ba   : > { %2408 = vrot.lane.b32.xlu0 %v3734_v48, %s3505_s13  ;;  %v3468_v48 = vld [vmem:[%s5333_s6 + $0x58] sm:$0xff] }
 0x4bb   : > { %v4661_v61 = vadd.f32 %v3468_v48, %v1745_v50  ;;  %v3470_v48 = vld [vmem:[%s5333_s6 + $0x10] sm:$0xff] }
 0x4c0   : > { %v4666_v30 = vpop.f32.mrf.mxu3 }
 0x4c1   : > { %v1679_v14 = vadd.f32 %v4684_v46, %v4666_v30  ;;  %v3480_v30 = vld [vmem:[%s5333_s6 + $0x20] sm:$0xff] }
 0x4c2   : > { %2406 = vrot.lane.b32.xlu0 %v3718_v29, %s3505_s13  ;;  %v1811_v29 = vpop.f32.mrf.mxu2 }
 0x4c3   : > { %v1812_v51 = vadd.f32 %v4592_v43, %v1811_v29  ;;  %v4679_v29 = vadd.f32 %v3470_v48, %v1674_v9 }
 0x4c5   : > { %v4671_v45 = vadd.f32 %v3469_v36, %v1812_v51  ;;  %v1752_v51 = vpop.f32.mrf.mxu1  ;;  %v1748_v36 = vadd.f32 %v4684_v46, %v1747_v63  ;;  %v1933_v9 = vsel %vm915_vm2, %v4679_v29, -inf  ;;  %v4704_v63 = vadd.f32 %v3472_v55, %v1750_v32 }
 0x4c6   : > { %2410 = vrot.lane.b32.xlu2 %v5369_v42, %s3505_s13  ;;  %v1960_v42 = vsel %vm915_vm2, %v4661_v61, -inf  ;;  %v1676_v32 = vadd.f32 %v4655_v12, %v1675_v52  ;;  %v3475_v52 = vld [vmem:[%s5333_s6 + $0x18] sm:$0xff] }
 0x4c7   : > { %v1981_v50 = vsel %vm915_vm2, %v4671_v45, -inf  ;;  %v4699_v40 = vadd.f32 %v3471_v60, %v1748_v36  ;;  %v1753_v60 = vadd.f32 %v4709_v31, %v1752_v51  ;;  %v4720_v36 = vld [vmem:[%s5332_s5 + $0x78] sm:$0xff]  ;;  %v1966_v23 = vsel %vm915_vm2, %v4704_v63, -inf }
 0x4c8   : > { %v4738_v20 = vadd.f32 %v3475_v52, %v1676_v32 }
 0x4c9   : > { %v1963_v39 = vsel %vm915_vm2, %v4699_v40, -inf }
 0x4ca   : > { %v1936_v32 = vsel %vm915_vm2, %v4738_v20, -inf }
 0x4cd   : > { %v1754_v55 = vpop.f32.mrf.mxu1 }
 0x4d3   : > { %1961 = vmax.xlane.f32.xlu1 %v1960_v42  ;;  %v1680_v42 = vpop.f32.mrf.mxu3 }
 0x4db   : > { %1982 = vmax.xlane.f32.xlu1 %v1981_v50  ;;  %v1813_v50 = vpop.f32.mrf.mxu2 }
 0x4dc   : > { %v1814_v48 = vadd.f32 %v4655_v12, %v1813_v50  ;;  %v3473_v50 = vld [vmem:[%s5333_s6 + $0x98] sm:$0xff] }
 0x4de   : > { %v4714_v57 = vadd.f32 %v3473_v50, %v1814_v48  ;;  %v1755_v48 = vadd.f32 %v4720_v36, %v1754_v55  ;;  %v3474_v50 = vld [vmem:[%s5333_s6 + $0x70] sm:$0xff]  ;;  %v3476_v55 = vld [vmem:[%s5333_s6 + $0x78] sm:$0xff] }
 0x4df   : > { %v4733_v8 = vadd.f32 %v3474_v50, %v1753_v60  ;;  %v1681_v60 = vadd.f32 %v4689_v4, %v1680_v42  ;;  %v3478_v42 = vld [vmem:[%s5333_s6 + $0x28] sm:$0xff] }
 0x4e0   : > { %v1984_v51 = vsel %vm915_vm2, %v4714_v57, -inf  ;;  %v4743_v10 = vadd.f32 %v3476_v55, %v1755_v48  ;;  %v3477_v48 = vld [vmem:[%s5333_s6 + $0xa0] sm:$0xff] }
 0x4e1   : > { %v1969_v27 = vsel %vm915_vm2, %v4733_v8, -inf  ;;  %v4762_v55 = vadd.f32 %v3478_v42, %v1681_v60 }
 0x4e2   : > { %v1972_v52 = vsel %vm915_vm2, %v4743_v10, -inf }
 0x4e3   : > { %1934 = vmax.xlane.f32.xlu1 %v1933_v9  ;;  %v1683_v9 = vpop.f32.mrf.mxu3 }
 0x4e4   : > { %v1684_v60 = vadd.f32 %v4709_v31, %v1683_v9  ;;  %v4785_v9 = vadd.f32 %v3480_v30, %v1679_v14 }
 0x4eb   : > { %1967 = vmax.xlane.f32.xlu1 %v1966_v23  ;;  %v1816_v23 = vpop.f32.mrf.mxu2  ;;  %v1685_v50 = vpop.f32.mrf.mxu3 }
 0x4ec   : > { %1964 = vmax.xlane.f32.xlu0 %v1963_v39  ;;  %v1953_v39 = vpop.xlane.xlu1 %1952  ;;  %v1817_v58 = vadd.f32 %v4684_v46, %v1816_v23  ;;  %v1956_v11 = vpop.xlane.xlu0 %1955 }
 0x4ed   : > { %v2032_v19 = vsub.f32 %v4585_v13, %v1956_v11 }
 0x4ee   : > { %v4757_v23 = vadd.f32 %v3477_v48, %v1817_v58 }
 0x4ef   : > { %1985 = vmax.xlane.f32.xlu2 %v1984_v51  ;;  %v1686_v51 = vadd.f32 %v4720_v36, %v1685_v50  ;;  %v3479_v50 = vld [vmem:[%s5333_s6 + $0x38] sm:$0xff]  ;;  %v2073_v11 = vmul.f32 1.442695, %v2032_v19  ;;  %v3482_v19 = vld [vmem:[%s5333_s6 + $0xa8] sm:$0xff] }
 0x4f3   : > { %1970 = vmax.xlane.f32.xlu1 %v1969_v27  ;;  %v2031_v27 = vsub.f32 %v4568_v25, %v1953_v39  ;;  %v1818_v48 = vpop.f32.mrf.mxu2  ;;  %v1987_v25 = vsel %vm915_vm2, %v4757_v23, -inf }
 0x4f4   : > { %1937 = vmax.xlane.f32.xlu0 %v1936_v32  ;;  %v4768_v32 = vadd.f32 %v3479_v50, %v1686_v51  ;;  %v1959_v58 = vpop.xlane.xlu1 %1958  ;;  %v1819_v13 = vadd.f32 %v4689_v4, %v1818_v48  ;;  %v3481_v50 = vld [vmem:[%s5333_s6 + $0x30] sm:$0xff] }
 0x4f5   : > { %v2071_v39 = vmul.f32 1.442695, %v2031_v27  ;;  %v2033_v51 = vsub.f32 %v4601_v26, %v1959_v58  ;;  %v1939_v58 = vsel %vm915_vm2, %v4785_v9, -inf }
 0x4f6   : > { %v1948_v42 = vsel %vm915_vm2, %v4768_v32, -inf  ;;  %v4795_v27 = vadd.f32 %v3482_v19, %v1819_v13 }
 0x4f7   : > { %1973 = vmax.xlane.f32.xlu2 %v1972_v52  ;;  %v1942_v52 = vsel %vm915_vm2, %v4762_v55, -inf  ;;  %3333 = vpow2.f32 %v2071_v39  ;;  %v2075_v26 = vmul.f32 1.442695, %v2033_v51 }
 0x4f8   : > { %3335 = vpow2.f32 %v2073_v11  ;;  %v1990_v48 = vsel %vm915_vm2, %v4795_v27, -inf }
 0x4f9   : > { %3337 = vpow2.f32 %v2075_v26 }
 0x4fb   : > { %1943 = vmax.xlane.f32.xlu1 %v1942_v52  ;;  %v4790_v52 = vadd.f32 %v3481_v50, %v1684_v60 }
 0x4fc   : > { %1988 = vmax.xlane.f32.xlu0 %v1987_v25 }
 0x4fd   : > { %v1945_v14 = vsel %vm915_vm2, %v4790_v52, -inf  ;;  %v4803_v60 = vpop.eup %3333 }
 0x4fe   : > { %v4805_v25 = vpop.eup %3335  ;;  %v2143_v13 = vsel %vm915_vm2, %v4803_v60, 0.0 }
 0x4ff   : > { %1949 = vmax.xlane.f32.xlu2 %v1948_v42  ;;  %v4807_v39 = vpop.eup %3337  ;;  %v2146_v51 = vsel %vm915_vm2, %v4805_v25, 0.0 }
 0x500   : > { %v2149_v11 = vsel %vm915_vm2, %v4807_v39, 0.0 }
 0x503   : > { %1946 = vmax.xlane.f32.xlu1 %v1945_v14 }
 0x504   : > { %1940 = vmax.xlane.f32.xlu0 %v1939_v58 }
 0x507   : > { %1991 = vmax.xlane.f32.xlu2 %v1990_v48 }
 0x50b   : > { %2147 = vadd.xlane.f32.xlu1 %v2146_v51  ;;  %v1977_v51 = vpop.xlane.xlu1 %1976 }
 0x50c   : > { %2144 = vadd.xlane.f32.xlu0 %v2143_v13 }
 0x50f   : > { %2150 = vadd.xlane.f32.xlu2 %v2149_v11 }
 0x519   : > { %v1929_v42 = vpop.xlane.xlu0 %1928 }
 0x51a   : > { %v2023_v30 = vsub.f32 %v4632_v28, %v1929_v42 }
 0x51c   : > { %v2055_v50 = vmul.f32 1.442695, %v2023_v30 }
 0x51e   : > { %3339 = vpow2.f32 %v2055_v50 }
 0x521   : > { %v1932_v26 = vpop.xlane.xlu2 %1931 }
 0x522   : > { %v2024_v19 = vsub.f32 %v4642_v56, %v1932_v26  ;;  %v1980_v56 = vpop.xlane.xlu1 %1979 }
 0x524   : > { %v4817_v14 = vpop.eup %3339  ;;  %v2057_v58 = vmul.f32 1.442695, %v2024_v19 }
 0x525   : > { %v2119_v48 = vsel %vm915_vm2, %v4817_v14, 0.0 }
 0x526   : > { %3341 = vpow2.f32 %v2057_v58  ;;  %2120 = vadd.xlane.f32.xlu0 %v2119_v48 }
 0x529   : > { %v2411_v13 = vpop.permute.xlu2 %2410 }
 0x52a   : > { %2432 = vmatpush.bf16.msra.mxu1 %v2411_v13  ;;  %v2405_v30 = vpop.permute.xlu1 %2404 }
 0x52c   : > { %v4821_v11 = vpop.eup %3341  ;;  %v2409_v47 = vpop.permute.xlu0 %2408 }
 0x52d   : > { %v2122_v28 = vsel %vm915_vm2, %v4821_v11, 0.0 }
 0x52e   : > { %2433 = vmatpush.bf16.msra.mxu1 %v2409_v47  ;;  %2123 = vadd.xlane.f32.xlu1 %v2122_v28 }
 0x534   : > { %v2407_v42 = vpop.permute.xlu0 %2406 }
 0x535   : > { %2434 = vmatpush.bf16.msra.mxu1 %v2407_v42  ;;  %v2039_v42 = vsub.f32 %v4609_v54, %v1977_v51 }
 0x537   : > { %v2087_v59 = vmul.f32 1.442695, %v2039_v42 }
 0x539   : > { %2435 = vmatpush.bf16.msra.mxu1 %v2405_v30  ;;  %v1821_v30 = vpop.f32.mrf.mxu2 }
 0x546   : > { %v1962_v50 = vpop.xlane.xlu1 %1961 }
 0x547   : > { %v2034_v26 = vsub.f32 %v4661_v61, %v1962_v50 }
 0x549   : > { %v2077_v19 = vmul.f32 1.442695, %v2034_v26 }
 0x54b   : > { %3343 = vpow2.f32 %v2077_v19 }
 0x54e   : > { %v4826_v58 = vpop.xlane.xlu1 %1982 }
 0x551   : > { %v4828_v48 = vpop.eup %3343 }
 0x552   : > { %v2152_v13 = vsel %vm915_vm2, %v4828_v48, 0.0 }
 0x553   : > { %2153 = vadd.xlane.f32.xlu0 %v2152_v13 }
 0x556   : > { %v1935_v47 = vpop.xlane.xlu1 %1934 }
 0x557   : > { %v2025_v28 = vsub.f32 %v4679_v29, %v1935_v47  ;;  %v1823_v47 = vpop.f32.mrf.mxu2 }
 0x559   : > { %v2059_v17 = vmul.f32 1.442695, %v2025_v28 }
 0x55b   : > { %3345 = vpow2.f32 %v2059_v17 }
 0x55c   : > { %3347 = vpow2.f32 %v2087_v59  ;;  %v1824_v59 = vadd.f32 %v4720_v36, %v1823_v47  ;;  %v1822_v47 = vadd.f32 %v4709_v31, %v1821_v30 }
 0x55e   : > { %v1968_v61 = vpop.xlane.xlu1 %1967 }
 0x55f   : > { %v1965_v50 = vpop.xlane.xlu0 %1964 }
 0x560   : > { %v2035_v26 = vsub.f32 %v4699_v40, %v1965_v50 }
 0x561   : > { %v4835_v19 = vpop.eup %3345 }
 0x562   : > { %v2079_v15 = vmul.f32 1.442695, %v2035_v26  ;;  %v2125_v13 = vsel %vm915_vm2, %v4835_v19, 0.0  ;;  %v4841_v51 = vpop.eup %3347 }
 0x563   : > { %2126 = vadd.xlane.f32.xlu1 %v2125_v13  ;;  %v2167_v40 = vsel %vm915_vm2, %v4841_v51, 0.0 }
 0x564   : > { %3349 = vpow2.f32 %v2079_v15 }
 0x566   : > { %v4839_v29 = vpop.xlane.xlu1 %1970 }
 0x567   : > { %v1938_v54 = vpop.xlane.xlu0 %1937 }
 0x568   : > { %v2026_v17 = vsub.f32 %v4738_v20, %v1938_v54  ;;  %v3483_v20 = vld [vmem:[%s5333_s6 + $0xb8] sm:$0xff] }
 0x569   : > { %v4856_v13 = vadd.f32 %v3483_v20, %v1824_v59  ;;  %v3484_v59 = vld [vmem:[%s5333_s6 + $0xb0] sm:$0xff] }
 0x56a   : > { %v2061_v28 = vmul.f32 1.442695, %v2026_v17  ;;  %v4844_v42 = vpop.eup %3349  ;;  %v2040_v17 = vsub.f32 %v4619_v16, %v1980_v56  ;;  %v4869_v20 = vadd.f32 %v3484_v59, %v1822_v47  ;;  %v2036_v56 = vsub.f32 %v4704_v63, %v1968_v61 }
 0x56b   : > { %2168 = vadd.xlane.f32.xlu1 %v2167_v40  ;;  %v2155_v15 = vsel %vm915_vm2, %v4844_v42, 0.0 }
 0x56c   : > { %3351 = vpow2.f32 %v2061_v28  ;;  %2156 = vadd.xlane.f32.xlu0 %v2155_v15  ;;  %v1996_v28 = vsel %vm915_vm2, %v4856_v13, -inf  ;;  %v2089_v15 = vmul.f32 1.442695, %v2040_v17  ;;  %v2081_v17 = vmul.f32 1.442695, %v2036_v56 }
 0x56e   : > { %v1944_v50 = vpop.xlane.xlu1 %1943  ;;  %3353 = vpow2.f32 %v2089_v15 }
 0x56f   : > { %v4851_v26 = vpop.xlane.xlu0 %1988  ;;  %v2028_v34 = vsub.f32 %v4762_v55, %v1944_v50 }
 0x572   : > { %v4858_v54 = vpop.eup %3351 }
 0x573   : > { %v2128_v40 = vsel %vm915_vm2, %v4858_v54, 0.0 }
 0x574   : > { %2129 = vadd.xlane.f32.xlu2 %v2128_v40  ;;  %1997 = vmax.xlane.f32.xlu0 %v1996_v28  ;;  %v1993_v40 = vsel %vm915_vm2, %v4869_v20, -inf  ;;  %v2065_v28 = vmul.f32 1.442695, %v2028_v34  ;;  %v4876_v47 = vpop.eup %3353 }
 0x575   : > { %v2170_v55 = vsel %vm915_vm2, %v4876_v47, 0.0 }
 0x576   : > { %v1947_v53 = vpop.xlane.xlu1 %1946 }
 0x577   : > { %v1941_v3 = vpop.xlane.xlu0 %1940  ;;  %v2029_v63 = vsub.f32 %v4790_v52, %v1947_v53 }
 0x578   : > { %v2027_v16 = vsub.f32 %v4785_v9, %v1941_v3 }
 0x57a   : > { %v2063_v30 = vmul.f32 1.442695, %v2027_v16 }
 0x57c   : > { %3355 = vpow2.f32 %v2063_v30  ;;  %1994 = vmax.xlane.f32.xlu2 %v1993_v40 }
 0x57e   : > { %v2148_v35 = vpop.xlane.xlu1 %2147 }
 0x57f   : > { %v2145_v0 = vpop.xlane.xlu0 %2144  ;;  %3357 = vrcp.f32 %v2148_v35  ;;  %v2067_v35 = vmul.f32 1.442695, %v2029_v63  ;;  %v2037_v63 = vsub.f32 %v4733_v8, %v4839_v29 }
 0x580   : > { %3359 = vrcp.f32 %v2145_v0 }
 0x581   : > { %3361 = vpow2.f32 %v2081_v17  ;;  %v1986_v17 = vpop.xlane.xlu2 %1985 }
 0x582   : > { %v4878_v3 = vpop.eup %3355  ;;  %3363 = vpow2.f32 %v2065_v28 }
 0x583   : > { %v2131_v9 = vsel %vm915_vm2, %v4878_v3, 0.0  ;;  %3365 = vpow2.f32 %v2067_v35 }
 0x584   : > { %2171 = vadd.xlane.f32.xlu2 %v2170_v55  ;;  %2132 = vadd.xlane.f32.xlu1 %v2131_v9 }
 0x585   : > { %v3358_v34 = vpop.eup %3357 }
 0x586   : > { %v3360_v61 = vpop.eup %3359  ;;  %v2256_v50 = vmul.f32 %v3358_v34, %v4805_v25 }
 0x587   : > { %v4886_v0 = vpop.eup %3361  ;;  %v2255_v15 = vmul.f32 %v3360_v61, %v4803_v60  ;;  %v2083_v61 = vmul.f32 1.442695, %v2037_v63 }
 0x588   : > { %v4889_v59 = vpop.eup %3363  ;;  %v2288_v53 = vpack.c.bf16 %v2256_v50, %v2256_v50  ;;  %2483 = vrot.lane.b32.xlu0 %v3666_v37, %s3505_s13  ;;  %v2158_v30 = vsel %vm915_vm2, %v4886_v0, 0.0  ;;  %v1875_v50 = vpop.f32.mrf.mxu3 }
 0x589   : > { %v2287_v52 = vpack.c.bf16 %v2255_v15, %v2255_v15  ;;  %v2134_v25 = vsel %vm915_vm2, %v4889_v59, 0.0  ;;  %v4898_v60 = vpop.eup %3365  ;;  %v1974_v55 = vpop.xlane.xlu2 %1973 }
 0x58a   : > { %v2393_v16 = vunpack.c.l.b16 %v2288_v53  ;;  %v2137_v37 = vsel %vm915_vm2, %v4898_v60, 0.0 }
 0x58b   : > { %v2392_v56 = vunpack.c.l.b16 %v2287_v52 }
 0x58c   : > { %2159 = vadd.xlane.f32.xlu2 %v2158_v30  ;;  %2135 = vadd.xlane.f32.xlu1 %v2134_v25 }
 0x58d   : > { %v2400_v40 = vpack.c.b16 %v2393_v16, %v2392_v56 }
 0x58f   : > { %3123 = vmatmul.msk.bf16.vlgmr.msra.gmra.mxu1 %vm915_vm2, %v2400_v40 }
 0x591   : > { %v1950_v16 = vpop.xlane.xlu2 %1949 }
 0x592   : > { %v2030_v40 = vsub.f32 %v4768_v32, %v1950_v16 }
 0x594   : > { %2138 = vadd.xlane.f32.xlu2 %v2137_v37  ;;  %v2069_v37 = vmul.f32 1.442695, %v2030_v40  ;;  %v3486_v40 = vld [vmem:[%s5333_s6 + $0xd8] sm:$0xff] }
 0x599   : > { %v2121_v28 = vpop.xlane.xlu0 %2120 }
 0x59a   : > { %3367 = vrcp.f32 %v2121_v28  ;;  %v4917_v28 = vpop.xlane.xlu2 %1991 }
 0x5a0   : > { %v3368_v34 = vpop.eup %3367 }
 0x5a1   : > { %v2124_v9 = vpop.xlane.xlu1 %2123  ;;  %v2247_v35 = vmul.f32 %v3368_v34, %v4817_v14  ;;  %v1877_v14 = vpop.f32.mrf.mxu3 }
 0x5a2   : > { %3369 = vrcp.f32 %v2124_v9  ;;  %v2042_v9 = vsub.f32 %v4714_v57, %v1986_v17 }
 0x5a3   : > { %3371 = vpow2.f32 %v2083_v61  ;;  %v2279_v53 = vpack.c.bf16 %v2247_v35, %v2247_v35  ;;  %v2038_v61 = vsub.f32 %v4743_v10, %v1974_v55 }
 0x5a4   : > { %3373 = vpow2.f32 %v2069_v37  ;;  %v2093_v34 = vmul.f32 1.442695, %v2042_v9 }
 0x5a5   : > { %2481 = vrot.lane.b32.xlu1 %v3675_v49, %s3505_s13  ;;  %v2319_v30 = vunpack.c.l.b16 %v2279_v53  ;;  %v1876_v49 = vadd.f32 %v4558_v1, %v1875_v50  ;;  %v2151_v50 = vpop.xlane.xlu2 %2150 }
 0x5a6   : > { %3375 = vpow2.f32 %v2093_v34 }
 0x5a7   : > { %3377 = vrcp.f32 %v2151_v50 }
 0x5a8   : > { %v3370_v15 = vpop.eup %3369 }
 0x5a9   : > { %v2248_v52 = vmul.f32 %v3370_v15, %v4821_v11  ;;  %v4910_v29 = vpop.eup %3371  ;;  %v1880_v1 = vpop.f32.mrf.mxu3  ;;  %v2085_v15 = vmul.f32 1.442695, %v2038_v61 }
 0x5aa   : > { %v2161_v11 = vsel %vm915_vm2, %v4910_v29, 0.0  ;;  %v4928_v35 = vpop.eup %3373  ;;  %v1881_v50 = vadd.f32 %v4592_v43, %v1880_v1 }
 0x5ab   : > { %v2280_v56 = vpack.c.bf16 %v2248_v52, %v2248_v52  ;;  %v2140_v53 = vsel %vm915_vm2, %v4928_v35, 0.0  ;;  %3379 = vpow2.f32 %v2085_v15 }
 0x5ac   : > { %2479 = vrot.lane.b32.xlu2 %v3634_v6, %s3505_s13  ;;  %v3485_v6 = vld [vmem:[%s5333_s6 + $0xc0] sm:$0xff]  ;;  %v4932_v17 = vpop.eup %3375 }
 0x5ad   : > { %v2320_v8 = vunpack.c.l.b16 %v2280_v56  ;;  %v4922_v63 = vadd.f32 %v3485_v6, %v1876_v49  ;;  %v3378_v16 = vpop.eup %3377  ;;  %v2176_v10 = vsel %vm915_vm2, %v4932_v17, 0.0 }
 0x5ae   : > { %v2257_v55 = vmul.f32 %v3378_v16, %v4807_v39  ;;  %v3487_v39 = vld [vmem:[%s5333_s6 + $0xc8] sm:$0xff] }
 0x5af   : > { %v2327_v25 = vpack.c.b16 %v2320_v8, %v2319_v30  ;;  %v1999_v32 = vsel %vm915_vm2, %v4922_v63, -inf  ;;  %v1878_v8 = vadd.f32 %v4577_v21, %v1877_v14 }
 0x5b0   : > { %v2289_v37 = vpack.c.bf16 %v2257_v55, %v2257_v55 }
 0x5b1   : > { %3119 = vmatmul.msk.bf16.vlgmr.msrb.gmra.mxu0 %vm915_vm2, %v2327_v25  ;;  %v1882_v57 = vpop.f32.mrf.mxu3  ;;  %v4938_v30 = vpop.eup %3379  ;;  %v4952_v21 = vadd.f32 %v3487_v39, %v1878_v8 }
 0x5b2   : > { %2162 = vadd.xlane.f32.xlu0 %v2161_v11  ;;  %v1883_v56 = vadd.f32 %v4655_v12, %v1882_v57  ;;  %v2164_v6 = vsel %vm915_vm2, %v4938_v30, 0.0  ;;  %v2394_v34 = vunpack.c.l.b16 %v2289_v37  ;;  %v3488_v57 = vld [vmem:[%s5333_s6 + $0xe0] sm:$0xff] }
 0x5b3   : > { %v2002_v15 = vsel %vm915_vm2, %v4952_v21, -inf }
 0x5b4   : > { %v4944_v49 = vadd.f32 %v3486_v40, %v1883_v56 }
 0x5b9   : > { %v1885_v11 = vpop.f32.mrf.mxu3 }
 0x5ba   : > { %2000 = vmax.xlane.f32.xlu0 %v1999_v32  ;;  %v1886_v9 = vadd.f32 %v4684_v46, %v1885_v11  ;;  %v2008_v32 = vsel %vm915_vm2, %v4944_v49, -inf }
 0x5bc   : > { %v4965_v46 = vadd.f32 %v3488_v57, %v1886_v9 }
 0x5be   : > { %v2011_v43 = vsel %vm915_vm2, %v4965_v46, -inf }
 0x5c1   : > { %v1887_v16 = vpop.f32.mrf.mxu3 }
 0x5c2   : > { %2141 = vadd.xlane.f32.xlu0 %v2140_v53  ;;  %v1888_v8 = vadd.f32 %v4689_v4, %v1887_v16 }
 0x5c6   : > { %v2154_v52 = vpop.xlane.xlu0 %2153 }
 0x5c7   : > { %3381 = vrcp.f32 %v2154_v52 }
 0x5c9   : > { %v1890_v4 = vpop.f32.mrf.mxu3 }
 0x5ca   : > { %2177 = vadd.xlane.f32.xlu0 %v2176_v10 }
 0x5cd   : > { %v3382_v25 = vpop.eup %3381 }
 0x5ce   : > { %v2258_v12 = vmul.f32 %v3382_v25, %v4828_v48  ;;  %v2043_v48 = vsub.f32 %v4757_v23, %v4851_v26  ;;  %v3489_v23 = vld [vmem:[%s5333_s6 + $0xd0] sm:$0xff] }
 0x5cf   : > { %2165 = vadd.xlane.f32.xlu1 %v2164_v6  ;;  %v4971_v26 = vadd.f32 %v3489_v23, %v1881_v50 }
 0x5d0   : > { %v2290_v14 = vpack.c.bf16 %v2258_v12, %v2258_v12  ;;  %v2095_v52 = vmul.f32 1.442695, %v2043_v48  ;;  %v3490_v12 = vld [vmem:[%s5333_s6 + $0xe8] sm:$0xff] }
 0x5d1   : > { %v2005_v1 = vsel %vm915_vm2, %v4971_v26, -inf  ;;  %v4985_v6 = vadd.f32 %v3490_v12, %v1888_v8 }
 0x5d2   : > { %v2395_v61 = vunpack.c.l.b16 %v2290_v14  ;;  %2009 = vmax.xlane.f32.xlu0 %v2008_v32  ;;  %3383 = vpow2.f32 %v2095_v52  ;;  %v1891_v32 = vadd.f32 %v4709_v31, %v1890_v4 }
 0x5d4   : > { %v2401_v53 = vpack.c.b16 %v2395_v61, %v2394_v34  ;;  %v2014_v34 = vsel %vm915_vm2, %v4985_v6, -inf }
 0x5d5   : > { %2003 = vmax.xlane.f32.xlu2 %v2002_v15 }
 0x5d6   : > { %3124 = vmatmul.msk.bf16.gmra.mxu1 %vm915_vm2, %v2401_v53  ;;  %v2127_v56 = vpop.xlane.xlu1 %2126 }
 0x5d7   : > { %3385 = vrcp.f32 %v2127_v56 }
 0x5d8   : > { %v4977_v55 = vpop.eup %3383 }
 0x5d9   : > { %v2179_v25 = vsel %vm915_vm2, %v4977_v55, 0.0 }
 0x5da   : > { %2012 = vmax.xlane.f32.xlu0 %v2011_v43 }
 0x5dd   : > { %2006 = vmax.xlane.f32.xlu2 %v2005_v1  ;;  %v3386_v37 = vpop.eup %3385 }
 0x5de   : > { %v2249_v9 = vmul.f32 %v3386_v37, %v4835_v19  ;;  %v2169_v48 = vpop.xlane.xlu1 %2168 }
 0x5df   : > { %v2157_v10 = vpop.xlane.xlu0 %2156 }
 0x5e0   : > { %v2281_v15 = vpack.c.bf16 %v2249_v9, %v2249_v9 }
 0x5e2   : > { %v2321_v52 = vunpack.c.l.b16 %v2281_v15 }
 0x5e5   : > { %2180 = vadd.xlane.f32.xlu2 %v2179_v25 }
 0x5e7   : > { %v2130_v40 = vpop.xlane.xlu2 %2129  ;;  %v1998_v11 = vpop.xlane.xlu0 %1997 }
 0x5e8   : > { %3387 = vrcp.f32 %v2130_v40  ;;  %v2046_v39 = vsub.f32 %v4856_v13, %v1998_v11  ;;  %2477 = vrot.lane.b32.xlu1 %v3771_v22, %s3505_s13  ;;  %v3491_v22 = vld [vmem:[%s5333_s6 + $0xf0] sm:$0xff] }
 0x5e9   : > { %v5000_v53 = vadd.f32 %v3491_v22, %v1891_v32 }
 0x5ea   : > { %v2101_v14 = vmul.f32 1.442695, %v2046_v39 }
 0x5ec   : > { %3389 = vpow2.f32 %v2101_v14  ;;  %v2041_v14 = vsub.f32 %v4671_v45, %v4826_v58  ;;  %v2044_v58 = vsub.f32 %v4795_v27, %v4917_v28 }
 0x5ed   : > { %2015 = vmax.xlane.f32.xlu2 %v2014_v34  ;;  %3391 = vrcp.f32 %v2169_v48 }
 0x5ee   : > { %v3388_v61 = vpop.eup %3387 }
 0x5ef   : > { %v4994_v50 = vpop.xlane.xlu2 %1994  ;;  %v2250_v13 = vmul.f32 %v3388_v61, %v4858_v54  ;;  %v2017_v54 = vsel %vm915_vm2, %v5000_v53, -inf  ;;  %v2091_v61 = vmul.f32 1.442695, %v2041_v14 }
 0x5f1   : > { %v2282_v19 = vpack.c.bf16 %v2250_v13, %v2250_v13 }
 0x5f2   : > { %v5002_v31 = vpop.eup %3389 }
 0x5f3   : > { %v2188_v57 = vsel %vm915_vm2, %v5002_v31, 0.0  ;;  %v2322_v23 = vunpack.c.l.b16 %v2282_v19  ;;  %v3392_v56 = vpop.eup %3391 }
 0x5f4   : > { %2189 = vadd.xlane.f32.xlu0 %v2188_v57  ;;  %v2263_v25 = vmul.f32 %v3392_v56, %v4841_v51 }
 0x5f5   : > { %2018 = vmax.xlane.f32.xlu2 %v2017_v54  ;;  %v2328_v43 = vpack.c.b16 %v2322_v23, %v2321_v52  ;;  %v2097_v54 = vmul.f32 1.442695, %v2044_v58 }
 0x5f6   : > { %v2295_v11 = vpack.c.bf16 %v2263_v25, %v2263_v25 }
 0x5f7   : > { %v2172_v1 = vpop.xlane.xlu2 %2171  ;;  %3120 = vmatmul.msk.bf16.gmra.mxu0 %vm915_vm2, %v2328_v43  ;;  %v2133_v16 = vpop.xlane.xlu1 %2132 }
 0x5f8   : > { %3393 = vrcp.f32 %v2172_v1 }
 0x5f9   : > { %3395 = vrcp.f32 %v2157_v10  ;;  %v5013_v10 = vunpack.c.l.b16 %v2295_v11 }
 0x5fa   : > { %v2484_v8 = vpop.permute.xlu0 %2483  ;;  %3397 = vrcp.f32 %v2133_v16 }
 0x5fb   : > { %2505 = vmatpush.bf16.msra.mxu2 %v2484_v8 }
 0x5fe   : > { %v3394_v40 = vpop.eup %3393 }
 0x5ff   : > { %v2264_v37 = vmul.f32 %v3394_v40, %v4876_v47  ;;  %v2160_v12 = vpop.xlane.xlu2 %2159  ;;  %v2136_v39 = vpop.xlane.xlu1 %2135 }
 0x600   : > { %v3396_v4 = vpop.eup %3395  ;;  %3399 = vrcp.f32 %v2160_v12 }
 0x601   : > { %v3398_v9 = vpop.eup %3397  ;;  %v2296_v32 = vpack.c.bf16 %v2264_v37, %v2264_v37  ;;  %3401 = vrcp.f32 %v2136_v39  ;;  %v2259_v51 = vmul.f32 %v3396_v4, %v4844_v42  ;;  %v3492_v39 = vld [vmem:[%s5333_s6 + $0xf8] sm:$0xff] }
 0x602   : > { %v2251_v48 = vmul.f32 %v3398_v9, %v4878_v3  ;;  %3403 = vpow2.f32 %v2091_v61  ;;  %v3182_v61 = vld [vmem:[%s5330_s3 + $0x8] sm:$0xff] }
 0x603   : > { %v5016_v34 = vunpack.c.l.b16 %v2296_v32  ;;  %v2291_v22 = vpack.c.bf16 %v2259_v51, %v2259_v51  ;;  %3405 = vpow2.f32 %v2097_v54  ;;  %2682 = vmatpush.bf16.msra.mxu0 %v3182_v61 }
 0x604   : > { %v2283_v19 = vpack.c.bf16 %v2251_v48, %v2251_v48 }
 0x605   : > { %v2473_v47 = vpack.c.b16 %v5016_v34, %v5013_v10  ;;  %v2396_v52 = vunpack.c.l.b16 %v2291_v22 }
 0x606   : > { %v3400_v13 = vpop.eup %3399  ;;  %v2323_v43 = vunpack.c.l.b16 %v2283_v19  ;;  %v3181_v19 = vld [vmem:[%s5330_s3] sm:$0xff] }
 0x607   : > { %v3402_v15 = vpop.eup %3401  ;;  %v2260_v45 = vmul.f32 %v3400_v13, %v4886_v0  ;;  %v2139_v27 = vpop.xlane.xlu2 %2138  ;;  %2825 = vmatpush.bf16.msrb.mxu1 %v3181_v19 }
 0x608   : > { %2554 = vrot.lane.b32.xlu0 %v3726_v38, %s3505_s13  ;;  %v2252_v42 = vmul.f32 %v3402_v15, %v4889_v59  ;;  %v5027_v56 = vpop.eup %3403  ;;  %v2045_v38 = vsub.f32 %v4869_v20, %v4994_v50  ;;  %v1892_v50 = vpop.f32.mrf.mxu3 }
 0x609   : > { %v2292_v57 = vpack.c.bf16 %v2260_v45, %v2260_v45  ;;  %v2173_v59 = vsel %vm915_vm2, %v5027_v56, 0.0  ;;  %v5035_v8 = vpop.eup %3405  ;;  %v1893_v37 = vadd.f32 %v4720_v36, %v1892_v50 }
 0x60a   : > { %v2284_v3 = vpack.c.bf16 %v2252_v42, %v2252_v42  ;;  %v2099_v28 = vmul.f32 1.442695, %v2045_v38  ;;  %v2182_v40 = vsel %vm915_vm2, %v5035_v8, 0.0 }
 0x60b   : > { %v2397_v23 = vunpack.c.l.b16 %v2292_v57  ;;  %v5047_v4 = vadd.f32 %v3492_v39, %v1893_v37 }
 0x60c   : > { %v2324_v1 = vunpack.c.l.b16 %v2284_v3  ;;  %3407 = vpow2.f32 %v2099_v28 }
 0x60d   : > { %v2402_v16 = vpack.c.b16 %v2397_v23, %v2396_v52  ;;  %v2020_v9 = vsel %vm915_vm2, %v5047_v4, -inf  ;;  %3409 = vrcp.f32 %v2139_v27 }
 0x60e   : > { %v2329_v0 = vpack.c.b16 %v2324_v1, %v2323_v43 }
 0x60f   : > { %3125 = vmatmul.msk.bf16.gmra.mxu1 %vm915_vm2, %v2402_v16  ;;  %v2480_v11 = vpop.permute.xlu2 %2479 }
 0x610   : > { %3121 = vmatmul.msk.bf16.gmra.mxu0 %vm915_vm2, %v2329_v0 }
 0x612   : > { %2174 = vadd.xlane.f32.xlu1 %v2173_v59  ;;  %v5039_v20 = vpop.eup %3407 }
 0x613   : > { %v2185_v12 = vsel %vm915_vm2, %v5039_v20, 0.0  ;;  %v3410_v13 = vpop.eup %3409 }
 0x614   : > { %v2253_v22 = vmul.f32 %v3410_v13, %v4898_v60 }
 0x616   : > { %v2285_v58 = vpack.c.bf16 %v2253_v22, %v2253_v22 }
 0x617   : > { %v2482_v25 = vpop.permute.xlu1 %2481 }
 0x618   : > { %2506 = vmatpush.bf16.msra.mxu2 %v2482_v25  ;;  %v2325_v3 = vunpack.c.l.b16 %v2285_v58  ;;  %v1594_v58 = vpack.c.bf16 %v4503_v41, %v4498_v33 }
 0x61a   : > { %2183 = vadd.xlane.f32.xlu1 %v2182_v40 }
 0x61c   : > { %2507 = vmatpush.bf16.msra.mxu2 %v2480_v11 }
 0x622   : > { %2186 = vadd.xlane.f32.xlu1 %v2185_v12 }
 0x625   : > { %v2163_v14 = vpop.xlane.xlu0 %2162 }
 0x62a   : > { %2021 = vmax.xlane.f32.xlu1 %v2020_v9  ;;  %v1592_v9 = vpack.c.bf16 %v4478_v62, %v4474_v44  ;;  %v1593_v62 = vpack.c.bf16 %v4493_v24, %v4486_v7 }
 0x62d   : > { %v2001_v32 = vpop.xlane.xlu0 %2000 }
 0x62e   : > { %v2047_v51 = vsub.f32 %v4922_v63, %v2001_v32 }
 0x630   : > { %v2103_v36 = vmul.f32 1.442695, %v2047_v51 }
 0x632   : > { %3411 = vpow2.f32 %v2103_v36 }
 0x635   : > { %v2142_v48 = vpop.xlane.xlu0 %2141 }
 0x636   : > { %3413 = vrcp.f32 %v2142_v48 }
 0x637   : > { %3415 = vrcp.f32 %v2163_v14 }
 0x638   : > { %v5055_v15 = vpop.eup %3411 }
 0x639   : > { %v2191_v45 = vsel %vm915_vm2, %v5055_v15, 0.0 }
 0x63a   : > { %2192 = vadd.xlane.f32.xlu0 %v2191_v45 }
 0x63c   : > { %v3414_v63 = vpop.eup %3413 }
 0x63d   : > { %v2254_v42 = vmul.f32 %v3414_v63, %v4928_v35  ;;  %v3416_v54 = vpop.eup %3415  ;;  %v2364_v35 = vpop.f32.mrf.mxu0 }
 0x63e   : > { %v2261_v43 = vmul.f32 %v3416_v54, %v4910_v29  ;;  %v2178_v12 = vpop.xlane.xlu0 %2177 }
 0x63f   : > { %v2286_v57 = vpack.c.bf16 %v2254_v42, %v2254_v42 }
 0x640   : > { %v2293_v38 = vpack.c.bf16 %v2261_v43, %v2261_v43 }
 0x641   : > { %v2326_v52 = vunpack.c.l.b16 %v2286_v57 }
 0x642   : > { %v2166_v23 = vpop.xlane.xlu1 %2165  ;;  %v2398_v25 = vunpack.c.l.b16 %v2293_v38 }
 0x643   : > { %3417 = vrcp.f32 %v2166_v23  ;;  %2556 = vrot.lane.b32.xlu1 %v5365_v5, %s3505_s13  ;;  %v2330_v60 = vpack.c.b16 %v2326_v52, %v2325_v3 }
 0x645   : > { %3122 = vmatmul.msk.bf16.gmra.mxu0 %vm915_vm2, %v2330_v60  ;;  %v2366_v5 = vpop.f32.mrf.mxu0 }
 0x646   : > { %v2603_v37 = vpack.c.bf16 %v2366_v5, %v2364_v35  ;;  %v2010_v51 = vpop.xlane.xlu0 %2009 }
 0x648   : > { %v2004_v1 = vpop.xlane.xlu2 %2003 }
 0x649   : > { %v3418_v16 = vpop.eup %3417  ;;  %v2048_v0 = vsub.f32 %v4952_v21, %v2004_v1  ;;  %v5404_v1 = vld [vmem:[#allocation16_spill] sm:$0xff] }
 0x64a   : > { %v2262_v27 = vmul.f32 %v3418_v16, %v4938_v30  ;;  %v5405_v16 = vld [vmem:[#allocation8_spill] sm:$0xff] }
 0x64b   : > { %v2105_v59 = vmul.f32 1.442695, %v2048_v0  ;;  %v1595_v0 = vpack.c.bf16 %v5405_v16, %v5404_v1 }
 0x64c   : > { %v2294_v28 = vpack.c.bf16 %v2262_v27, %v2262_v27 }
 0x64d   : > { %3419 = vpow2.f32 %v2105_v59 }
 0x64e   : > { %v2399_v40 = vunpack.c.l.b16 %v2294_v28  ;;  %2550 = vrot.lane.b32.xlu0 %v3708_v18, %s3505_s13  ;;  %v2013_v42 = vpop.xlane.xlu0 %2012 }
 0x650   : > { %v2007_v11 = vpop.xlane.xlu2 %2006  ;;  %v2403_v50 = vpack.c.b16 %v2399_v40, %v2398_v25 }
 0x651   : > { %v2049_v14 = vsub.f32 %v4971_v26, %v2007_v11  ;;  %v2050_v26 = vsub.f32 %v4944_v49, %v2010_v51 }
 0x652   : > { %3126 = vmatmul.msk.bf16.gmra.mxu1 %vm915_vm2, %v2403_v50  ;;  %v5127_v50 = vpop.f32.mrf.mxu1 }
 0x653   : > { %v5073_v29 = vpop.eup %3419  ;;  %v2107_v18 = vmul.f32 1.442695, %v2049_v14  ;;  %v2109_v13 = vmul.f32 1.442695, %v2050_v26 }
 0x654   : > { %v2194_v21 = vsel %vm915_vm2, %v5073_v29, 0.0 }
 0x655   : > { %2195 = vadd.xlane.f32.xlu2 %v2194_v21  ;;  %3139 = vmatmul.msk.bf16.vlgmr.msra.gmra.mxu0 %vm586_vm1, %v2603_v37  ;;  %3421 = vpow2.f32 %v2107_v18 }
 0x658   : > { %v2181_v30 = vpop.xlane.xlu2 %2180 }
 0x65a   : > { %v2478_v39 = vpop.permute.xlu1 %2477  ;;  %v2439_v26 = vpop.f32.mrf.mxu1 }
 0x65b   : > { %2508 = vmatpush.bf16.msra.mxu2 %v2478_v39  ;;  %v5088_v48 = vpop.eup %3421 }
 0x65c   : > { %v2197_v34 = vsel %vm915_vm2, %v5088_v48, 0.0 }
 0x65e   : > { %3127 = vmatmul.msk.bf16.vlgmr.msra.gmra.mxu2 %vm915_vm2, %v2473_v47 }
 0x65f   : > { %3189 = vmatpush.bf16.msrb.mxu2 %v3181_v19  ;;  %v2051_v19 = vsub.f32 %v4965_v46, %v2013_v42 }
 0x660   : > { %v2016_v32 = vpop.xlane.xlu2 %2015 }
 0x661   : > { %v2052_v36 = vsub.f32 %v4985_v6, %v2016_v32  ;;  %v2111_v52 = vmul.f32 1.442695, %v2051_v19  ;;  %v5407_v32 = vld [vmem:[#allocation20_spill] sm:$0xff] }
 0x662   : > { %3159 = vmatmul.msk.bf16.vlgmr.msrb.gmra.mxu1 %vm586_vm1, %v1592_v9  ;;  %v5406_v9 = vld [vmem:[#allocation12_spill] sm:$0xff] }
 0x663   : > { %v2113_v61 = vmul.f32 1.442695, %v2052_v36  ;;  %v1596_v51 = vpack.c.bf16 %v5407_v32, %v5406_v9  ;;  %v5176_v32 = vld [vmem:[%s5331_s4] ss:$0 sm:$0xff] }
 0x665   : > { %3423 = vpow2.f32 %v2113_v61 }
 0x666   : > { %3425 = vpow2.f32 %v2109_v13 }
 0x668   : > { %v2019_v10 = vpop.xlane.xlu2 %2018 }
 0x669   : > { %v2053_v44 = vsub.f32 %v5000_v53, %v2019_v10 }
 0x66b   : > { %v5097_v49 = vpop.eup %3423  ;;  %v2115_v6 = vmul.f32 1.442695, %v2053_v44 }
 0x66c   : > { %v5100_v47 = vpop.eup %3425  ;;  %v2206_v45 = vsel %vm915_vm2, %v5097_v49, 0.0 }
 0x66d   : > { %2552 = vrot.lane.b32.xlu2 %v5366_v2, %s3505_s13  ;;  %2198 = vadd.xlane.f32.xlu1 %v2197_v34  ;;  %3427 = vpow2.f32 %v2115_v6  ;;  %v2200_v2 = vsel %vm915_vm2, %v5100_v47, 0.0 }
 0x66e   : > { %3429 = vrcp.f32 %v2178_v12  ;;  %v2190_v12 = vpop.xlane.xlu0 %2189 }
 0x672   : > { %3160 = vmatmul.msk.bf16.gmra.mxu1 %vm586_vm1, %v1593_v62  ;;  %v5141_v62 = vpop.f32.mrf.mxu1 }
 0x673   : > { %v5106_v53 = vpop.eup %3427 }
 0x674   : > { %v2369_v22 = vpop.f32.mrf.mxu0  ;;  %v2209_v63 = vsel %vm915_vm2, %v5106_v53, 0.0  ;;  %v3430_v3 = vpop.eup %3429 }
 0x675   : > { %2207 = vadd.xlane.f32.xlu1 %v2206_v45  ;;  %v2266_v23 = vmul.f32 %v3430_v3, %v4932_v17  ;;  %v5411_v3 = vld [vmem:[#allocation26_spill] sm:$0xff] }
 0x677   : > { %v2298_v60 = vpack.c.bf16 %v2266_v23, %v2266_v23 }
 0x678   : > { %2201 = vadd.xlane.f32.xlu0 %v2200_v2  ;;  %v5408_v2 = vld [vmem:[#allocation22_spill] sm:$0xff] }
 0x679   : > { %v2468_v46 = vunpack.c.l.b16 %v2298_v60  ;;  %v5412_v60 = vld [vmem:[#allocation14_spill] sm:$0xff] }
 0x67a   : > { %v2555_v42 = vpop.permute.xlu0 %2554 }
 0x67c   : > { %v2371_v7 = vpop.f32.mrf.mxu0 }
 0x67d   : > { %v2604_v24 = vpack.c.bf16 %v2371_v7, %v2369_v22  ;;  %v5409_v7 = vld [vmem:[#allocation24_spill] sm:$0xff] }
 0x67f   : > { %3140 = vmatmul.msk.bf16.gmra.mxu0 %vm586_vm1, %v2604_v24  ;;  %v1597_v24 = vpack.c.bf16 %v5409_v7, %v5408_v2 }
 0x680   : > { %2210 = vadd.xlane.f32.xlu0 %v2209_v63 }
 0x682   : > { %3161 = vmatmul.msk.bf16.gmra.mxu1 %vm586_vm1, %v1594_v58  ;;  %v5146_v58 = vpop.f32.mrf.mxu1 }
 0x685   : > { %v2175_v57 = vpop.xlane.xlu1 %2174 }
 0x686   : > { %3431 = vrcp.f32 %v2175_v57  ;;  %v5410_v57 = vld [vmem:[#allocation25_spill] sm:$0xff] }
 0x687   : > { %3433 = vpow2.f32 %v2111_v52  ;;  %v1598_v52 = vpack.c.bf16 %v5411_v3, %v5410_v57 }
 0x68c   : > { %v3432_v54 = vpop.eup %3431  ;;  %v5149_v19 = vpop.f32.mrf.mxu1 }
 0x68d   : > { %v2265_v43 = vmul.f32 %v3432_v54, %v5027_v56  ;;  %v2374_v35 = vpop.f32.mrf.mxu0  ;;  %v2184_v33 = vpop.xlane.xlu1 %2183 }
 0x68e   : > { %3435 = vrcp.f32 %v2184_v33  ;;  %v5119_v27 = vpop.eup %3433 }
 0x68f   : > { %v2297_v41 = vpack.c.bf16 %v2265_v43, %v2265_v43  ;;  %3437 = vrcp.f32 %v2181_v30  ;;  %v2203_v25 = vsel %vm915_vm2, %v5119_v27, 0.0  ;;  %v5413_v43 = vld [vmem:[#allocation7_spill] sm:$0xff] }
 0x691   : > { %v2467_v38 = vunpack.c.l.b16 %v2297_v41 }
 0x692   : > { %3162 = vmatmul.msk.bf16.gmra.mxu1 %vm586_vm1, %v1595_v0 }
 0x693   : > { %v2474_v17 = vpack.c.b16 %v2468_v46, %v2467_v38 }
 0x694   : > { %v3436_v59 = vpop.eup %3435  ;;  %v5157_v33 = vpop.f32.mrf.mxu1 }
 0x695   : > { %v2376_v28 = vpop.f32.mrf.mxu0  ;;  %3128 = vmatmul.msk.bf16.gmra.mxu2 %vm915_vm2, %v2474_v17  ;;  %v2187_v56 = vpop.xlane.xlu1 %2186  ;;  %v2268_v11 = vmul.f32 %v3436_v59, %v5035_v8  ;;  %v5414_v59 = vld [vmem:[#allocation27_spill] sm:$0xff] }
 0x696   : > { %v3438_v40 = vpop.eup %3437  ;;  %v2605_v5 = vpack.c.bf16 %v2376_v28, %v2374_v35  ;;  %2204 = vadd.xlane.f32.xlu2 %v2203_v25  ;;  %3439 = vrcp.f32 %v2187_v56  ;;  %v1600_v35 = vpack.c.bf16 %v5413_v43, %v5412_v60  ;;  %v5415_v28 = vld [vmem:[#allocation28_spill] sm:$0xff]  ;;  %v5422_v43 = vld [vmem:[#allocation15_spill] sm:$0xff] }
 0x697   : > { %v2267_v37 = vmul.f32 %v3438_v40, %v4977_v55  ;;  %v2300_v21 = vpack.c.bf16 %v2268_v11, %v2268_v11  ;;  %3441 = vrcp.f32 %v2190_v12  ;;  %v1599_v56 = vpack.c.bf16 %v5415_v28, %v5414_v59 }
 0x698   : > { %3141 = vmatmul.msk.bf16.gmra.mxu0 %vm586_vm1, %v2605_v5 }
 0x699   : > { %v2299_v30 = vpack.c.bf16 %v2267_v37, %v2267_v37  ;;  %v2470_v18 = vunpack.c.l.b16 %v2300_v21  ;;  %v5416_v37 = vld [vmem:[#allocation5_spill] sm:$0xff]  ;;  %v5417_v21 = vld [vmem:[#allocation3_spill] sm:$0xff] }
 0x69b   : > { %v2469_v8 = vunpack.c.l.b16 %v2299_v30 }
 0x69c   : > { %v3440_v55 = vpop.eup %3439 }
 0x69d   : > { %v2022_v39 = vpop.xlane.xlu1 %2021  ;;  %v2475_v61 = vpack.c.b16 %v2470_v18, %v2469_v8  ;;  %v3442_v13 = vpop.eup %3441  ;;  %v2269_v10 = vmul.f32 %v3440_v55, %v5039_v20  ;;  %v5418_v8 = vld [vmem:[#allocation4_spill] sm:$0xff] }
 0x69e   : > { %v2054_v14 = vsub.f32 %v5047_v4, %v2022_v39  ;;  %v2270_v4 = vmul.f32 %v3442_v13, %v5002_v31 }
 0x69f   : > { %v2301_v6 = vpack.c.bf16 %v2269_v10, %v2269_v10 }
 0x6a0   : > { %v2117_v36 = vmul.f32 1.442695, %v2054_v14  ;;  %v2302_v22 = vpack.c.bf16 %v2270_v4, %v2270_v4 }
 0x6a1   : > { %v2471_v45 = vunpack.c.l.b16 %v2301_v6  ;;  %v2608_v6 = vpack.c.bf16 %v5146_v58, %v5141_v62 }
 0x6a2   : > { %3443 = vpow2.f32 %v2117_v36  ;;  %3163 = vmatmul.msk.bf16.gmra.mxu1 %vm586_vm1, %v1596_v51  ;;  %v2472_v63 = vunpack.c.l.b16 %v2302_v22 }
 0x6a4   : > { %v2476_v20 = vpack.c.b16 %v2472_v63, %v2471_v45  ;;  %v5421_v63 = vld [vmem:[#allocation19_spill] sm:$0xff] }
 0x6a5   : > { %3129 = vmatmul.msk.bf16.gmra.mxu2 %vm915_vm2, %v2475_v61 }
 0x6a8   : > { %v5136_v34 = vpop.eup %3443 }
 0x6a9   : > { %v2212_v44 = vsel %vm915_vm2, %v5136_v34, 0.0 }
 0x6aa   : > { %2213 = vadd.xlane.f32.xlu2 %v2212_v44 }
 0x6ad   : > { %v2193_v23 = vpop.xlane.xlu0 %2192 }
 0x6ae   : > { %3445 = vrcp.f32 %v2193_v23  ;;  %v2609_v23 = vpack.c.bf16 %v5157_v33, %v5149_v19 }
 0x6b2   : > { %3164 = vmatmul.msk.bf16.gmra.mxu1 %vm586_vm1, %v1597_v24  ;;  %v5420_v24 = vld [vmem:[#allocation17_spill] sm:$0xff] }
 0x6b4   : > { %v3446_v1 = vpop.eup %3445 }
 0x6b5   : > { %3130 = vmatmul.msk.bf16.gmra.mxu2 %vm915_vm2, %v2476_v20  ;;  %v2557_v31 = vpop.permute.xlu1 %2556  ;;  %v2271_v46 = vmul.f32 %v3446_v1, %v5055_v15  ;;  %v1601_v15 = vpack.c.bf16 %v5417_v21, %v5416_v37  ;;  %v1603_v20 = vpack.c.bf16 %v5421_v63, %v5420_v24  ;;  %v5424_v37 = vld [vmem:[#allocation2_spill] sm:$0xff] }
 0x6b6   : > { %2578 = vmatpush.bf16.msra.mxu3 %v2557_v31  ;;  %v5425_v21 = vld [vmem:[#allocation10_spill] sm:$0xff] }
 0x6b7   : > { %v2303_v25 = vpack.c.bf16 %v2271_v46, %v2271_v46 }
 0x6b9   : > { %v2538_v30 = vunpack.c.l.b16 %v2303_v25 }
 0x6ba   : > { %2579 = vmatpush.bf16.msra.mxu3 %v2555_v42 }
 0x6c0   : > { %v2551_v12 = vpop.permute.xlu0 %2550 }
 0x6c2   : > { %v2379_v54 = vpop.f32.mrf.mxu0  ;;  %3165 = vmatmul.msk.bf16.gmra.mxu1 %vm586_vm1, %v1598_v52 }
 0x6c5   : > { %3167 = vmatmul.msk.bf16.vlgmr.msrb.gmra.mxu2 %vm586_vm1, %v1600_v35  ;;  %v5423_v35 = vld [vmem:[#allocation9_spill] sm:$0xff] }
 0x6c8   : > { %v2196_v41 = vpop.xlane.xlu2 %2195 }
 0x6c9   : > { %3447 = vrcp.f32 %v2196_v41  ;;  %v1604_v41 = vpack.c.bf16 %v5423_v35, %v5422_v43 }
 0x6ca   : > { %v2381_v16 = vpop.f32.mrf.mxu0 }
 0x6cb   : > { %v2606_v0 = vpack.c.bf16 %v2381_v16, %v2379_v54 }
 0x6cd   : > { %3142 = vmatmul.msk.bf16.gmra.mxu0 %vm586_vm1, %v2606_v0 }
 0x6cf   : > { %v3448_v38 = vpop.eup %3447  ;;  %v5161_v17 = vpop.f32.mrf.mxu1 }
 0x6d0   : > { %v2272_v40 = vmul.f32 %v3448_v38, %v5073_v29  ;;  %v2553_v5 = vpop.permute.xlu2 %2552  ;;  %v2607_v29 = vpack.c.bf16 %v2439_v26, %v5127_v50  ;;  %v5419_v26 = vld [vmem:[#allocation11_spill] sm:$0xff] }
 0x6d1   : > { %2580 = vmatpush.bf16.msra.mxu3 %v2553_v5  ;;  %v1602_v61 = vpack.c.bf16 %v5419_v26, %v5418_v8 }
 0x6d2   : > { %v2304_v11 = vpack.c.bf16 %v2272_v40, %v2272_v40  ;;  %3166 = vmatmul.msk.bf16.gmra.mxu1 %vm586_vm1, %v1599_v56  ;;  %v2684_v9 = vpop.f32.mrf.mxu0 }
 0x6d4   : > { %v2539_v39 = vunpack.c.l.b16 %v2304_v11 }
 0x6d5   : > { %2581 = vmatpush.bf16.msra.mxu3 %v2551_v12  ;;  %3168 = vmatmul.msk.bf16.gmra.mxu2 %vm586_vm1, %v1601_v15  ;;  %v1605_v15 = vpack.c.bf16 %v5425_v21, %v5424_v37 }
 0x6d6   : > { %v2546_v14 = vpack.c.b16 %v2539_v39, %v2538_v30 }
 0x6d7   : > { %v2454_v18 = vpop.f32.mrf.mxu1 }
 0x6d8   : > { %3131 = vmatmul.msk.bf16.vlgmr.msra.gmra.mxu3 %vm915_vm2, %v2546_v14  ;;  %v2610_v59 = vpack.c.bf16 %v2454_v18, %v5161_v17 }
 0x6da   : > { %v2686_v13 = vpop.f32.mrf.mxu0 }
 0x6dd   : > { %3143 = vmatmul.msk.bf16.gmra.mxu0 %vm586_vm1, %v2607_v29 }
 0x6df   : > { %v2827_v51 = vpop.f32.mrf.mxu1 }
 0x6e0   : > { %v2828_v36 = vadd.f32 %v2827_v51, %v2684_v9  ;;  %v2199_v55 = vpop.xlane.xlu1 %2198 }
 0x6e1   : > { %3449 = vrcp.f32 %v2199_v55  ;;  %v2510_v19 = vpop.f32.mrf.mxu2 }
 0x6e2   : > { %v2911_v50 = vadd.f32 %v5176_v32, %v2828_v36 }
 0x6e4   : > { %2943 = vst.msk [vmem:[%s5183_s21] sm:$0xff] %vm348_vm0, %v2911_v50 }
 0x6e5   : > { %3169 = vmatmul.msk.bf16.gmra.mxu2 %vm586_vm1, %v1602_v61 }
 0x6e7   : > { %v2829_v10 = vpop.f32.mrf.mxu1  ;;  %v3450_v45 = vpop.eup %3449 }
 0x6e8   : > { %v2830_v4 = vadd.f32 %v2829_v10, %v2686_v13  ;;  %v2273_v2 = vmul.f32 %v3450_v45, %v5088_v48  ;;  %v5426_v10 = vld [vmem:[#allocation13_spill] sm:$0xff] }
 0x6e9   : > { %v2512_v25 = vpop.f32.mrf.mxu2 }
 0x6ea   : > { %v2912_v44 = vadd.f32 %v5176_v32, %v2830_v4  ;;  %v2305_v31 = vpack.c.bf16 %v2273_v2, %v2273_v2  ;;  %v5427_v4 = vld [vmem:[#allocation18_spill] sm:$0xff] }
 0x6eb   : > { %v2202_v22 = vpop.xlane.xlu0 %2201 }
 0x6ec   : > { %2944 = vst.msk [vmem:[%s5183_s21 + $0x8] sm:$0xff] %vm348_vm0, %v2912_v44  ;;  %3451 = vrcp.f32 %v2202_v22  ;;  %v2540_v62 = vunpack.c.l.b16 %v2305_v31  ;;  %v1606_v44 = vpack.c.bf16 %v5427_v4, %v5426_v10 }
 0x6ed   : > { %3144 = vmatmul.msk.bf16.gmra.mxu0 %vm586_vm1, %v2608_v6 }
 0x6ef   : > { %v2832_v52 = vpop.f32.mrf.mxu1 }
 0x6f2   : > { %v3452_v7 = vpop.eup %3451 }
 0x6f3   : > { %v2274_v42 = vmul.f32 %v3452_v7, %v5100_v47  ;;  %v2208_v47 = vpop.xlane.xlu1 %2207  ;;  %v2211_v39 = vpop.xlane.xlu0 %2210 }
 0x6f4   : > { %3453 = vrcp.f32 %v2208_v47 }
 0x6f5   : > { %v2306_v57 = vpack.c.bf16 %v2274_v42, %v2274_v42  ;;  %3170 = vmatmul.msk.bf16.gmra.mxu2 %vm586_vm1, %v1603_v20  ;;  %v5429_v42 = vld [vmem:[#allocation23_spill] sm:$0xff] }
 0x6f7   : > { %v2541_v58 = vunpack.c.l.b16 %v2306_v57  ;;  %v2834_v1 = vpop.f32.mrf.mxu1 }
 0x6f9   : > { %v2547_v3 = vpack.c.b16 %v2541_v58, %v2540_v62 }
 0x6fa   : > { %v3454_v38 = vpop.eup %3453 }
 0x6fb   : > { %3132 = vmatmul.msk.bf16.gmra.mxu3 %vm915_vm2, %v2547_v3  ;;  %v2276_v28 = vmul.f32 %v3454_v38, %v5097_v49 }
 0x6fc   : > { %v2689_v48 = vpop.f32.mrf.mxu0 }
 0x6fd   : > { %v2833_v54 = vadd.f32 %v2832_v52, %v2689_v48  ;;  %3145 = vmatmul.msk.bf16.gmra.mxu0 %vm586_vm1, %v2609_v23  ;;  %v2308_v40 = vpack.c.bf16 %v2276_v28, %v2276_v28 }
 0x6ff   : > { %v2913_v60 = vadd.f32 %v5176_v32, %v2833_v54  ;;  %v2837_v11 = vpop.f32.mrf.mxu1  ;;  %v2543_v12 = vunpack.c.l.b16 %v2308_v40 }
 0x701   : > { %2945 = vst.msk [vmem:[%s5183_s21 + $0x10] sm:$0xff] %vm348_vm0, %v2913_v60 }
 0x704   : > { %v2691_v16 = vpop.f32.mrf.mxu0 }
 0x705   : > { %v2835_v0 = vadd.f32 %v2834_v1, %v2691_v16  ;;  %3171 = vmatmul.msk.bf16.gmra.mxu2 %vm586_vm1, %v1604_v41 }
 0x707   : > { %v2914_v33 = vadd.f32 %v5176_v32, %v2835_v0  ;;  %v2839_v51 = vpop.f32.mrf.mxu1 }
 0x709   : > { %2946 = vst.msk [vmem:[%s5183_s21 + $0x18] sm:$0xff] %vm348_vm0, %v2914_v33  ;;  %v2205_v46 = vpop.xlane.xlu2 %2204 }
 0x70a   : > { %3455 = vrcp.f32 %v2205_v46 }
 0x70b   : > { %3457 = vrcp.f32 %v2211_v39 }
 0x70d   : > { %3146 = vmatmul.msk.bf16.gmra.mxu0 %vm586_vm1, %v2610_v59 }
 0x710   : > { %v3456_v56 = vpop.eup %3455 }
 0x711   : > { %v2275_v5 = vmul.f32 %v3456_v56, %v5119_v27  ;;  %v2611_v27 = vpack.c.bf16 %v2512_v25, %v2510_v19  ;;  %v3458_v8 = vpop.eup %3457 }
 0x712   : > { %v2277_v13 = vmul.f32 %v3458_v8, %v5106_v53  ;;  %v5428_v53 = vld [vmem:[#allocation21_spill] sm:$0xff] }
 0x713   : > { %v2307_v30 = vpack.c.bf16 %v2275_v5, %v2275_v5  ;;  %v1607_v57 = vpack.c.bf16 %v5429_v42, %v5428_v53 }
 0x714   : > { %v2309_v22 = vpack.c.bf16 %v2277_v13, %v2277_v13 }
 0x715   : > { %v2542_v14 = vunpack.c.l.b16 %v2307_v30  ;;  %v2694_v29 = vpop.f32.mrf.mxu0  ;;  %3172 = vmatmul.msk.bf16.gmra.mxu2 %vm586_vm1, %v1605_v15 }
 0x716   : > { %v2838_v49 = vadd.f32 %v2837_v11, %v2694_v29  ;;  %v2544_v7 = vunpack.c.l.b16 %v2309_v22 }
 0x717   : > { %v2548_v17 = vpack.c.b16 %v2543_v12, %v2542_v14 }
 0x718   : > { %v2915_v18 = vadd.f32 %v5176_v32, %v2838_v49  ;;  %v2515_v9 = vpop.f32.mrf.mxu2 }
 0x719   : > { %3133 = vmatmul.msk.bf16.gmra.mxu3 %vm915_vm2, %v2548_v17 }
 0x71a   : > { %2947 = vst.msk [vmem:[%s5183_s21 + $0x20] sm:$0xff] %vm348_vm0, %v2915_v18 }
 0x71d   : > { %v2696_v36 = vpop.f32.mrf.mxu0  ;;  %3147 = vmatmul.msk.bf16.gmra.mxu0 %vm586_vm1, %v2611_v27  ;;  %v2214_v50 = vpop.xlane.xlu2 %2213 }
 0x71e   : > { %v2840_v26 = vadd.f32 %v2839_v51, %v2696_v36  ;;  %3459 = vrcp.f32 %v2214_v50 }
 0x720   : > { %v2916_v61 = vadd.f32 %v5176_v32, %v2840_v26  ;;  %v2517_v55 = vpop.f32.mrf.mxu2 }
 0x721   : > { %v2612_v20 = vpack.c.bf16 %v2517_v55, %v2515_v9 }
 0x722   : > { %2948 = vst.msk [vmem:[%s5183_s21 + $0x28] sm:$0xff] %vm348_vm0, %v2916_v61 }
 0x724   : > { %v3460_v6 = vpop.eup %3459 }
 0x725   : > { %v2278_v45 = vmul.f32 %v3460_v6, %v5136_v34  ;;  %3173 = vmatmul.msk.bf16.gmra.mxu2 %vm586_vm1, %v1606_v44  ;;  %v2842_v34 = vpop.f32.mrf.mxu1 }
 0x727   : > { %v2310_v2 = vpack.c.bf16 %v2278_v45, %v2278_v45 }
 0x728   : > { %v2520_v63 = vpop.f32.mrf.mxu2 }
 0x729   : > { %v2545_v24 = vunpack.c.l.b16 %v2310_v2 }
 0x72b   : > { %v2549_v31 = vpack.c.b16 %v2545_v24, %v2544_v7 }
 0x72d   : > { %3134 = vmatmul.msk.bf16.gmra.mxu3 %vm915_vm2, %v2549_v31  ;;  %3148 = vmatmul.msk.bf16.gmra.mxu0 %vm586_vm1, %v2612_v20  ;;  %v2844_v52 = vpop.f32.mrf.mxu1 }
 0x730   : > { %v2522_v62 = vpop.f32.mrf.mxu2 }
 0x731   : > { %v2613_v58 = vpack.c.bf16 %v2522_v62, %v2520_v63 }
 0x735   : > { %3174 = vmatmul.msk.bf16.gmra.mxu2 %vm586_vm1, %v1607_v57  ;;  %v2847_v47 = vpop.f32.mrf.mxu1 }
 0x738   : > { %v2525_v3 = vpop.f32.mrf.mxu2 }
 0x73d   : > { %3149 = vmatmul.msk.bf16.gmra.mxu0 %vm586_vm1, %v2613_v58  ;;  %v2849_v16 = vpop.f32.mrf.mxu1 }
 0x740   : > { %v2527_v23 = vpop.f32.mrf.mxu2 }
 0x741   : > { %v2614_v54 = vpack.c.bf16 %v2527_v23, %v2525_v3 }
 0x745   : > { %v2852_v38 = vpop.f32.mrf.mxu1 }
 0x748   : > { %v2867_v55 = vpop.f32.mrf.mxu2 }
 0x74a   : > { %v2699_v48 = vpop.f32.mrf.mxu0 }
 0x74b   : > { %v2843_v60 = vadd.f32 %v2842_v34, %v2699_v48 }
 0x74d   : > { %v2917_v43 = vadd.f32 %v5176_v32, %v2843_v60  ;;  %3150 = vmatmul.msk.bf16.gmra.mxu0 %vm586_vm1, %v2614_v54  ;;  %v2854_v5 = vpop.f32.mrf.mxu1 }
 0x74f   : > { %2949 = vst.msk [vmem:[%s5183_s21 + $0x30] sm:$0xff] %vm348_vm0, %v2917_v43 }
 0x750   : > { %v2869_v22 = vpop.f32.mrf.mxu2 }
 0x752   : > { %v2701_v35 = vpop.f32.mrf.mxu0 }
 0x753   : > { %v2845_v41 = vadd.f32 %v2844_v52, %v2701_v35 }
 0x755   : > { %v2918_v1 = vadd.f32 %v5176_v32, %v2845_v41  ;;  %v2857_v12 = vpop.f32.mrf.mxu1 }
 0x757   : > { %2950 = vst.msk [vmem:[%s5183_s21 + $0x38] sm:$0xff] %vm348_vm0, %v2918_v1 }
 0x758   : > { %v2872_v63 = vpop.f32.mrf.mxu2 }
 0x75a   : > { %v2704_v0 = vpop.f32.mrf.mxu0 }
 0x75b   : > { %v2848_v19 = vadd.f32 %v2847_v47, %v2704_v0  ;;  %v2583_v33 = vpop.f32.mrf.mxu3 }
 0x75d   : > { %v2919_v46 = vadd.f32 %v5176_v32, %v2848_v19  ;;  %v2859_v17 = vpop.f32.mrf.mxu1 }
 0x75f   : > { %2951 = vst.msk [vmem:[%s5183_s21 + $0x40] sm:$0xff] %vm348_vm0, %v2919_v46 }
 0x760   : > { %v2874_v62 = vpop.f32.mrf.mxu2 }
 0x762   : > { %v2706_v59 = vpop.f32.mrf.mxu0 }
 0x763   : > { %v2850_v28 = vadd.f32 %v2849_v16, %v2706_v59  ;;  %v2585_v56 = vpop.f32.mrf.mxu3 }
 0x764   : > { %v2615_v25 = vpack.c.bf16 %v2585_v56, %v2583_v33 }
 0x765   : > { %v2920_v40 = vadd.f32 %v5176_v32, %v2850_v28  ;;  %v2862_v8 = vpop.f32.mrf.mxu1 }
 0x766   : > { %3151 = vmatmul.msk.bf16.gmra.mxu0 %vm586_vm1, %v2615_v25 }
 0x767   : > { %2952 = vst.msk [vmem:[%s5183_s21 + $0x48] sm:$0xff] %vm348_vm0, %v2920_v40 }
 0x768   : > { %v2877_v54 = vpop.f32.mrf.mxu2 }
 0x76a   : > { %v2709_v11 = vpop.f32.mrf.mxu0 }
 0x76b   : > { %v2853_v37 = vadd.f32 %v2852_v38, %v2709_v11 }
 0x76d   : > { %v2921_v21 = vadd.f32 %v5176_v32, %v2853_v37  ;;  %v2864_v10 = vpop.f32.mrf.mxu1 }
 0x76f   : > { %2953 = vst.msk [vmem:[%s5183_s21 + $0x50] sm:$0xff] %vm348_vm0, %v2921_v21 }
 0x770   : > { %v2879_v16 = vpop.f32.mrf.mxu2 }
 0x772   : > { %v2711_v15 = vpop.f32.mrf.mxu0 }
 0x773   : > { %v2855_v30 = vadd.f32 %v2854_v5, %v2711_v15 }
 0x775   : > { %v2922_v39 = vadd.f32 %v5176_v32, %v2855_v30 }
 0x777   : > { %2954 = vst.msk [vmem:[%s5183_s21 + $0x58] sm:$0xff] %vm348_vm0, %v2922_v39 }
 0x778   : > { %v2882_v46 = vpop.f32.mrf.mxu2 }
 0x77a   : > { %v2714_v14 = vpop.f32.mrf.mxu0 }
 0x77b   : > { %v2858_v29 = vadd.f32 %v2857_v12, %v2714_v14 }
 0x77d   : > { %v2923_v49 = vadd.f32 %v5176_v32, %v2858_v29 }
 0x77e   : > { %v2588_v18 = vpop.f32.mrf.mxu3 }
 0x77f   : > { %2955 = vst.msk [vmem:[%s5183_s21 + $0x60] sm:$0xff] %vm348_vm0, %v2923_v49 }
 0x780   : > { %v2884_v56 = vpop.f32.mrf.mxu2 }
 0x782   : > { %v2716_v9 = vpop.f32.mrf.mxu0 }
 0x783   : > { %v2860_v27 = vadd.f32 %v2859_v17, %v2716_v9 }
 0x785   : > { %v2924_v51 = vadd.f32 %v5176_v32, %v2860_v27 }
 0x786   : > { %v2590_v36 = vpop.f32.mrf.mxu3 }
 0x787   : > { %2956 = vst.msk [vmem:[%s5183_s21 + $0x68] sm:$0xff] %vm348_vm0, %v2924_v51  ;;  %v2616_v50 = vpack.c.bf16 %v2590_v36, %v2588_v18 }
 0x788   : > { %v2887_v11 = vpop.f32.mrf.mxu2 }
 0x789   : > { %3152 = vmatmul.msk.bf16.gmra.mxu0 %vm586_vm1, %v2616_v50 }
 0x78a   : > { %v2719_v26 = vpop.f32.mrf.mxu0 }
 0x78b   : > { %v2863_v61 = vadd.f32 %v2862_v8, %v2719_v26 }
 0x78d   : > { %v2925_v13 = vadd.f32 %v5176_v32, %v2863_v61 }
 0x78f   : > { %2957 = vst.msk [vmem:[%s5183_s21 + $0x70] sm:$0xff] %vm348_vm0, %v2925_v13 }
 0x790   : > { %v2889_v30 = vpop.f32.mrf.mxu2 }
 0x792   : > { %v2721_v4 = vpop.f32.mrf.mxu0 }
 0x793   : > { %v2865_v44 = vadd.f32 %v2864_v10, %v2721_v4 }
 0x795   : > { %v2926_v6 = vadd.f32 %v5176_v32, %v2865_v44 }
 0x797   : > { %2958 = vst.msk [vmem:[%s5183_s21 + $0x78] sm:$0xff] %vm348_vm0, %v2926_v6 }
 0x798   : > { %v2892_v29 = vpop.f32.mrf.mxu2 }
 0x79a   : > { %v2724_v45 = vpop.f32.mrf.mxu0 }
 0x79b   : > { %v2868_v2 = vadd.f32 %v2867_v55, %v2724_v45 }
 0x79c   : > { %v2593_v7 = vpop.f32.mrf.mxu3 }
 0x79d   : > { %v2927_v24 = vadd.f32 %v5176_v32, %v2868_v2 }
 0x79f   : > { %2959 = vst.msk [vmem:[%s5183_s21 + $0x80] sm:$0xff] %vm348_vm0, %v2927_v24 }
 0x7a0   : > { %v2894_v9 = vpop.f32.mrf.mxu2 }
 0x7a2   : > { %v2726_v20 = vpop.f32.mrf.mxu0 }
 0x7a3   : > { %v2870_v31 = vadd.f32 %v2869_v22, %v2726_v20 }
 0x7a4   : > { %v2595_v53 = vpop.f32.mrf.mxu3 }
 0x7a5   : > { %v2928_v42 = vadd.f32 %v5176_v32, %v2870_v31  ;;  %v2617_v57 = vpack.c.bf16 %v2595_v53, %v2593_v7 }
 0x7a7   : > { %2960 = vst.msk [vmem:[%s5183_s21 + $0x88] sm:$0xff] %vm348_vm0, %v2928_v42  ;;  %3153 = vmatmul.msk.bf16.gmra.mxu0 %vm586_vm1, %v2617_v57 }
 0x7a8   : > { %v2897_v50 = vpop.f32.mrf.mxu2 }
 0x7aa   : > { %v2729_v34 = vpop.f32.mrf.mxu0 }
 0x7ab   : > { %v2873_v58 = vadd.f32 %v2872_v63, %v2729_v34 }
 0x7ad   : > { %v2929_v3 = vadd.f32 %v5176_v32, %v2873_v58 }
 0x7af   : > { %2961 = vst.msk [vmem:[%s5183_s21 + $0x90] sm:$0xff] %vm348_vm0, %v2929_v3 }
 0x7b0   : > { %v2598_v52 = vpop.f32.mrf.mxu3  ;;  %v2899_v55 = vpop.f32.mrf.mxu2 }
 0x7b2   : > { %v2731_v23 = vpop.f32.mrf.mxu0 }
 0x7b3   : > { %v2875_v48 = vadd.f32 %v2874_v62, %v2731_v23 }
 0x7b5   : > { %v2930_v60 = vadd.f32 %v5176_v32, %v2875_v48 }
 0x7b7   : > { %2962 = vst.msk [vmem:[%s5183_s21 + $0x98] sm:$0xff] %vm348_vm0, %v2930_v60 }
 0x7b8   : > { %v2600_v47 = vpop.f32.mrf.mxu3  ;;  %v2902_v44 = vpop.f32.mrf.mxu2 }
 0x7b9   : > { %v2618_v43 = vpack.c.bf16 %v2600_v47, %v2598_v52 }
 0x7ba   : > { %v2734_v35 = vpop.f32.mrf.mxu0 }
 0x7bb   : > { %v2878_v41 = vadd.f32 %v2877_v54, %v2734_v35  ;;  %3154 = vmatmul.msk.bf16.gmra.mxu0 %vm586_vm1, %v2618_v43 }
 0x7bd   : > { %v2931_v1 = vadd.f32 %v5176_v32, %v2878_v41 }
 0x7bf   : > { %2963 = vst.msk [vmem:[%s5183_s21 + $0xa0] sm:$0xff] %vm348_vm0, %v2931_v1 }
 0x7c0   : > { %v2904_v2 = vpop.f32.mrf.mxu2 }
 0x7c2   : > { %v2736_v0 = vpop.f32.mrf.mxu0 }
 0x7c3   : > { %v2880_v19 = vadd.f32 %v2879_v16, %v2736_v0 }
 0x7c5   : > { %v2932_v33 = vadd.f32 %v5176_v32, %v2880_v19 }
 0x7c7   : > { %2964 = vst.msk [vmem:[%s5183_s21 + $0xa8] sm:$0xff] %vm348_vm0, %v2932_v33 }
 0x7ca   : > { %v2739_v38 = vpop.f32.mrf.mxu0 }
 0x7cb   : > { %v2883_v59 = vadd.f32 %v2882_v46, %v2739_v38 }
 0x7cd   : > { %v2933_v28 = vadd.f32 %v5176_v32, %v2883_v59 }
 0x7cf   : > { %2965 = vst.msk [vmem:[%s5183_s21 + $0xb0] sm:$0xff] %vm348_vm0, %v2933_v28 }
 0x7d2   : > { %v2741_v25 = vpop.f32.mrf.mxu0 }
 0x7d3   : > { %v2885_v40 = vadd.f32 %v2884_v56, %v2741_v25 }
 0x7d5   : > { %v2934_v5 = vadd.f32 %v5176_v32, %v2885_v40 }
 0x7d7   : > { %2966 = vst.msk [vmem:[%s5183_s21 + $0xb8] sm:$0xff] %vm348_vm0, %v2934_v5 }
 0x7e3   : > { %v2744_v37 = vpop.f32.mrf.mxu0 }
 0x7e4   : > { %v2888_v21 = vadd.f32 %v2887_v11, %v2744_v37 }
 0x7e6   : > { %v2935_v15 = vadd.f32 %v5176_v32, %v2888_v21 }
 0x7e8   : > { %2967 = vst.msk [vmem:[%s5183_s21 + $0xc0] sm:$0xff] %vm348_vm0, %v2935_v15 }
 0x7eb   : > { %v2746_v12 = vpop.f32.mrf.mxu0 }
 0x7ec   : > { %v2890_v39 = vadd.f32 %v2889_v30, %v2746_v12 }
 0x7ee   : > { %v2936_v14 = vadd.f32 %v5176_v32, %v2890_v39 }
 0x7f0   : > { %2968 = vst.msk [vmem:[%s5183_s21 + $0xc8] sm:$0xff] %vm348_vm0, %v2936_v14 }
 0x806   : > { %v2749_v49 = vpop.f32.mrf.mxu0 }
 0x807   : > { %v2893_v17 = vadd.f32 %v2892_v29, %v2749_v49 }
 0x809   : > { %v2937_v18 = vadd.f32 %v5176_v32, %v2893_v17 }
 0x80b   : > { %2969 = vst.msk [vmem:[%s5183_s21 + $0xd0] sm:$0xff] %vm348_vm0, %v2937_v18 }
 0x80e   : > { %v2751_v27 = vpop.f32.mrf.mxu0 }
 0x80f   : > { %v2895_v51 = vadd.f32 %v2894_v9, %v2751_v27 }
 0x811   : > { %v2938_v36 = vadd.f32 %v5176_v32, %v2895_v51 }
 0x813   : > { %2970 = vst.msk [vmem:[%s5183_s21 + $0xd8] sm:$0xff] %vm348_vm0, %v2938_v36 }
 0x824   : > { %v2754_v8 = vpop.f32.mrf.mxu0 }
 0x825   : > { %v2898_v26 = vadd.f32 %v2897_v50, %v2754_v8 }
 0x827   : > { %v2939_v61 = vadd.f32 %v5176_v32, %v2898_v26 }
 0x829   : > { %2971 = vst.msk [vmem:[%s5183_s21 + $0xe0] sm:$0xff] %vm348_vm0, %v2939_v61 }
 0x82c   : > { %v2756_v13 = vpop.f32.mrf.mxu0 }
 0x82d   : > { %v2900_v10 = vadd.f32 %v2899_v55, %v2756_v13 }
 0x82f   : > { %v2940_v4 = vadd.f32 %v5176_v32, %v2900_v10 }
 0x831   : > { %2972 = vst.msk [vmem:[%s5183_s21 + $0xe8] sm:$0xff] %vm348_vm0, %v2940_v4 }
 0x838   : > { %v2759_v6 = vpop.f32.mrf.mxu0 }
 0x839   : > { %v2903_v22 = vadd.f32 %v2902_v44, %v2759_v6 }
 0x83b   : > { %v2941_v45 = vadd.f32 %v5176_v32, %v2903_v22 }
 0x83d   : > { %2973 = vst.msk [vmem:[%s5183_s21 + $0xf0] sm:$0xff] %vm348_vm0, %v2941_v45 }
 0x840   : > { %v2761_v7 = vpop.f32.mrf.mxu0 }
 0x841   : > { %v2905_v24 = vadd.f32 %v2904_v2, %v2761_v7 }
 0x843   : > { %v2942_v63 = vadd.f32 %v5176_v32, %v2905_v24 }
 0x845   : > { %2974 = vst.msk [vmem:[%s5183_s21 + $0xf8] sm:$0xff] %vm348_vm0, %v2942_v63 }
 0x846 PF: > { %s17_s24 = sadd.s32 1, %s3499_s24  }
 0x847   : > { %p14_p4 = scmp.ge.s32.totalorder %s17_s24, 4  }
 0x849   :  { %16 = sbr.rel (!%p14_p4) target bundleno = 1 (0x1), region = 79 }

</bundles_post_ra>
